<compile_context>
chip_gen: v5e
topology: v5e:2x2
jax: 0.10.0
libtpu: 0.0.40
codegen_flags: <defaults>
</compile_context>

<pallas_src>
import functools
import math

import jax
import jax.numpy as jnp
from jax.experimental import pallas as pl
from jax.experimental.pallas import tpu as pltpu

EPS = 1e-6


def _layer_norm(x, gamma, beta, *, recip=None):
    # alpha * (x - mean) / (std + eps) + bias ; torch.std is the unbiased (N-1) estimator.
    mean = jnp.mean(x, axis=-1, keepdims=True)
    d = x - mean
    var = jnp.sum(d * d, axis=-1, keepdims=True) / (x.shape[-1] - 1)
    denom = jnp.sqrt(var) + EPS
    inv = recip(denom) if recip is not None else 1.0 / denom       # (M,1) reciprocal, then mul
    return gamma * (d * inv) + beta


def encoder_kernel(x_ref,
                   ng_ref, nb_ref, n1g_ref, n1b_ref,
                   wqkv_ref, bqkv_ref, wo_ref, bo_ref,
                   w1_ref, b1_ref, w2_ref, b2_ref,
                   o_ref, *, num_head, head_dim):
    Bb, T, C = x_ref.shape
    H, dk = num_head, head_dim
    E = H * dk
    M = Bb * T
    mxdt = w1_ref.dtype                       # bf16 MXU inputs; accumulation stays f32

    x = x_ref[...].reshape(M, C).astype(jnp.float32)   # (rows, C) activation slab
    recip = lambda t: pl.reciprocal(t, approx=False)

    # ---- sub-block 1: x = x + MHA(Norm(x))   (mask=None, dropout=0 -> identity) ----
    x1 = _layer_norm(x, ng_ref[...], nb_ref[...], recip=recip)

    # Fused, lane-dense QKV projection: one (M, C) @ (C, 3E) dot, then E-aligned lane splits.
    qkv = jnp.dot(x1.astype(mxdt), wqkv_ref[...],
                  preferred_element_type=jnp.float32) + bqkv_ref[...]

    def heads(m2d):
        # (M, E) -> (Bb*H, T, dk): fold heads into a single leading batch dim.
        return jnp.transpose(m2d.reshape(Bb, T, H, dk), (0, 2, 1, 3)).reshape(Bb * H, T, dk)

    q = heads(qkv[:, :E])
    k = heads(qkv[:, E:2 * E])
    v = heads(qkv[:, 2 * E:])

    scale = 1.0 / math.sqrt(dk)
    s = jnp.einsum("btd,bsd->bts", q.astype(mxdt), k.astype(mxdt),
                   preferred_element_type=jnp.float32) * scale
    s = s - jnp.max(s, axis=-1, keepdims=True)                     # f32 softmax
    p = jnp.exp(s)
    p = p * pl.reciprocal(jnp.sum(p, axis=-1, keepdims=True), approx=True)
    ctx = jnp.einsum("bts,bsd->btd", p.astype(mxdt), v.astype(mxdt),
                     preferred_element_type=jnp.float32)
    # (Bb*H, T, dk) -> (Bb, T, H, dk) -> (M, E): the H*dk merge == concat(heads).
    ctx = jnp.transpose(ctx.reshape(Bb, H, T, dk), (0, 2, 1, 3)).reshape(M, E)
    # Single full-K output projection: (M, E) @ (E, C).
    attn = jnp.dot(ctx.astype(mxdt), wo_ref[...],
                   preferred_element_type=jnp.float32) + bo_ref[...]
    x = x + attn

    # ---- sub-block 2: x = x + MLP(Norm1(x)) ----
    x2 = _layer_norm(x, n1g_ref[...], n1b_ref[...], recip=recip)
    hid = jnp.dot(x2.astype(mxdt), w1_ref[...],
                  preferred_element_type=jnp.float32) + b1_ref[...]
    hid = jnp.maximum(hid, 0.0)
    x = x + jnp.dot(hid.astype(mxdt), w2_ref[...],
                    preferred_element_type=jnp.float32) + b2_ref[...]

    o_ref[...] = x.reshape(Bb, T, C).astype(o_ref.dtype)


def _vmem_capacity_bytes():
    try:
        return int(pltpu.get_tpu_info().vmem_capacity_bytes)
    except Exception:
        return 64 << 20        # conservative fallback = v7x per-TensorCore VMEM


def _act_bytes(bb, T, C, E, hidden, num_head):
    """Rough f32 live-activation bound for one (bb, T, C) block, including the
    (bb, H, T, T) score/softmax tensors and the double-buffered x in/out blocks."""
    rows = bb * T
    return (4 * rows * (hidden + 8 * E + 6 * C)      # slab, norms, qkv, per-head copies, FFN
            + 8 * bb * num_head * T * T              # scores + softmax probs (f32)
            + 16 * bb * T * C)                       # x in + out, double-buffered


def _pick_batch_block(B, T, C, E, hidden, num_head, budget_bytes, target_rows=512):
    """Largest divisor of B (capped at B//2 so the grid has >= 2 steps and can shard across
    v7x's two TensorCores) whose live activations fit the budget; stop once bb*T >= target_rows."""
    cap = max(1, B // 2)
    best = 1
    for bb in range(1, cap + 1):
        if B % bb:
            continue
        if bb > 1 and _act_bytes(bb, T, C, E, hidden, num_head) > budget_bytes:
            break
        best = bb
        if bb * T >= target_rows:
            break
    return best


def _make_const_spec(a):
    """Grid-invariant weight block; single-buffered when the BlockSpec signature allows it."""
    nd = a.ndim
    idx = lambda i, _nd=nd: (0,) * _nd
    try:
        return pl.BlockSpec(a.shape, idx, pipeline_mode=pl.Buffered(1)), True
    except TypeError:
        return pl.BlockSpec(a.shape, idx), False


def transformer_encoder(x, params, num_head, *, use_bf16=True, batch_block=None):
    B, T, C = x.shape
    E = params["wq"].shape[1]                      # embed_dim
    hidden = params["w1"].shape[1]
    assert E % num_head == 0, "embed_dim must be divisible by num_head"
    dk = E // num_head
    assert params["wo"].shape == (E, C), "output projection must map embed_dim -> in_channel"

    mxdt = jnp.bfloat16 if use_bf16 else jnp.float32

    # Fused QKV weight/bias (layout plumbing done once in the wrapper).
    wqkv = jnp.concatenate([params["wq"], params["wk"], params["wv"]], axis=1).astype(mxdt)  # (C, 3E)
    bqkv = jnp.concatenate([params["bq"], params["bk"], params["bv"]], axis=1)               # (1, 3E)
    wo = params["wo"].astype(mxdt)
    bo = params["bo"]
    w1 = params["w1"].astype(mxdt)
    w2 = params["w2"].astype(mxdt)
    b1, b2 = params["b1"], params["b2"]

    weights = [params["norm_g"], params["norm_b"], params["norm1_g"], params["norm1_b"],
               wqkv, bqkv, wo, bo, w1, b1, w2, b2]

    specs_and_flags = [_make_const_spec(w) for w in weights]
    weight_specs = [s for s, _ in specs_and_flags]
    single_buffered = all(f for _, f in specs_and_flags)
    n_weight_bufs = 1 if single_buffered else 2

    weight_bytes = sum(int(w.size) * w.dtype.itemsize for w in weights)
    weight_vmem = n_weight_bufs * weight_bytes

    vmem_cap = _vmem_capacity_bytes()
    act_budget = max(4 << 20, int(0.45 * vmem_cap) - weight_vmem)

    if batch_block is None:
        batch_block = _pick_batch_block(B, T, C, E, hidden, num_head, act_budget)
    assert B % batch_block == 0
    grid = (B // batch_block,)

    in_specs = [pl.BlockSpec((batch_block, T, C), lambda i: (i, 0, 0))] + weight_specs
    out_spec = pl.BlockSpec((batch_block, T, C), lambda i: (i, 0, 0))

    # Advisory cost estimate for XLA's scheduler.
    M_total = B * T
    flops = (6 * M_total * C * E          # fused QKV projection
             + 4 * B * T * T * E          # scores + attn*V
             + 2 * M_total * E * C        # output projection
             + 4 * M_total * C * hidden)  # FFN
    transcendentals = B * num_head * T * T
    bytes_accessed = 2 * int(x.size) * x.dtype.itemsize + weight_bytes

    need = weight_vmem + _act_bytes(batch_block, T, C, E, hidden, num_head) + (4 << 20)
    vmem_limit = int(min(max(need, 32 << 20), int(0.9 * vmem_cap)))

    kernel = functools.partial(encoder_kernel, num_head=num_head, head_dim=dk)
    return pl.pallas_call(
        kernel,
        out_shape=jax.ShapeDtypeStruct((B, T, C), x.dtype),
        grid_spec=pltpu.PrefetchScalarGridSpec(
            num_scalar_prefetch=0,
            grid=grid,
            in_specs=in_specs,
            out_specs=out_spec,
            scratch_shapes=[],
        ),
        compiler_params=pltpu.CompilerParams(
            dimension_semantics=("parallel",),
            vmem_limit_bytes=vmem_limit,
        ),
        cost_estimate=pl.CostEstimate(
            flops=int(flops),
            transcendentals=int(transcendentals),
            bytes_accessed=int(bytes_accessed)),
    )(x, *weights)


def init_params(key, in_channel, embed_dim, hidden=2048):
    """Deterministic synthetic init mirroring nn.Linear / Norm defaults.
    Linear weights stored as (in_features, out_features); biases / norm params as (1, features)."""
    def linear(k, fan_in, fan_out):
        bound = 1.0 / math.sqrt(fan_in)
        kw, kb = jax.random.split(k)
        w = jax.random.uniform(kw, (fan_in, fan_out), jnp.float32, -bound, bound)
        b = jax.random.uniform(kb, (1, fan_out), jnp.float32, -bound, bound)
        return w, b

    keys = iter(jax.random.split(key, 8))
    p = {}
    for name in ("norm", "norm1"):
        p[f"{name}_g"] = jnp.ones((1, embed_dim), jnp.float32)
        p[f"{name}_b"] = jnp.zeros((1, embed_dim), jnp.float32)
    p["wq"], p["bq"] = linear(next(keys), in_channel, embed_dim)
    p["wk"], p["bk"] = linear(next(keys), in_channel, embed_dim)
    p["wv"], p["bv"] = linear(next(keys), in_channel, embed_dim)
    p["wo"], p["bo"] = linear(next(keys), embed_dim, in_channel)
    p["w1"], p["b1"] = linear(next(keys), in_channel, hidden)
    p["w2"], p["b2"] = linear(next(keys), hidden, in_channel)
    return p


def reference(x, p, num_head, use_bf16=True):
    """Pure-JAX reference with the same precision policy (bf16 matmul inputs, f32 accum)."""
    E = p["wq"].shape[1]
    dk = E // num_head
    cast = (lambda a: a.astype(jnp.bfloat16)) if use_bf16 else (lambda a: a)
    dot = lambda a, b: jnp.dot(cast(a), cast(b), preferred_element_type=jnp.float32)
    scale = 1.0 / math.sqrt(dk)

    def one(xb):
        T = xb.shape[0]
        x1 = _layer_norm(xb, p["norm_g"], p["norm_b"])
        q = dot(x1, p["wq"]) + p["bq"]
        k = dot(x1, p["wk"]) + p["bk"]
        v = dot(x1, p["wv"]) + p["bv"]
        qh = q.reshape(T, num_head, dk).transpose(1, 0, 2)
        kh = k.reshape(T, num_head, dk).transpose(1, 0, 2)
        vh = v.reshape(T, num_head, dk).transpose(1, 0, 2)
        s = jnp.einsum("htd,hsd->hts", cast(qh), cast(kh),
                       preferred_element_type=jnp.float32) * scale
        s = s - jnp.max(s, axis=-1, keepdims=True)
        pr = jnp.exp(s)
        pr = pr / jnp.sum(pr, axis=-1, keepdims=True)
        ctx = jnp.einsum("hts,hsd->htd", cast(pr), cast(vh),
                         preferred_element_type=jnp.float32)
        concat = ctx.transpose(1, 0, 2).reshape(T, E)
        a = dot(concat, p["wo"]) + p["bo"]
        xb = xb + a
        x2 = _layer_norm(xb, p["norm1_g"], p["norm1_b"])
        h = jnp.maximum(dot(x2, p["w1"]) + p["b1"], 0.0)
        return xb + dot(h, p["w2"]) + p["b2"]

    return jax.vmap(one)(x)


if __name__ == "__main__":
    IN_CHANNEL = 128       # residual + Norm(embed_dim) require in_channel == embed_dim
    EMBED_DIM = 128        # lane-dense last dim (multiple of 128) -> unmasked output stores
    NUM_HEAD = 4
    B, T = 4, 16

    key = jax.random.PRNGKey(0)
    kx, kp = jax.random.split(key)
    x = jax.random.normal(kx, (B, T, IN_CHANNEL), jnp.float32)
    params = init_params(kp, IN_CHANNEL, EMBED_DIM)

    out = transformer_encoder(x, params, NUM_HEAD)
    out = jax.block_until_ready(out)

    ref = reference(x, params, NUM_HEAD)
    assert out.shape == (B, T, IN_CHANNEL)
    assert jnp.allclose(out, ref, atol=2e-2, rtol=2e-2), float(jnp.max(jnp.abs(out - ref)))
    print("KERNEL_OK")
</pallas_src>

<mosaic_0001>
module attributes {stable_mosaic.version = 11 : i64} {
  func.func @encoder_kernel(%arg0: i32, %arg1: memref<2x16x128xf32, #tpu.memory_space<vmem>>, %arg2: memref<1x128xf32, #tpu.memory_space<vmem>>, %arg3: memref<1x128xf32, #tpu.memory_space<vmem>>, %arg4: memref<1x128xf32, #tpu.memory_space<vmem>>, %arg5: memref<1x128xf32, #tpu.memory_space<vmem>>, %arg6: memref<128x384xbf16, #tpu.memory_space<vmem>>, %arg7: memref<1x384xf32, #tpu.memory_space<vmem>>, %arg8: memref<128x128xbf16, #tpu.memory_space<vmem>>, %arg9: memref<1x128xf32, #tpu.memory_space<vmem>>, %arg10: memref<128x2048xbf16, #tpu.memory_space<vmem>>, %arg11: memref<1x2048xf32, #tpu.memory_space<vmem>>, %arg12: memref<2048x128xbf16, #tpu.memory_space<vmem>>, %arg13: memref<1x128xf32, #tpu.memory_space<vmem>>, %arg14: memref<2x16x128xf32, #tpu.memory_space<vmem>>) attributes {dimension_semantics = [#tpu.dimension_semantics<parallel>], iteration_bounds = array<i64: 2>, scalar_prefetch = 0 : i64, scratch_operands = 0 : i64, tpu.core_type = #tpu.core_type<tc>, window_params = [{transform_indices = @transform_0, window_bounds = array<i64: 2, 16, 128>}, {pipeline_mode = #tpu.pipeline_mode<synchronous>, transform_indices = @transform_1, window_bounds = array<i64: 1, 128>}, {pipeline_mode = #tpu.pipeline_mode<synchronous>, transform_indices = @transform_2, window_bounds = array<i64: 1, 128>}, {pipeline_mode = #tpu.pipeline_mode<synchronous>, transform_indices = @transform_3, window_bounds = array<i64: 1, 128>}, {pipeline_mode = #tpu.pipeline_mode<synchronous>, transform_indices = @transform_4, window_bounds = array<i64: 1, 128>}, {pipeline_mode = #tpu.pipeline_mode<synchronous>, transform_indices = @transform_5, window_bounds = array<i64: 128, 384>}, {pipeline_mode = #tpu.pipeline_mode<synchronous>, transform_indices = @transform_6, window_bounds = array<i64: 1, 384>}, {pipeline_mode = #tpu.pipeline_mode<synchronous>, transform_indices = @transform_7, window_bounds = array<i64: 128, 128>}, {pipeline_mode = #tpu.pipeline_mode<synchronous>, transform_indices = @transform_8, window_bounds = array<i64: 1, 128>}, {pipeline_mode = #tpu.pipeline_mode<synchronous>, transform_indices = @transform_9, window_bounds = array<i64: 128, 2048>}, {pipeline_mode = #tpu.pipeline_mode<synchronous>, transform_indices = @transform_10, window_bounds = array<i64: 1, 2048>}, {pipeline_mode = #tpu.pipeline_mode<synchronous>, transform_indices = @transform_11, window_bounds = array<i64: 2048, 128>}, {pipeline_mode = #tpu.pipeline_mode<synchronous>, transform_indices = @transform_12, window_bounds = array<i64: 1, 128>}, {transform_indices = @transform_13, window_bounds = array<i64: 2, 16, 128>}]} {
    %c0 = arith.constant 0 : index
    %c0_0 = arith.constant 0 : index
    %c0_1 = arith.constant 0 : index
    %0 = vector.load %arg1[%c0, %c0_0, %c0_1] : memref<2x16x128xf32, #tpu.memory_space<vmem>>, vector<2x16x128xf32>
    %1 = vector.shape_cast %0 : vector<2x16x128xf32> to vector<32x128xf32>
    %c0_2 = arith.constant 0 : index
    %c0_3 = arith.constant 0 : index
    %2 = vector.load %arg2[%c0_2, %c0_3] : memref<1x128xf32, #tpu.memory_space<vmem>>, vector<1x128xf32>
    %c0_4 = arith.constant 0 : index
    %c0_5 = arith.constant 0 : index
    %3 = vector.load %arg3[%c0_4, %c0_5] : memref<1x128xf32, #tpu.memory_space<vmem>>, vector<1x128xf32>
    %cst = arith.constant dense<0.000000e+00> : vector<32xf32>
    %4 = vector.multi_reduction <add>, %1, %cst [1] : vector<32x128xf32> to vector<32xf32>
    %5 = vector.shape_cast %4 : vector<32xf32> to vector<32x1xf32>
    %cst_6 = arith.constant 1.280000e+02 : f32
    %6 = vector.broadcast %cst_6 : f32 to vector<32x1xf32>
    %7 = arith.divf %5, %6 : vector<32x1xf32>
    %8 = vector.broadcast %7 : vector<32x1xf32> to vector<32x128xf32>
    %9 = arith.subf %1, %8 : vector<32x128xf32>
    %10 = arith.mulf %9, %9 : vector<32x128xf32>
    %cst_7 = arith.constant dense<0.000000e+00> : vector<32xf32>
    %11 = vector.multi_reduction <add>, %10, %cst_7 [1] : vector<32x128xf32> to vector<32xf32>
    %12 = vector.shape_cast %11 : vector<32xf32> to vector<32x1xf32>
    %cst_8 = arith.constant 1.270000e+02 : f32
    %13 = vector.broadcast %cst_8 : f32 to vector<32x1xf32>
    %14 = arith.divf %12, %13 : vector<32x1xf32>
    %15 = math.sqrt %14 : vector<32x1xf32>
    %cst_9 = arith.constant 9.99999997E-7 : f32
    %16 = vector.broadcast %cst_9 : f32 to vector<32x1xf32>
    %17 = arith.addf %15, %16 : vector<32x1xf32>
    %18 = tpu.reciprocal %17 : vector<32x1xf32> -> vector<32x1xf32>
    %19 = vector.broadcast %18 : vector<32x1xf32> to vector<32x128xf32>
    %20 = arith.mulf %9, %19 : vector<32x128xf32>
    %21 = vector.broadcast %2 : vector<1x128xf32> to vector<32x128xf32>
    %22 = arith.mulf %21, %20 : vector<32x128xf32>
    %23 = vector.broadcast %3 : vector<1x128xf32> to vector<32x128xf32>
    %24 = arith.addf %22, %23 : vector<32x128xf32>
    %25 = arith.truncf %24 : vector<32x128xf32> to vector<32x128xbf16>
    %c0_10 = arith.constant 0 : index
    %c0_11 = arith.constant 0 : index
    %26 = vector.load %arg6[%c0_10, %c0_11] : memref<128x384xbf16, #tpu.memory_space<vmem>>, vector<128x384xbf16>
    %cst_12 = arith.constant dense<0.000000e+00> : vector<32x384xf32>
    %27 = tpu.matmul %25, %26, %cst_12 {dimension_numbers = #tpu.dot_dimension_numbers<[1], [0], [0], [1], [0, 0, 1, 1], [], []>} : vector<32x128xbf16>, vector<128x384xbf16>, vector<32x384xf32> -> vector<32x384xf32>
    %c0_13 = arith.constant 0 : index
    %c0_14 = arith.constant 0 : index
    %28 = vector.load %arg7[%c0_13, %c0_14] : memref<1x384xf32, #tpu.memory_space<vmem>>, vector<1x384xf32>
    %29 = vector.broadcast %28 : vector<1x384xf32> to vector<32x384xf32>
    %30 = arith.addf %27, %29 : vector<32x384xf32>
    %31 = vector.extract_strided_slice %30 {offsets = [0, 0], sizes = [32, 128], strides = [1, 1]} : vector<32x384xf32> to vector<32x128xf32>
    %32 = vector.shape_cast %31 : vector<32x128xf32> to vector<2x16x4x32xf32>
    %33 = tpu.transpose %32, [0, 2, 1, 3] : vector<2x16x4x32xf32> -> vector<2x4x16x32xf32>
    %34 = vector.shape_cast %33 : vector<2x4x16x32xf32> to vector<8x16x32xf32>
    %35 = vector.extract_strided_slice %30 {offsets = [0, 128], sizes = [32, 128], strides = [1, 1]} : vector<32x384xf32> to vector<32x128xf32>
    %36 = vector.shape_cast %35 : vector<32x128xf32> to vector<2x16x4x32xf32>
    %37 = tpu.transpose %36, [0, 2, 1, 3] : vector<2x16x4x32xf32> -> vector<2x4x16x32xf32>
    %38 = vector.shape_cast %37 : vector<2x4x16x32xf32> to vector<8x16x32xf32>
    %39 = vector.extract_strided_slice %30 {offsets = [0, 256], sizes = [32, 128], strides = [1, 1]} : vector<32x384xf32> to vector<32x128xf32>
    %40 = vector.shape_cast %39 : vector<32x128xf32> to vector<2x16x4x32xf32>
    %41 = tpu.transpose %40, [0, 2, 1, 3] : vector<2x16x4x32xf32> -> vector<2x4x16x32xf32>
    %42 = vector.shape_cast %41 : vector<2x4x16x32xf32> to vector<8x16x32xf32>
    %43 = arith.truncf %34 : vector<8x16x32xf32> to vector<8x16x32xbf16>
    %44 = arith.truncf %38 : vector<8x16x32xf32> to vector<8x16x32xbf16>
    "tpu.trace_start"() <{level = 10 : i32, message = "btd,bsd->bts"}> : () -> ()
    %cst_15 = arith.constant dense<0.000000e+00> : vector<8x16x16xf32>
    %45 = tpu.matmul %43, %44, %cst_15 {dimension_numbers = #tpu.dot_dimension_numbers<[2], [2], [1], [1], [0, 0, 0, 1, 1, 1], [0], [0]>} : vector<8x16x32xbf16>, vector<8x16x32xbf16>, vector<8x16x16xf32> -> vector<8x16x16xf32>
    "tpu.trace_stop"() : () -> ()
    %cst_16 = arith.constant 0.176776692 : f32
    %46 = vector.broadcast %cst_16 : f32 to vector<8x16x16xf32>
    %47 = arith.mulf %45, %46 : vector<8x16x16xf32>
    %cst_17 = arith.constant dense<0xFF800000> : vector<8x16xf32>
    %48 = vector.multi_reduction <maximumf>, %47, %cst_17 [2] : vector<8x16x16xf32> to vector<8x16xf32>
    %49 = vector.shape_cast %48 : vector<8x16xf32> to vector<8x16x1xf32>
    %50 = vector.broadcast %49 : vector<8x16x1xf32> to vector<8x16x16xf32>
    %51 = arith.subf %47, %50 : vector<8x16x16xf32>
    %52 = math.exp %51 : vector<8x16x16xf32>
    %cst_18 = arith.constant dense<0.000000e+00> : vector<8x16xf32>
    %53 = vector.multi_reduction <add>, %52, %cst_18 [2] : vector<8x16x16xf32> to vector<8x16xf32>
    %54 = vector.shape_cast %53 : vector<8x16xf32> to vector<8x16x1xf32>
    %55 = tpu.reciprocal %54 {approx = true} : vector<8x16x1xf32> -> vector<8x16x1xf32>
    %56 = vector.broadcast %55 : vector<8x16x1xf32> to vector<8x16x16xf32>
    %57 = arith.mulf %52, %56 : vector<8x16x16xf32>
    %58 = arith.truncf %57 : vector<8x16x16xf32> to vector<8x16x16xbf16>
    %59 = arith.truncf %42 : vector<8x16x32xf32> to vector<8x16x32xbf16>
    "tpu.trace_start"() <{level = 10 : i32, message = "bts,bsd->btd"}> : () -> ()
    %cst_19 = arith.constant dense<0.000000e+00> : vector<8x16x32xf32>
    %60 = tpu.matmul %58, %59, %cst_19 {dimension_numbers = #tpu.dot_dimension_numbers<[2], [1], [1], [2], [0, 0, 0, 1, 1, 2], [0], [0]>} : vector<8x16x16xbf16>, vector<8x16x32xbf16>, vector<8x16x32xf32> -> vector<8x16x32xf32>
    "tpu.trace_stop"() : () -> ()
    %61 = vector.shape_cast %60 : vector<8x16x32xf32> to vector<2x4x16x32xf32>
    %62 = tpu.transpose %61, [0, 2, 1, 3] : vector<2x4x16x32xf32> -> vector<2x16x4x32xf32>
    %63 = vector.shape_cast %62 : vector<2x16x4x32xf32> to vector<32x128xf32>
    %64 = arith.truncf %63 : vector<32x128xf32> to vector<32x128xbf16>
    %c0_20 = arith.constant 0 : index
    %c0_21 = arith.constant 0 : index
    %65 = vector.load %arg8[%c0_20, %c0_21] : memref<128x128xbf16, #tpu.memory_space<vmem>>, vector<128x128xbf16>
    %cst_22 = arith.constant dense<0.000000e+00> : vector<32x128xf32>
    %66 = tpu.matmul %64, %65, %cst_22 {dimension_numbers = #tpu.dot_dimension_numbers<[1], [0], [0], [1], [0, 0, 1, 1], [], []>} : vector<32x128xbf16>, vector<128x128xbf16>, vector<32x128xf32> -> vector<32x128xf32>
    %c0_23 = arith.constant 0 : index
    %c0_24 = arith.constant 0 : index
    %67 = vector.load %arg9[%c0_23, %c0_24] : memref<1x128xf32, #tpu.memory_space<vmem>>, vector<1x128xf32>
    %68 = vector.broadcast %67 : vector<1x128xf32> to vector<32x128xf32>
    %69 = arith.addf %66, %68 : vector<32x128xf32>
    %70 = arith.addf %1, %69 : vector<32x128xf32>
    %c0_25 = arith.constant 0 : index
    %c0_26 = arith.constant 0 : index
    %71 = vector.load %arg4[%c0_25, %c0_26] : memref<1x128xf32, #tpu.memory_space<vmem>>, vector<1x128xf32>
    %c0_27 = arith.constant 0 : index
    %c0_28 = arith.constant 0 : index
    %72 = vector.load %arg5[%c0_27, %c0_28] : memref<1x128xf32, #tpu.memory_space<vmem>>, vector<1x128xf32>
    %cst_29 = arith.constant dense<0.000000e+00> : vector<32xf32>
    %73 = vector.multi_reduction <add>, %70, %cst_29 [1] : vector<32x128xf32> to vector<32xf32>
    %74 = vector.shape_cast %73 : vector<32xf32> to vector<32x1xf32>
    %cst_30 = arith.constant 1.280000e+02 : f32
    %75 = vector.broadcast %cst_30 : f32 to vector<32x1xf32>
    %76 = arith.divf %74, %75 : vector<32x1xf32>
    %77 = vector.broadcast %76 : vector<32x1xf32> to vector<32x128xf32>
    %78 = arith.subf %70, %77 : vector<32x128xf32>
    %79 = arith.mulf %78, %78 : vector<32x128xf32>
    %cst_31 = arith.constant dense<0.000000e+00> : vector<32xf32>
    %80 = vector.multi_reduction <add>, %79, %cst_31 [1] : vector<32x128xf32> to vector<32xf32>
    %81 = vector.shape_cast %80 : vector<32xf32> to vector<32x1xf32>
    %cst_32 = arith.constant 1.270000e+02 : f32
    %82 = vector.broadcast %cst_32 : f32 to vector<32x1xf32>
    %83 = arith.divf %81, %82 : vector<32x1xf32>
    %84 = math.sqrt %83 : vector<32x1xf32>
    %cst_33 = arith.constant 9.99999997E-7 : f32
    %85 = vector.broadcast %cst_33 : f32 to vector<32x1xf32>
    %86 = arith.addf %84, %85 : vector<32x1xf32>
    %87 = tpu.reciprocal %86 : vector<32x1xf32> -> vector<32x1xf32>
    %88 = vector.broadcast %87 : vector<32x1xf32> to vector<32x128xf32>
    %89 = arith.mulf %78, %88 : vector<32x128xf32>
    %90 = vector.broadcast %71 : vector<1x128xf32> to vector<32x128xf32>
    %91 = arith.mulf %90, %89 : vector<32x128xf32>
    %92 = vector.broadcast %72 : vector<1x128xf32> to vector<32x128xf32>
    %93 = arith.addf %91, %92 : vector<32x128xf32>
    %94 = arith.truncf %93 : vector<32x128xf32> to vector<32x128xbf16>
    %c0_34 = arith.constant 0 : index
    %c0_35 = arith.constant 0 : index
    %95 = vector.load %arg10[%c0_34, %c0_35] : memref<128x2048xbf16, #tpu.memory_space<vmem>>, vector<128x2048xbf16>
    %cst_36 = arith.constant dense<0.000000e+00> : vector<32x2048xf32>
    %96 = tpu.matmul %94, %95, %cst_36 {dimension_numbers = #tpu.dot_dimension_numbers<[1], [0], [0], [1], [0, 0, 1, 1], [], []>} : vector<32x128xbf16>, vector<128x2048xbf16>, vector<32x2048xf32> -> vector<32x2048xf32>
    %c0_37 = arith.constant 0 : index
    %c0_38 = arith.constant 0 : index
    %97 = vector.load %arg11[%c0_37, %c0_38] : memref<1x2048xf32, #tpu.memory_space<vmem>>, vector<1x2048xf32>
    %98 = vector.broadcast %97 : vector<1x2048xf32> to vector<32x2048xf32>
    %99 = arith.addf %96, %98 : vector<32x2048xf32>
    %cst_39 = arith.constant 0.000000e+00 : f32
    %100 = vector.broadcast %cst_39 : f32 to vector<32x2048xf32>
    %101 = arith.maximumf %99, %100 : vector<32x2048xf32>
    %102 = arith.truncf %101 : vector<32x2048xf32> to vector<32x2048xbf16>
    %c0_40 = arith.constant 0 : index
    %c0_41 = arith.constant 0 : index
    %103 = vector.load %arg12[%c0_40, %c0_41] : memref<2048x128xbf16, #tpu.memory_space<vmem>>, vector<2048x128xbf16>
    %cst_42 = arith.constant dense<0.000000e+00> : vector<32x128xf32>
    %104 = tpu.matmul %102, %103, %cst_42 {dimension_numbers = #tpu.dot_dimension_numbers<[1], [0], [0], [1], [0, 0, 1, 1], [], []>} : vector<32x2048xbf16>, vector<2048x128xbf16>, vector<32x128xf32> -> vector<32x128xf32>
    %105 = arith.addf %70, %104 : vector<32x128xf32>
    %c0_43 = arith.constant 0 : index
    %c0_44 = arith.constant 0 : index
    %106 = vector.load %arg13[%c0_43, %c0_44] : memref<1x128xf32, #tpu.memory_space<vmem>>, vector<1x128xf32>
    %107 = vector.broadcast %106 : vector<1x128xf32> to vector<32x128xf32>
    %108 = arith.addf %105, %107 : vector<32x128xf32>
    %109 = vector.shape_cast %108 : vector<32x128xf32> to vector<2x16x128xf32>
    %c0_45 = arith.constant 0 : index
    %c0_46 = arith.constant 0 : index
    %c0_47 = arith.constant 0 : index
    %110 = vector.load %arg14[%c0_45, %c0_46, %c0_47] : memref<2x16x128xf32, #tpu.memory_space<vmem>>, vector<2x16x128xf32>
    tpu.vector_store %arg14[%c0_45, %c0_46, %c0_47], %109 {strides = array<i32>} : memref<2x16x128xf32, #tpu.memory_space<vmem>>, vector<2x16x128xf32>,
    return
  }
  func.func @transform_0(%arg0: i32) -> (i32, i32, i32) {
    %c0_i32 = arith.constant 0 : i32
    %c0_i32_0 = arith.constant 0 : i32
    %c0_i32_1 = arith.constant 0 : i32
    return %arg0, %c0_i32, %c0_i32_0 : i32, i32, i32
  }
  func.func @transform_1(%arg0: i32) -> (i32, i32) {
    %c0_i32 = arith.constant 0 : i32
    %c0_i32_0 = arith.constant 0 : i32
    %c0_i32_1 = arith.constant 0 : i32
    return %c0_i32, %c0_i32_0 : i32, i32
  }
  func.func @transform_2(%arg0: i32) -> (i32, i32) {
    %c0_i32 = arith.constant 0 : i32
    %c0_i32_0 = arith.constant 0 : i32
    %c0_i32_1 = arith.constant 0 : i32
    return %c0_i32, %c0_i32_0 : i32, i32
  }
  func.func @transform_3(%arg0: i32) -> (i32, i32) {
    %c0_i32 = arith.constant 0 : i32
    %c0_i32_0 = arith.constant 0 : i32
    %c0_i32_1 = arith.constant 0 : i32
    return %c0_i32, %c0_i32_0 : i32, i32
  }
  func.func @transform_4(%arg0: i32) -> (i32, i32) {
    %c0_i32 = arith.constant 0 : i32
    %c0_i32_0 = arith.constant 0 : i32
    %c0_i32_1 = arith.constant 0 : i32
    return %c0_i32, %c0_i32_0 : i32, i32
  }
  func.func @transform_5(%arg0: i32) -> (i32, i32) {
    %c0_i32 = arith.constant 0 : i32
    %c0_i32_0 = arith.constant 0 : i32
    %c0_i32_1 = arith.constant 0 : i32
    return %c0_i32, %c0_i32_0 : i32, i32
  }
  func.func @transform_6(%arg0: i32) -> (i32, i32) {
    %c0_i32 = arith.constant 0 : i32
    %c0_i32_0 = arith.constant 0 : i32
    %c0_i32_1 = arith.constant 0 : i32
    return %c0_i32, %c0_i32_0 : i32, i32
  }
  func.func @transform_7(%arg0: i32) -> (i32, i32) {
    %c0_i32 = arith.constant 0 : i32
    %c0_i32_0 = arith.constant 0 : i32
    %c0_i32_1 = arith.constant 0 : i32
    return %c0_i32, %c0_i32_0 : i32, i32
  }
  func.func @transform_8(%arg0: i32) -> (i32, i32) {
    %c0_i32 = arith.constant 0 : i32
    %c0_i32_0 = arith.constant 0 : i32
    %c0_i32_1 = arith.constant 0 : i32
    return %c0_i32, %c0_i32_0 : i32, i32
  }
  func.func @transform_9(%arg0: i32) -> (i32, i32) {
    %c0_i32 = arith.constant 0 : i32
    %c0_i32_0 = arith.constant 0 : i32
    %c0_i32_1 = arith.constant 0 : i32
    return %c0_i32, %c0_i32_0 : i32, i32
  }
  func.func @transform_10(%arg0: i32) -> (i32, i32) {
    %c0_i32 = arith.constant 0 : i32
    %c0_i32_0 = arith.constant 0 : i32
    %c0_i32_1 = arith.constant 0 : i32
    return %c0_i32, %c0_i32_0 : i32, i32
  }
  func.func @transform_11(%arg0: i32) -> (i32, i32) {
    %c0_i32 = arith.constant 0 : i32
    %c0_i32_0 = arith.constant 0 : i32
    %c0_i32_1 = arith.constant 0 : i32
    return %c0_i32, %c0_i32_0 : i32, i32
  }
  func.func @transform_12(%arg0: i32) -> (i32, i32) {
    %c0_i32 = arith.constant 0 : i32
    %c0_i32_0 = arith.constant 0 : i32
    %c0_i32_1 = arith.constant 0 : i32
    return %c0_i32, %c0_i32_0 : i32, i32
  }
  func.func @transform_13(%arg0: i32) -> (i32, i32, i32) {
    %c0_i32 = arith.constant 0 : i32
    %c0_i32_0 = arith.constant 0 : i32
    %c0_i32_1 = arith.constant 0 : i32
    return %arg0, %c0_i32, %c0_i32_0 : i32, i32, i32
  }
}

</mosaic_0001>

<bundles_post_ra>
// kernel: tpu_custom_call.1
= control target key start
LH: loop header
LB: loop body
LE: loop exit
PB: predicated region body
PF: predicated region fallthrough
CT: control target
= control target key end

     0   :  { %s10954_s0 = inlined_call_operand.hbm [shape: f32[4,16,128], index: 0, kind: input, shape index: {}]   ;;  %s10955_s1 = inlined_call_operand.hbm [shape: f32[1,128], index: 1, kind: input, shape index: {}]   ;;  %s10956_s2 = inlined_call_operand.vmem [shape: f32[1,128], index: 2, kind: input, shape index: {}]   ;;  %s10957_s3 = inlined_call_operand.vmem [shape: f32[1,128], index: 3, kind: input, shape index: {}]   ;;  %s10958_s4 = inlined_call_operand.hbm [shape: f32[1,128], index: 4, kind: input, shape index: {}]   ;;  %s10959_s5 = inlined_call_operand.hbm [shape: bf16[128,384], index: 5, kind: input, shape index: {}]   ;;  %s10960_s6 = inlined_call_operand.vmem [shape: f32[1,384], index: 6, kind: input, shape index: {}]   ;;  %s10961_s7 = inlined_call_operand.hbm [shape: bf16[128,128], index: 7, kind: input, shape index: {}]   ;;  %s10962_s8 = inlined_call_operand.vmem [shape: f32[1,128], index: 8, kind: input, shape index: {}]   ;;  %s10963_s9 = inlined_call_operand.hbm [shape: bf16[128,2048], index: 9, kind: input, shape index: {}]   ;;  %s10964_s10 = inlined_call_operand.hbm [shape: f32[1,2048], index: 10, kind: input, shape index: {}]   ;;  %s10965_s11 = inlined_call_operand.hbm [shape: bf16[2048,128], index: 11, kind: input, shape index: {}]   ;;  %s10966_s12 = inlined_call_operand.vmem [shape: f32[1,128], index: 12, kind: input, shape index: {}]   ;;  %s10967_s13 = inlined_call_operand.hbm [shape: f32[4,16,128], index: 13, kind: output, shape index: {}]  }
   0x1   :  { %10989 = sst [smem:[#allocation36_spill]] %s10955_s1 }
   0x2   :  { %10990 = sst [smem:[#allocation37_spill]] %s10957_s3 }
   0x3   :  { %10991 = sst [smem:[#allocation38_spill]] %s10958_s4 }
   0x4   :  { %10992 = sst [smem:[#allocation39_spill]] %s10959_s5 }
   0x5   :  { %10993 = sst [smem:[#allocation40_spill]] %s10961_s7 }
   0x6   :  { %10994 = sst [smem:[#allocation41_spill]] %s10963_s9 }
   0x7   :  { %10995 = sst [smem:[#allocation42_spill]] %s10966_s12 }
   0x8   :  { %10996 = sst [smem:[#allocation43_spill]] %s10967_s13 }
   0x9   :  { %18 = vsyncpa [#allocation3], 0 }
   0xa   :  { %20 = vsyncpa [#allocation3 + $0x1], 0 }
   0xb   :  { %21 = vsyncpa [#allocation6], 0 }
   0xc   :  { %22 = vsyncpa [#allocation9], 0 }
   0xd   :  { %23 = vsyncpa [#allocation12], 0 }
   0xe   :  { %24 = vsyncpa [#allocation15], 0 }
   0xf   :  { %25 = vsyncpa [#allocation4], 0 }
  0x10   :  { %27 = vsyncpa [#allocation4 + $0x1], 0  ;;  %s8875_s25 = smov 0   ;;  %s8877_s26 = smov 0  }
  0x11   :  { %s8879_s27 = smov 0   ;;  %s8881_s28 = smov 0  }
  0x12 LB: > { %s10997_s1 = sld [smem:[#allocation36_spill]]  ;;  %s8899_s15 = sadd.s32 4294967295, %s8780_s28   ;;  %s8780_s28 = sphi %s8881_s28, %s11070_s28   ;;  %s8776_s27 = sphi %s8879_s27, %s11069_s27   ;;  %s8772_s26 = sphi %s8877_s26, %s11068_s26   ;;  %s8768_s25 = sphi %s8875_s25, %s11067_s25  }
  0x13   : > { %p6606_p0 = scmp.ge.s32.totalorder %s8780_s28, 1  ;;  %p54_p1 = scmp.eq.s32.totalorder %s8899_s15, 0 }
  0x14   : > { %p342_p2 = scmp.lt.s32.totalorder %s8780_s28, 3  ;;  %s8782_s17 = smov [#allocation5]  }
  0x15   : > { %s356_s18 = sshll.u32 %s8782_s17, 4  ;;  %s10999_s5 = sld [smem:[#allocation39_spill]]  ;;  %s357_s18 = int_to_ptr.vmem [resolvable:$true] %s356_s18 }
  0x16   : > { %p8904_p3 = pnand %p6606_p0, %p342_p2  ;;  %s8783_s23 = smov [#allocation8]  }
  0x17   : > { %s385_s24 = sshll.u32 %s8783_s23, 4  ;;  %s8784_s29 = smov 192   ;;  %s386_s24 = int_to_ptr.vmem [resolvable:$true] %s385_s24 }
  0x18   : > { %s354_s14 = sshll.u32 %s10997_s1, 4  ;;  %p8127_p5 = pneg %p8904_p3  ;;  %s355_s14 = int_to_ptr.hbm [resolvable:$true] %s354_s14 }
  0x19   : > { %s8785_s30 = smov 12   ;;  %s11001_s9 = sld [smem:[#allocation41_spill]] }
  0x1a   : > { %p8916_p6 = pnand %p8127_p5, %p54_p1  ;;  %s8786_s1 = smov [#allocation11]  }
  0x1b   : > { %s383_s21 = sshll.u32 %s10999_s5, 4  ;;  %s419_s5 = sshll.u32 %s8786_s1, 4  ;;  %s384_s21 = int_to_ptr.hbm [resolvable:$true] %s383_s21  ;;  %s420_s5 = int_to_ptr.vmem [resolvable:$true] %s419_s5 }
  0x1c   : > { %8130 = dma.hbm_to_vmem [thread:$0]  (!%p8916_p6), %s355_s14, 16, %s357_s18, [#allocation6]  }
  0x1d   : > { %8136 = dma.hbm_to_vmem [thread:$0]  (!%p8916_p6), %s384_s21, 3072, %s386_s24, [#allocation9], %s8784_s29, %s8784_s29, %s8785_s30  }
  0x1e   : > { %s11002_s4 = sld [smem:[#allocation38_spill]]  ;;  %s8787_s3 = smov 1024  }
  0x1f   : > { %s417_s20 = sshll.u32 %s11001_s9, 4  ;;  %s8788_s14 = smov 64   ;;  %s418_s20 = int_to_ptr.hbm [resolvable:$true] %s417_s20 }
  0x20   : > { %8142 = dma.hbm_to_vmem [thread:$0]  (!%p8916_p6), %s418_s20, 16384, %s420_s5, [#allocation12], %s8787_s3, %s8787_s3, %s8788_s14  }
  0x21   : > { %s8789_s18 = smov [#allocation7]   ;;  %s11003_s7 = sld [smem:[#allocation40_spill]] }
  0x22   : > { %s374_s21 = sshll.u32 %s8789_s18, 4  ;;  %s8790_s1 = smov [#allocation10]   ;;  %s375_s21 = int_to_ptr.vmem [resolvable:$true] %s374_s21 }
  0x23   : > { %s402_s12 = sshll.u32 %s8790_s1, 4  ;;  %s432_s3 = sshll.u32 %s10964_s10, 4  ;;  %s403_s12 = int_to_ptr.vmem [resolvable:$true] %s402_s12  ;;  %s433_s3 = int_to_ptr.hbm [resolvable:$true] %s432_s3 }
  0x24   : > { %s372_s23 = sshll.u32 %s11002_s4, 4  ;;  %s8791_s5 = smov 4   ;;  %s373_s23 = int_to_ptr.hbm [resolvable:$true] %s372_s23 }
  0x25   : > { %8133 = dma.hbm_to_vmem [thread:$0]  (!%p8916_p6), %s373_s23, 16, %s375_s21, [#allocation6]  }
  0x26   : > { %s443_s23 = sshll.u32 %s10965_s11, 4  ;;  %s8792_s18 = smov [#allocation13]   ;;  %s444_s23 = int_to_ptr.hbm [resolvable:$true] %s443_s23 }
  0x27   : > { %s400_s30 = sshll.u32 %s11003_s7, 4  ;;  %s434_s21 = sshll.u32 %s8792_s18, 4  ;;  %s401_s30 = int_to_ptr.hbm [resolvable:$true] %s400_s30  ;;  %s435_s21 = int_to_ptr.vmem [resolvable:$true] %s434_s21 }
  0x28   : > { %8139 = dma.hbm_to_vmem [thread:$0]  (!%p8916_p6), %s401_s30, 1024, %s403_s12, [#allocation9], %s8788_s14, %s8788_s14, %s8791_s5  }
  0x29   : > { %8145 = dma.hbm_to_vmem [thread:$0]  (!%p8916_p6), %s433_s3, 256, %s435_s21, [#allocation12]  }
  0x2a   : > { %s8793_s24 = smov [#allocation14]   ;;  %s6605_s30 = sadd.s32 4294967294, %s8780_s28  }
  0x2b   : > { %s445_s29 = sshll.u32 %s8793_s24, 4  ;;  %s8951_s1 = sadd.s32 1, %s8780_s28   ;;  %s446_s29 = int_to_ptr.vmem [resolvable:$true] %s445_s29 }
  0x2c   : > { %8148 = dma.hbm_to_vmem [thread:$0]  (!%p8916_p6), %s444_s23, 16384, %s446_s29, [#allocation15], %s8788_s14, %s8788_s14, %s8791_s5  }
  0x2d   : > { %s37_s12 = ssub.s32 %s8780_s28, %s8951_s1  ;;  %s40_s13 = sadd.s32 1, %s8776_s27 }
  0x2e   : > { %p38_p7 = scmp.eq.s32.totalorder %s37_s12, 0  ;;  %p47_p8 = scmp.ne.s32.totalorder %s8776_s27, %s8772_s26 }
  0x2f   : > { %p48_p9 = scmp.eq.s32.totalorder %s8780_s28, 0  ;;  %p53_p10 = scmp.ne.s32.totalorder %s8772_s26, %s8768_s25 }
  0x30   : > { %s8962_s17 = scalar_select %p38_p7, %s8776_s27, %s40_s13  }
  0x31   : > { %p8964_p11 = por %p48_p9, %p47_p8  ;;  %p8970_p12 = por %p54_p1, %p53_p10 }
  0x32   : > { %p329_p13 = scmp.eq.s32.totalorder %s8899_s15, 1  ;;  %p335_p0 = scmp.eq.s32.totalorder %s6605_s30, 1 }
  0x33   : > { %p8164_p2 = scmp.lt.s32.totalorder %s8780_s28, 2  ;;  %s462_s14 = sand.u32 1, %s8776_s27  }
  0x34   : > { %p8977_p5 = por %p329_p13, %p47_p8  ;;  %p8981_p6 = por %p335_p0, %p53_p10 }
  0x35   : > { %s6615_s20 = sshll.u32 %s462_s14, 5  ;;  %s7804_s23 = sshll.u32 %s8780_s28, 5 }
  0x36   : > { %s472_s24 = scalar_lea.hbm %s10954_s0, %s7804_s23  ;;  %s466_s29 = scalar_lea.vmem [#allocation2], %s6615_s20 }
  0x37   : > { %s475_s12 = sshll.u32 %s466_s29, 4  ;;  %s473_s13 = sshll.u32 %s472_s24, 4  ;;  %s476_s12 = int_to_ptr.vmem [resolvable:$true] %s475_s12  ;;  %s474_s13 = int_to_ptr.hbm [resolvable:$true] %s473_s13 }
  0x38   : > { %p8991_p7 = pnand %p8164_p2, %p8964_p11  ;;  %s463_s4 = scalar_lea.sflag [#allocation3], %s462_s14 }
  0x39   : > { %s8668_s7 = sshra.s32 %s474_s13, 4  ;;  %s8675_s18 = scalar_lea.hbm %s10954_s0, 64  ;;  %s8669_s7 = int_to_ptr.hbm [resolvable:$true] %s8668_s7 }
  0x3a   : > { %s8670_s9 = scalar_lea.hbm %s8669_s7, 32  ;;  %p8672_p9 = pneg %p8991_p7 }
  0x3b   : > { %p8671_p8 = scmp.ne.s32.totalorder %s8669_s7, %s8670_s9  ;;  %p8676_p11 = scmp.lt.s32.totalorder %s8669_s7, %s10954_s0 }
  0x3c   : > { %p8677_p0 = scmp.lt.s32.totalorder %s8675_s18, %s8670_s9 }
  0x3d   : > { %p8673_p10 = pnand %p8672_p9, %p8671_p8 }
  0x3e   : > { %p8678_p2 = por %p8677_p0, %p8676_p11 }
  0x3f   : > { %p8674_p13 = pneg %p8673_p10 }
  0x41   : > { %p8679_p4 = pnand %p8678_p2, %p8674_p13 }
  0x43   : > { %8682 = shalt.err (!%p8679_p4)
}
  0x44   : > { %s8794_s14 = smov 128   ;;  %s8795_s24 = smov 8  }
  0x45   : > { %8152 = dma.hbm_to_vmem [thread:$0]  (!%p8991_p7), %s474_s13, 512, %s476_s12, %s463_s4, %s8794_s14, %s8794_s14, %s8795_s24  }
  0x46   : > { %487 = sbr.rel (%p8904_p3) target bundleno = 2407 (0x967), region = 72 }
  0x4b   : > { %s9008_s29 = sand.u32 1, %s8772_s26  }
  0x4c   : > { %s6620_s7 = sshll.u32 %s9008_s29, 5  ;;  %s490_s9 = scalar_lea.sflag [#allocation3], %s9008_s29 }
  0x4d   : > { %s9014_s20 = scalar_lea.vmem [#allocation2], %s6620_s7 }
  0x4e   : > { %8743 = dma.done.wait (%p8970_p12), %s490_s9, 512  }
  0x4f   : > { %8745 = vsyncadd (%p8970_p12), %s490_s9, 4294966784 }
  0x50   : > { %8747 = dma.done.wait (%p54_p1), [#allocation6], 32  }
  0x51   : > { %8749 = vsyncadd (%p54_p1), [#allocation6], 4294967264 }
  0x52   : > { %8751 = dma.done.wait (%p54_p1), [#allocation9], 4096  }
  0x53   : > { %8753 = vsyncadd (%p54_p1), [#allocation9], 4294963200 }
  0x54   : > { %8755 = dma.done.wait (%p54_p1), [#allocation12], 16640  }
  0x55   : > { %8757 = vsyncadd (%p54_p1), [#allocation12], 4294950656 }
  0x56   : > { %8759 = dma.done.wait (%p54_p1), [#allocation15], 16384  }
  0x57   : > { %8761 = vsyncadd (%p54_p1), [#allocation15], 4294950912  ;;  %v577_v0 = vld [vmem:[%s9014_s20 + $0x10] sm:$0xff]  ;;  %v575_v1 = vld [vmem:[%s9014_s20] sm:$0xff]  ;;  %v8796_v4 = vmov 128.0   ;;  %v8797_v27 = vmov 127.0  }
  0x58   : > { %585 = vadd.xlane.f32.xlu2 %v577_v0  ;;  %581 = vadd.xlane.f32.xlu0 %v575_v1  ;;  %v576_v2 = vld [vmem:[%s9014_s20 + $0x8] sm:$0xff]  ;;  %v578_v3 = vld [vmem:[%s9014_s20 + $0x18] sm:$0xff]  ;;  %8354 = vrcp.f32 %v8796_v4  ;;  %v7826_v35 = vld [vmem:[#allocation8 + $0xac] sm:$0xf]  ;;  %s8798_s13 = smov 32   ;;  %s8799_s30 = smov 64  }
  0x59   : > { %8356 = vrcp.f32 %v8797_v27  ;;  %v6715_v33 = vld [vmem:[#allocation8 + $0xa8] sm:$0xf]  ;;  %v7827_v34 = vld [vmem:[#allocation8 + $0xb0] sm:$0xf0]  ;;  %v6717_v37 = vld [vmem:[#allocation8 + $0xb4] sm:$0xf0] }
  0x5a   : > { %v6716_v36 = vor.u32 %v7827_v34, %v6715_v33  ;;  %v6723_v38 = vld [vmem:[#allocation8 + $0xb0] sm:$0xf]  ;;  %v7828_v39 = vld [vmem:[#allocation8 + $0xb8] sm:$0xf0]  ;;  %v6720_v40 = vor.u32 %v7826_v35, %v6717_v37  ;;  %v7823_v45 = vld [vmem:[#allocation8 + $0x94] sm:$0xf] }
  0x5b   : > { %v6724_v41 = vor.u32 %v7828_v39, %v6723_v38  ;;  %v6703_v43 = vld [vmem:[#allocation8 + $0x90] sm:$0xf]  ;;  %v7824_v44 = vld [vmem:[#allocation8 + $0x98] sm:$0xf0]  ;;  %v6705_v47 = vld [vmem:[#allocation8 + $0x9c] sm:$0xf0] }
  0x5c   : > { %923 = vmatpush.bf16.msra.mxu0 %v6716_v36  ;;  %942 = vmatpush.bf16.msra.mxu1 %v6720_v40  ;;  %v6704_v46 = vor.u32 %v7824_v44, %v6703_v43  ;;  %v6711_v48 = vld [vmem:[#allocation8 + $0x98] sm:$0xf]  ;;  %v7825_v49 = vld [vmem:[#allocation8 + $0xa0] sm:$0xf0]  ;;  %v6708_v52 = vor.u32 %v7823_v45, %v6705_v47  ;;  %v7820_v58 = vld [vmem:[#allocation8 + $0x7c] sm:$0xf] }
  0x5d   : > { %961 = vmatpush.bf16.msra.mxu2 %v6724_v41  ;;  %v6712_v53 = vor.u32 %v7825_v49, %v6711_v48  ;;  %v6691_v56 = vld [vmem:[#allocation8 + $0x78] sm:$0xf]  ;;  %v7821_v57 = vld [vmem:[#allocation8 + $0x80] sm:$0xf0]  ;;  %v6693_v59 = vld [vmem:[#allocation8 + $0x84] sm:$0xf0] }
  0x5e   : > { %v8355_v5 = vpop.eup %8354  ;;  %v6699_v60 = vld [vmem:[#allocation8 + $0x80] sm:$0xf]  ;;  %v6692_v61 = vor.u32 %v7821_v57, %v6691_v56  ;;  %v6696_v62 = vor.u32 %v7820_v58, %v6693_v59  ;;  %v7822_v63 = vld [vmem:[#allocation8 + $0x88] sm:$0xf0]  ;;  %v7811_v33 = vld [vmem:[#allocation8 + $0x34] sm:$0xf] }
  0x5f   : > { %v590_v6 = vmul.f32 128.0, %v8355_v5  ;;  %vm594_vm0 = vweird.f32 %v8355_v5  ;;  %v8357_v28 = vpop.eup %8356  ;;  %v6657_v34 = vld [vmem:[#allocation8 + $0x3c] sm:$0xf0]  ;;  %v6663_v36 = vld [vmem:[#allocation8 + $0x38] sm:$0xf]  ;;  %s8800_s23 = smov 96  }
  0x60   : > { %583 = vadd.xlane.f32.xlu0 %v576_v2  ;;  %587 = vadd.xlane.f32.xlu2 %v578_v3  ;;  %v617_v29 = vmul.f32 127.0, %v8357_v28  ;;  %vm621_vm1 = vweird.f32 %v8357_v28  ;;  %v7813_v37 = vld [vmem:[#allocation8 + $0x40] sm:$0xf0]  ;;  %v6660_v41 = vor.u32 %v7811_v33, %v6657_v34  ;;  %v6643_v43 = vld [vmem:[#allocation8 + $0x18] sm:$0xf]  ;;  %s11061_s24 = sld [smem:[#allocation37_spill]] }
  0x61   : > { %v591_v7 = vsub.f32 1.0, %v590_v6  ;;  %924 = vmatpush.bf16.msra.mxu0 %v6704_v46  ;;  %943 = vmatpush.bf16.msra.mxu1 %v6708_v52  ;;  %v6687_v6 = vld [vmem:[#allocation8 + $0x68] sm:$0xf]  ;;  %v7809_v44 = vld [vmem:[#allocation8 + $0x20] sm:$0xf0]  ;;  %v6664_v47 = vor.u32 %v7813_v37, %v6663_v36  ;;  %s11064_s4 = sld [smem:[#allocation42_spill]] }
  0x62   : > { %v618_v30 = vsub.f32 1.0, %v617_v29  ;;  %962 = vmatpush.bf16.msra.mxu2 %v6712_v53  ;;  %v6655_v29 = vld [vmem:[#allocation8 + $0x30] sm:$0xf]  ;;  %v7808_v48 = vld [vmem:[#allocation8 + $0x1c] sm:$0xf]  ;;  %s10911_s16 = scalar_lea.vmem [#allocation16], %s6620_s7 }
  0x63   : > { %v592_v8 = vmul.f32 %v8355_v5, %v591_v7  ;;  %v7819_v7 = vld [vmem:[#allocation8 + $0x70] sm:$0xf0]  ;;  %v6645_v49 = vld [vmem:[#allocation8 + $0x24] sm:$0xf0]  ;;  %v6651_v53 = vld [vmem:[#allocation8 + $0x20] sm:$0xf] }
  0x64   : > { %v619_v31 = vmul.f32 %v8357_v28, %v618_v30  ;;  %v7810_v56 = vld [vmem:[#allocation8 + $0x28] sm:$0xf0]  ;;  %s8094_s7 = sshll.u32 %s8899_s15, 5  ;;  %s6449_s15 = scalar_lea.sflag [#allocation4], %s9008_s29 }
  0x65   : > { %v593_v9 = vadd.f32 %v8355_v5, %v592_v8  ;;  %925 = vmatpush.bf16.msra.mxu0 %v6692_v61  ;;  %944 = vmatpush.bf16.msra.mxu1 %v6696_v62  ;;  %v6648_v61 = vor.u32 %v7808_v48, %v6645_v49  ;;  %v6631_v62 = vld [vmem:[#allocation8] sm:$0xf] }
  0x66   : > { %v620_v32 = vadd.f32 %v8357_v28, %v619_v31 }
  0x67   : > { %v9040_v10 = vsel %vm594_vm0, %v8355_v5, %v593_v9  ;;  %v6681_v5 = vld [vmem:[#allocation8 + $0x6c] sm:$0xf0] }
  0x68   : > { %11009 = vst [vmem:[#allocation23_spill] sm:$0xff] %v9040_v10  ;;  %v9062_v42 = vsel %vm621_vm1, %v8357_v28, %v620_v32  ;;  %v7812_v32 = vld [vmem:[#allocation8 + $0x38] sm:$0xf0] }
  0x69   : > { %11010 = vst [vmem:[#allocation24_spill] sm:$0xff] %v9062_v42  ;;  %v6656_v40 = vor.u32 %v7812_v32, %v6655_v29 }
  0xcb   : > { %v586_v11 = vpop.xlane.xlu2 %585  ;;  %v582_v12 = vpop.xlane.xlu0 %581 }
  0xcc   : > { %v598_v13 = vmul.f32 %v9040_v10, %v586_v11  ;;  %v596_v14 = vmul.f32 %v9040_v10, %v582_v12  ;;  %v6688_v11 = vor.u32 %v7819_v7, %v6687_v6  ;;  %v6667_v12 = vld [vmem:[#allocation8 + $0x48] sm:$0xf] }
  0xce   : > { %v9044_v15 = vsub.f32 %v577_v0, %v598_v13  ;;  %v9046_v16 = vsub.f32 %v575_v1, %v596_v14  ;;  %v6700_v0 = vor.u32 %v7822_v63, %v6699_v60  ;;  %v6679_v1 = vld [vmem:[#allocation8 + $0x60] sm:$0xf]  ;;  %v7815_v13 = vld [vmem:[#allocation8 + $0x50] sm:$0xf0]  ;;  %v7814_v14 = vld [vmem:[#allocation8 + $0x4c] sm:$0xf]  ;;  %v6644_v60 = vor.u32 %v7809_v44, %v6643_v43 }
  0xcf   : > { %v6668_v27 = vor.u32 %v7815_v13, %v6667_v12  ;;  %v7806_v63 = vld [vmem:[#allocation8 + $0x8] sm:$0xf0] }
  0xd0   : > { %v606_v17 = vmul.f32 %v9044_v15, %v9044_v15  ;;  %v604_v18 = vmul.f32 %v9046_v16, %v9046_v16  ;;  %963 = vmatpush.bf16.msra.mxu2 %v6700_v0  ;;  %v6632_v13 = vor.u32 %v7806_v63, %v6631_v62 }
  0xd2   : > { %612 = vadd.xlane.f32.xlu0 %v606_v17  ;;  %608 = vadd.xlane.f32.xlu1 %v604_v18 }
  0xd3   : > { %v584_v19 = vpop.xlane.xlu0 %583  ;;  %v588_v20 = vpop.xlane.xlu2 %587 }
  0xd4   : > { %v597_v21 = vmul.f32 %v9040_v10, %v584_v19  ;;  %v599_v23 = vmul.f32 %v9040_v10, %v588_v20  ;;  %v6669_v19 = vld [vmem:[#allocation8 + $0x54] sm:$0xf0]  ;;  %v6675_v20 = vld [vmem:[#allocation8 + $0x50] sm:$0xf]  ;;  %964 = vmatpush.bf16.msra.mxu2 %v6688_v11 }
  0xd5   : > { %v6672_v28 = vor.u32 %v7814_v14, %v6669_v19 }
  0xd6   : > { %v9053_v22 = vsub.f32 %v576_v2, %v597_v21  ;;  %v9058_v25 = vsub.f32 %v578_v3, %v599_v23  ;;  %v7818_v2 = vld [vmem:[#allocation8 + $0x68] sm:$0xf0]  ;;  %v7817_v3 = vld [vmem:[#allocation8 + $0x64] sm:$0xf]  ;;  %v7816_v21 = vld [vmem:[#allocation8 + $0x58] sm:$0xf0] }
  0xd7   : > { %v6680_v4 = vor.u32 %v7818_v2, %v6679_v1  ;;  %v6684_v9 = vor.u32 %v7817_v3, %v6681_v5  ;;  %v6676_v31 = vor.u32 %v7816_v21, %v6675_v20  ;;  %v6652_v3 = vor.u32 %v7810_v56, %v6651_v53  ;;  %v6633_v5 = vld [vmem:[#allocation8 + $0xc] sm:$0xf0] }
  0xd8   : > { %v605_v24 = vmul.f32 %v9053_v22, %v9053_v22  ;;  %v607_v26 = vmul.f32 %v9058_v25, %v9058_v25 }
  0xd9   : > { %926 = vmatpush.bf16.msra.mxu0 %v6680_v4  ;;  %945 = vmatpush.bf16.msra.mxu1 %v6684_v9  ;;  %v7805_v4 = vld [vmem:[#allocation8 + $0x4] sm:$0xf]  ;;  %v7807_v9 = vld [vmem:[#allocation8 + $0x10] sm:$0xf0] }
  0xda   : > { %610 = vadd.xlane.f32.xlu1 %v605_v24  ;;  %965 = vmatpush.bf16.msra.mxu2 %v6676_v31 }
  0xdd   : > { %927 = vmatpush.bf16.msra.mxu0 %v6668_v27  ;;  %946 = vmatpush.bf16.msra.mxu1 %v6672_v28 }
  0xde   : > { %966 = vmatpush.bf16.msra.mxu2 %v6664_v47 }
  0xe1   : > { %928 = vmatpush.bf16.msra.mxu0 %v6656_v40  ;;  %947 = vmatpush.bf16.msra.mxu1 %v6660_v41 }
  0xe2   : > { %614 = vadd.xlane.f32.xlu1 %v607_v26  ;;  %967 = vmatpush.bf16.msra.mxu2 %v6652_v3 }
  0xe5   : > { %929 = vmatpush.bf16.msra.mxu0 %v6644_v60  ;;  %948 = vmatpush.bf16.msra.mxu1 %v6648_v61 }
  0xe9   : > { %930 = vmatpush.bf16.msra.mxu0 %v6632_v13 }
 0x145   : > { %v609_v50 = vpop.xlane.xlu1 %608  ;;  %v613_v51 = vpop.xlane.xlu0 %612 }
 0x146   : > { %v9065_v54 = vmul.f32 %v9062_v42, %v609_v50  ;;  %v9068_v55 = vmul.f32 %v9062_v42, %v613_v51 }
 0x148   : > { %8358 = vrsqrt.f32 %v9065_v54  ;;  %vm634_vm2 = vcmp.eq.f32.partialorder %v9065_v54, inf  ;;  %vm658_vm3 = vcmp.eq.f32.partialorder %v9068_v55, inf  ;;  %v661_v1 = vand.u32 2147483648, %v9068_v55 }
 0x149   : > { %8360 = vrsqrt.f32 %v9068_v55  ;;  %v637_v6 = vand.u32 2147483648, %v9065_v54  ;;  %vm660_vm4 = vcmp.eq.f32.partialorder %v9068_v55, 0.0  ;;  %vm636_vm5 = vcmp.eq.f32.partialorder %v9065_v54, 0.0 }
 0x14d   : > { %v611_v8 = vpop.xlane.xlu1 %610 }
 0x14e   : > { %v8359_v17 = vpop.eup %8358  ;;  %v9073_v18 = vmul.f32 %v9062_v42, %v611_v8  ;;  %v6639_v8 = vld [vmem:[#allocation8 + $0x8] sm:$0xf] }
 0x14f   : > { %v8361_v23 = vpop.eup %8360  ;;  %v628_v24 = vmul.f32 %v8359_v17, %v9065_v54  ;;  %v6640_v21 = vor.u32 %v7807_v9, %v6639_v8 }
 0x150   : > { %v652_v26 = vmul.f32 %v8361_v23, %v9068_v55  ;;  %8362 = vrsqrt.f32 %v9073_v18  ;;  %vm646_vm6 = vcmp.eq.f32.partialorder %v9073_v18, inf  ;;  %v649_v31 = vand.u32 2147483648, %v9073_v18 }
 0x151   : > { %v629_v30 = vmul.f32 %v8359_v17, %v628_v24  ;;  %968 = vmatpush.bf16.msra.mxu2 %v6640_v21  ;;  %vm648_vm7 = vcmp.eq.f32.partialorder %v9073_v18, 0.0 }
 0x152   : > { %v653_v35 = vmul.f32 %v8361_v23, %v652_v26 }
 0x153   : > { %v630_v38 = vmul.f32 0.5, %v629_v30 }
 0x154   : > { %v654_v39 = vmul.f32 0.5, %v653_v35 }
 0x155   : > { %v631_v45 = vsub.f32 1.5, %v630_v38  ;;  %v615_v46 = vpop.xlane.xlu1 %614 }
 0x156   : > { %v8363_v50 = vpop.eup %8362  ;;  %v655_v51 = vsub.f32 1.5, %v654_v39  ;;  %v9079_v52 = vmul.f32 %v9062_v42, %v615_v46 }
 0x157   : > { %v632_v57 = vmul.f32 %v8359_v17, %v631_v45  ;;  %v640_v58 = vmul.f32 %v8363_v50, %v9073_v18  ;;  %v6636_v17 = vor.u32 %v7805_v4, %v6633_v5 }
 0x158   : > { %v656_v59 = vmul.f32 %v8361_v23, %v655_v51  ;;  %8364 = vrsqrt.f32 %v9079_v52  ;;  %vm670_vm8 = vcmp.eq.f32.partialorder %v9079_v52, inf  ;;  %v673_v43 = vand.u32 2147483648, %v9079_v52 }
 0x159   : > { %v633_v0 = vmul.f32 %v632_v57, %v9065_v54  ;;  %v641_v2 = vmul.f32 %v8363_v50, %v640_v58  ;;  %949 = vmatpush.bf16.msra.mxu1 %v6636_v17  ;;  %vm672_vm10 = vcmp.eq.f32.partialorder %v9079_v52, 0.0 }
 0x15a   : > { %v657_v7 = vmul.f32 %v656_v59, %v9068_v55 }
 0x15b   : > { %v635_v11 = vsel %vm634_vm2, %v9065_v54, %v633_v0  ;;  %v642_v12 = vmul.f32 0.5, %v641_v2 }
 0x15c   : > { %v659_v14 = vsel %vm658_vm3, %v9068_v55, %v657_v7  ;;  %v638_v19 = vsel %vm636_vm5, %v637_v6, %v635_v11  ;;  %v8349_v11 = vld [vmem:[%s10956_s2] ss:$0 sm:$0xff] }
 0x15d   : > { %v643_v20 = vsub.f32 1.5, %v642_v12  ;;  %v675_v23 = vadd.f32 1e-06, %v638_v19  ;;  %v662_v24 = vsel %vm660_vm4, %v661_v1, %v659_v14  ;;  %v8348_v1 = vld [vmem:[#allocation5] ss:$0 sm:$0xff] }
 0x15e   : > { %v8365_v26 = vpop.eup %8364  ;;  %v9100_v28 = vadd.f32 1e-06, %v662_v24 }
 0x15f   : > { %v644_v27 = vmul.f32 %v8363_v50, %v643_v20  ;;  %v664_v54 = vmul.f32 %v8365_v26, %v9079_v52  ;;  %8366 = vrcp.f32 %v675_v23  ;;  %v690_v45 = vand.u32 2147483648, %v675_v23 }
 0x160   : > { %8368 = vrcp.f32 %v9100_v28  ;;  %vm684_vm11 = vweird.f32 %v675_v23  ;;  %v688_v47 = vand.u32 2147483647, %v675_v23  ;;  %vm712_vm4 = vweird.f32 %v9100_v28 }
 0x161   : > { %v645_v29 = vmul.f32 %v644_v27, %v9073_v18  ;;  %v665_v30 = vmul.f32 %v8365_v26, %v664_v54  ;;  %v691_v57 = vor.u32 1.1754944e-38, %v690_v45  ;;  %v716_v20 = vand.u32 2147483647, %v9100_v28 }
 0x162   : > { %vm689_vm13 = vcmp.eq.f32.partialorder %v688_v47, 8.507059e+37 }
 0x163   : > { %v647_v55 = vsel %vm646_vm6, %v9073_v18, %v645_v29  ;;  %v666_v32 = vmul.f32 0.5, %v665_v30 }
 0x164   : > { %v650_v33 = vsel %vm648_vm7, %v649_v31, %v647_v55 }
 0x165   : > { %v8367_v34 = vpop.eup %8366  ;;  %v667_v35 = vsub.f32 1.5, %v666_v32  ;;  %v676_v36 = vadd.f32 1e-06, %v650_v33 }
 0x166   : > { %v680_v37 = vmul.f32 %v8367_v34, %v675_v23  ;;  %v9109_v41 = vpop.eup %8368  ;;  %vm685_vm9 = vweird.f32 %v8367_v34 }
 0x167   : > { %v668_v38 = vmul.f32 %v8365_v26, %v667_v35  ;;  %8370 = vrcp.f32 %v676_v36  ;;  %vm686_vm12 = vmor %vm684_vm11, %vm685_vm9  ;;  %v708_v51 = vmul.f32 %v9109_v41, %v9100_v28  ;;  %v704_v60 = vand.u32 2147483648, %v676_v36 }
 0x168   : > { %v681_v39 = vsub.f32 1.0, %v680_v37  ;;  %v702_v62 = vand.u32 2147483647, %v676_v36  ;;  %vm698_vm15 = vweird.f32 %v676_v36  ;;  %vm713_vm2 = vweird.f32 %v9109_v41 }
 0x169   : > { %v669_v40 = vmul.f32 %v668_v38, %v9079_v52  ;;  %v705_v3 = vor.u32 1.1754944e-38, %v704_v60  ;;  %vm9128_vm5 = vmor %vm712_vm4, %vm713_vm2  ;;  %vm717_vm9 = vcmp.eq.f32.partialorder %v716_v20, 8.507059e+37  ;;  %vm2463_vm11 = vcmask 261120  }
 0x16a   : > { %v682_v18 = vmul.f32 %v8367_v34, %v681_v39  ;;  %vm703_vm1 = vcmp.eq.f32.partialorder %v702_v62, 8.507059e+37 }
 0x16b   : > { %v671_v44 = vsel %vm670_vm8, %v9079_v52, %v669_v40  ;;  %v709_v52 = vsub.f32 1.0, %v708_v51 }
 0x16c   : > { %v683_v46 = vadd.f32 %v8367_v34, %v682_v18  ;;  %v674_v48 = vsel %vm672_vm10, %v673_v43, %v671_v44  ;;  %vm1021_vm10 = vcmask 1047556  }
 0x16d   : > { %v8371_v49 = vpop.eup %8370  ;;  %v678_v50 = vadd.f32 1e-06, %v674_v48  ;;  %v710_v4 = vmul.f32 %v9109_v41, %v709_v52 }
 0x16e   : > { %v687_v53 = vsel %vm686_vm12, %v8367_v34, %v683_v46  ;;  %v694_v56 = vmul.f32 %v8371_v49, %v676_v36  ;;  %vm699_vm14 = vweird.f32 %v8371_v49  ;;  %vm2710_vm12 = vcmask 130048  }
 0x16f   : > { %8372 = vrcp.f32 %v678_v50  ;;  %v692_v59 = vsel %vm689_vm13, %v691_v57, %v687_v53  ;;  %vm700_vm0 = vmor %vm698_vm15, %vm699_vm14  ;;  %v732_v13 = vand.u32 2147483648, %v678_v50  ;;  %v730_v19 = vand.u32 2147483647, %v678_v50 }
 0x170   : > { %v695_v58 = vsub.f32 1.0, %v694_v56  ;;  %v735_v0 = vmul.f32 %v692_v59, %v9046_v16  ;;  %v711_v16 = vadd.f32 %v9109_v41, %v710_v4  ;;  %vm726_vm6 = vweird.f32 %v678_v50 }
 0x171   : > { %v733_v27 = vor.u32 1.1754944e-38, %v732_v13  ;;  %vm731_vm8 = vcmp.eq.f32.partialorder %v730_v19, 8.507059e+37  ;;  %vm3635_vm13 = vcmask 523264   ;;  %vm3640_vm14 = vcmask 785408  }
 0x172   : > { %v696_v61 = vmul.f32 %v8371_v49, %v695_v58  ;;  %v742_v9 = vmul.f32 %v8348_v1, %v735_v0  ;;  %v715_v29 = vsel %vm9128_vm5, %v9109_v41, %v711_v16  ;;  %v787_v41 = vld [vmem:[%s10960_s6] sm:$0x7]  ;;  %v8801_v16 = vmov 1983009808  }
 0x173   : > { %v790_v43 = vperm.slane %v787_v41, 1  ;;  %v789_v46 = vperm.slane %v787_v41, 0  ;;  %v1026_v13 = vunpack.c.l.s4 %v8801_v16 }
 0x174   : > { %v697_v63 = vadd.f32 %v8371_v49, %v696_v61  ;;  %v749_v21 = vadd.f32 %v8349_v11, %v742_v9 }
 0x175   : > { %v8373_v2 = vpop.eup %8372 }
 0x176   : > { %v701_v5 = vsel %vm700_vm0, %v8371_v49, %v697_v63  ;;  %v722_v6 = vmul.f32 %v8373_v2, %v678_v50  ;;  %vm727_vm3 = vweird.f32 %v8373_v2 }
 0x177   : > { %v706_v7 = vsel %vm703_vm1, %v705_v3, %v701_v5  ;;  %vm728_vm7 = vmor %vm726_vm6, %vm727_vm3 }
 0x178   : > { %v736_v8 = vmul.f32 %v706_v7, %v9053_v22  ;;  %v723_v12 = vsub.f32 1.0, %v722_v6  ;;  %v718_v22 = vand.u32 2147483648, %v9100_v28 }
 0x17a   : > { %v743_v14 = vmul.f32 %v8348_v1, %v736_v8  ;;  %v724_v17 = vmul.f32 %v8373_v2, %v723_v12  ;;  %v719_v31 = vor.u32 1.1754944e-38, %v718_v22 }
 0x17c   : > { %v750_v23 = vadd.f32 %v8349_v11, %v743_v14  ;;  %v725_v26 = vadd.f32 %v8373_v2, %v724_v17  ;;  %v720_v28 = vsel %vm717_vm9, %v719_v31, %v715_v29  ;;  %v8802_v29 = vmov 1934713408  }
 0x17d   : > { %v737_v33 = vmul.f32 %v720_v28, %v9044_v15 }
 0x17e   : > { %v753_v54 = vpack.c.bf16 %v750_v23, %v749_v21  ;;  %v729_v30 = vsel %vm728_vm7, %v8373_v2, %v725_v26 }
 0x17f   : > { %v734_v55 = vsel %vm731_vm8, %v733_v27, %v729_v30  ;;  %v744_v35 = vmul.f32 %v8348_v1, %v737_v33  ;;  %v9198_v27 = vunpack.c.0.s8 %v1026_v13  ;;  %v1050_v30 = vunpack.c.l.s4 %v8802_v29 }
 0x180   : > { %931 = vmatmul.bf16.vlgmr.msra.gmra.mxu0 %v753_v54  ;;  %950 = vmatmul.bf16.vlgmr.msra.gmra.mxu1 %v753_v54  ;;  %v738_v32 = vmul.f32 %v734_v55, %v9058_v25 }
 0x181   : > { %969 = vmatmul.bf16.vlgmr.msra.gmra.mxu2 %v753_v54  ;;  %v751_v37 = vadd.f32 %v8349_v11, %v744_v35 }
 0x182   : > { %v745_v34 = vmul.f32 %v8348_v1, %v738_v32  ;;  %v791_v1 = vperm.slane %v787_v41, 2 }
 0x184   : > { %v752_v36 = vadd.f32 %v8349_v11, %v745_v34 }
 0x186   : > { %v754_v38 = vpack.c.bf16 %v752_v36, %v751_v37 }
 0x190   : > { %936 = vmatmul.bf16.gmra.mxu0 %v754_v38  ;;  %955 = vmatmul.bf16.gmra.mxu1 %v754_v38 }
 0x191   : > { %974 = vmatmul.bf16.gmra.mxu2 %v754_v38 }
 0x1fd   : > { %v932_v39 = vpop.f32.mrf.mxu0  ;;  %v951_v40 = vpop.f32.mrf.mxu1 }
 0x1fe   : > { %v9140_v25 = vadd.f32 %v951_v40, %v790_v43  ;;  %v9151_v50 = vadd.f32 %v932_v39, %v789_v46 }
 0x200   : > { %v1503_v21 = vrot.slane %v9140_v25, 4  ;;  %v1023_v23 = vrot.slane %v9151_v50, 4 }
 0x204   : > { %v970_v47 = vpop.f32.mrf.mxu2 }
 0x205   : > { %v934_v18 = vpop.f32.mrf.mxu0  ;;  %v953_v44 = vpop.f32.mrf.mxu1  ;;  %v9177_v3 = vadd.f32 %v970_v47, %v791_v1 }
 0x206   : > { %v9142_v15 = vadd.f32 %v953_v44, %v790_v43  ;;  %v9149_v48 = vadd.f32 %v934_v18, %v789_v46  ;;  %v9212_v44 = vunpack.c.0.s8 %v1050_v30 }
 0x207   : > { %v1983_v24 = vrot.slane %v9177_v3, 4 }
 0x208   : > { %v8238_v45 = vpack.i.bf16 %v9142_v15, %v9140_v25  ;;  %v8248_v53 = vpack.i.bf16 %v9149_v48, %v9151_v50  ;;  %v1559_v33 = vrot.slane %v9142_v15, 4  ;;  %v1079_v34 = vrot.slane %v9149_v48, 4 }
 0x20a   : > { %8239 = vrot.lane.b32.xlu1 %v8238_v45, %s8798_s13  ;;  %8234 = vrot.lane.b32.xlu0 %v8238_v45, %s8799_s30 }
 0x20b   : > { %8229 = vrot.lane.b32.xlu2 %v8238_v45, %s8800_s23 }
 0x20c   : > { %v972_v56 = vpop.f32.mrf.mxu2 }
 0x20d   : > { %v956_v49 = vpop.f32.mrf.mxu1  ;;  %v937_v51 = vpop.f32.mrf.mxu0  ;;  %v9175_v2 = vadd.f32 %v972_v56, %v791_v1 }
 0x20e   : > { %v9157_v58 = vadd.f32 %v956_v49, %v790_v43  ;;  %v9168_v62 = vadd.f32 %v937_v51, %v789_v46 }
 0x20f   : > { %v8288_v4 = vpack.i.bf16 %v9175_v2, %v9177_v3  ;;  %v2039_v35 = vrot.slane %v9175_v2, 4 }
 0x212   : > { %8249 = vrot.lane.b32.xlu0 %v8248_v53, %s8799_s30 }
 0x213   : > { %8244 = vrot.lane.b32.xlu2 %v8248_v53, %s8800_s23 }
 0x214   : > { %v975_v63 = vpop.f32.mrf.mxu2 }
 0x215   : > { %v958_v57 = vpop.f32.mrf.mxu1  ;;  %v939_v52 = vpop.f32.mrf.mxu0  ;;  %v9186_v7 = vadd.f32 %v975_v63, %v791_v1 }
 0x216   : > { %v9159_v59 = vadd.f32 %v958_v57, %v790_v43  ;;  %v9166_v61 = vadd.f32 %v939_v52, %v789_v46 }
 0x217   : > { %11014 = vst [vmem:[#allocation26_spill] sm:$0xff] %v9186_v7 }
 0x218   : > { %v8263_v60 = vpack.i.bf16 %v9159_v59, %v9157_v58  ;;  %v8278_v0 = vpack.i.bf16 %v9166_v61, %v9168_v62  ;;  %v1671_v39 = vrot.slane %v9159_v59, 4 }
 0x21a   : > { %8264 = vrot.lane.b32.xlu0 %v8263_v60, %s8799_s30  ;;  %8259 = vrot.lane.b32.xlu1 %v8263_v60, %s8800_s23 }
 0x21b   : > { %8254 = vrot.lane.b32.xlu2 %v8248_v53, %s8798_s13 }
 0x21c   : > { %v977_v5 = vpop.f32.mrf.mxu2 }
 0x21d   : > { %v9184_v6 = vadd.f32 %v977_v5, %v791_v1 }
 0x21f   : > { %11013 = vst [vmem:[#allocation25_spill] sm:$0xff] %v9184_v6  ;;  %v9190_v8 = vpack.i.bf16 %v9184_v6, %v9186_v7 }
 0x221   : > { %11015 = vst [vmem:[#allocation27_spill] sm:$0xff] %v9190_v8 }
 0x222   : > { %8279 = vrot.lane.b32.xlu0 %v8278_v0, %s8799_s30  ;;  %8274 = vrot.lane.b32.xlu1 %v8278_v0, %s8800_s23 }
 0x223   : > { %8269 = vrot.lane.b32.xlu2 %v8263_v60, %s8798_s13 }
 0x22a   : > { %8289 = vrot.lane.b32.xlu0 %v8288_v4, %s8800_s23  ;;  %8299 = vrot.lane.b32.xlu1 %v8288_v4, %s8798_s13 }
 0x22b   : > { %8284 = vrot.lane.b32.xlu2 %v8278_v0, %s8798_s13 }
 0x232   : > { %8304 = vrot.lane.b32.xlu1 %v9190_v8, %s8800_s23 }
 0x233   : > { %8294 = vrot.lane.b32.xlu2 %v8288_v4, %s8799_s30 }
 0x265   : > { %v8230_v9 = vpop.permute.xlu2 %8229 }
 0x266   : > { %v8232_v26 = vunpack.i.h.bf16 %v8230_v9  ;;  %v8231_v31 = vunpack.i.l.bf16 %v8230_v9 }
 0x268   : > { %v1571_v41 = vrot.slane %v8232_v26, 4  ;;  %v1515_v47 = vrot.slane %v8231_v31, 4 }
 0x26d   : > { %v8245_v11 = vpop.permute.xlu2 %8244 }
 0x26e   : > { %v8246_v12 = vunpack.i.l.bf16 %v8245_v11  ;;  %v8247_v14 = vunpack.i.h.bf16 %v8245_v11 }
 0x270   : > { %v1035_v22 = vrot.slane %v8246_v12, 4  ;;  %v1091_v55 = vrot.slane %v8247_v14, 4 }
 0x275   : > { %v8255_v17 = vpop.permute.xlu2 %8254 }
 0x276   : > { %v8257_v19 = vunpack.i.h.bf16 %v8255_v17  ;;  %v8256_v20 = vunpack.i.l.bf16 %v8255_v17 }
 0x278   : > { %v1033_v54 = vrot.slane %v8256_v20, 4  ;;  %v1089_v28 = vrot.slane %v8257_v19, 4  ;;  %v1036_v32 = vsel %vm1021_vm10, %v8256_v20, %v1035_v22  ;;  %v1092_v38 = vsel %vm1021_vm10, %v8257_v19, %v1091_v55 }
 0x279   : > { %v9210_v43 = vperm.slane %v1036_v32, %v9198_v27  ;;  %v9220_v57 = vperm.slane %v1092_v38, %v9198_v27 }
 0x27a   : > { %v1034_v37 = vsel %vm1021_vm10, %v1033_v54, %v8246_v12  ;;  %v1090_v49 = vsel %vm1021_vm10, %v1089_v28, %v8247_v14 }
 0x27b   : > { %v9217_v56 = vperm.slane %v1034_v37, %v9198_v27  ;;  %v1057_v5 = vrot.slane %v9210_v43, 4  ;;  %v9226_v9 = vperm.slane %v1090_v49, %v9198_v27  ;;  %v1113_v38 = vrot.slane %v9220_v57, 4 }
 0x27c   : > { %v8240_v18 = vpop.permute.xlu1 %8239  ;;  %v8235_v45 = vpop.permute.xlu0 %8234 }
 0x27d   : > { %v8242_v51 = vunpack.i.h.bf16 %v8240_v18  ;;  %v8241_v53 = vunpack.i.l.bf16 %v8240_v18  ;;  %v8237_v60 = vunpack.i.h.bf16 %v8235_v45  ;;  %v8236_v52 = vunpack.i.l.bf16 %v8235_v45  ;;  %v9235_v29 = vpop.permute.xlu2 %8269 }
 0x27f   : > { %v1569_v63 = vrot.slane %v8242_v51, 4  ;;  %v1572_v0 = vsel %vm1021_vm10, %v8242_v51, %v1571_v41  ;;  %v1513_v1 = vrot.slane %v8241_v53, 4  ;;  %v1516_v4 = vsel %vm1021_vm10, %v8241_v53, %v1515_v47 }
 0x280   : > { %v1580_v11 = vperm.slane %v1572_v0, %v9198_v27  ;;  %v1524_v12 = vperm.slane %v1516_v4, %v9198_v27  ;;  %v1557_v14 = vrot.slane %v8237_v60, 4  ;;  %v1560_v17 = vsel %vm1021_vm10, %v8237_v60, %v1559_v33 }
 0x281   : > { %v1570_v16 = vsel %vm1021_vm10, %v1569_v63, %v8232_v26  ;;  %v1514_v13 = vsel %vm1021_vm10, %v1513_v1, %v8231_v31  ;;  %v1568_v55 = vperm.slane %v1560_v17, %v9198_v27  ;;  %v1501_v28 = vrot.slane %v8236_v52, 4 }
 0x282   : > { %v1576_v19 = vperm.slane %v1570_v16, %v9198_v27  ;;  %v1593_v20 = vrot.slane %v1580_v11, 4  ;;  %v1520_v22 = vperm.slane %v1514_v13, %v9198_v27  ;;  %v1537_v54 = vrot.slane %v1524_v12, 4 }
 0x283   : > { %v1558_v30 = vsel %vm1021_vm10, %v1557_v14, %v9142_v15  ;;  %v1504_v26 = vsel %vm1021_vm10, %v8236_v52, %v1503_v21  ;;  %v1595_v18 = vrot.slane %v1568_v55, 4  ;;  %v1502_v45 = vsel %vm1021_vm10, %v1501_v28, %v9140_v25 }
 0x284   : > { %v1581_v31 = vrot.slane %v1576_v19, 4  ;;  %v1525_v32 = vrot.slane %v1520_v22, 4  ;;  %v1564_v33 = vperm.slane %v1558_v30, %v9198_v27  ;;  %v1512_v37 = vperm.slane %v1504_v26, %v9198_v27  ;;  %v8250_v30 = vpop.permute.xlu0 %8249 }
 0x285   : > { %v1594_v41 = vsel %vm1021_vm10, %v1593_v20, %v1568_v55  ;;  %v1508_v21 = vperm.slane %v1502_v45, %v9198_v27  ;;  %v1596_v53 = vsel %vm1021_vm10, %v1580_v11, %v1595_v18  ;;  %v8272_v63 = vunpack.i.h.bf16 %v9235_v29  ;;  %v9279_v45 = vpop.permute.xlu2 %8284 }
 0x286   : > { %v1582_v15 = vsel %vm1021_vm10, %v1581_v31, %v1564_v33  ;;  %v1583_v47 = vrot.slane %v1564_v33, 4  ;;  %v1600_v49 = vperm.slane %v1594_v41, %v9212_v44  ;;  %v1538_v60 = vsel %vm1021_vm10, %v1537_v54, %v1512_v37 }
 0x287   : > { %v9251_v51 = vperm.slane %v1582_v15, %v9212_v44  ;;  %v1539_v52 = vrot.slane %v1512_v37, 4  ;;  %v1604_v25 = vperm.slane %v1596_v53, %v9212_v44  ;;  %v1526_v1 = vsel %vm1021_vm10, %v1525_v32, %v1508_v21 }
 0x288   : > { %v1584_v0 = vsel %vm1021_vm10, %v1576_v19, %v1583_v47  ;;  %v8271_v4 = vunpack.i.l.bf16 %v9235_v29  ;;  %v1527_v13 = vrot.slane %v1508_v21, 4  ;;  %v9262_v14 = vperm.slane %v1526_v1, %v9212_v44 }
 0x289   : > { %v1592_v16 = vperm.slane %v1584_v0, %v9212_v44  ;;  %v1609_v11 = vrot.slane %v1600_v49, 4  ;;  %v1611_v17 = vrot.slane %v1604_v25, 4  ;;  %v1540_v20 = vsel %vm1021_vm10, %v1524_v12, %v1539_v52 }
 0x28a   : > { %v1544_v54 = vperm.slane %v1538_v60, %v9212_v44  ;;  %v1605_v19 = vrot.slane %v9251_v51, 4  ;;  %v1528_v28 = vsel %vm1021_vm10, %v1520_v22, %v1527_v13  ;;  %v1548_v26 = vperm.slane %v1540_v20, %v9212_v44 }
 0x28b   : > { %v9267_v55 = vrot.slane %v1592_v16, 4  ;;  %v1045_v31 = vrot.slane %v9217_v56, 4  ;;  %v1612_v32 = vsel %vm1021_vm10, 0.0, %v1611_v17  ;;  %v1536_v33 = vperm.slane %v1528_v28, %v9212_v44 }
 0x28c   : > { %v1549_v37 = vrot.slane %v9262_v14, 4  ;;  %v1795_v41 = vrot.slane %v1612_v32, 4  ;;  %v1555_v18 = vrot.slane %v1548_v26, 4  ;;  %v8252_v15 = vunpack.i.h.bf16 %v8250_v30 }
 0x28d   : > { %v9277_v12 = vsel %vm1021_vm10, 0.0, %v9267_v55  ;;  %v1101_v22 = vrot.slane %v9226_v9, 4  ;;  %v9284_v47 = vrot.slane %v8272_v63, 4  ;;  %v9286_v21 = vrot.slane %v1536_v33, 4 }
 0x28e   : > { %v1553_v53 = vrot.slane %v1544_v54, 4  ;;  %v9290_v60 = vrot.slane %v8271_v4, 4  ;;  %v9293_v52 = vsel %vm1021_vm10, 0.0, %v1605_v19  ;;  %v1610_v0 = vsel %vm1021_vm10, 0.0, %v1609_v11 }
 0x28f   : > { %v9297_v25 = vsel %vm1021_vm10, %v1611_v17, %v1600_v49  ;;  %v9301_v16 = vsel %vm1021_vm10, 0.0, %v1549_v37  ;;  %v1556_v13 = vsel %vm1021_vm10, 0.0, %v1555_v18  ;;  %v10970_v20 = vunpack.i.h.bf16 %v9279_v45  ;;  %v8260_v37 = vpop.permute.xlu1 %8259 }
 0x290   : > { %v9306_v28 = vsel %vm1021_vm10, %v1795_v41, %v1610_v0  ;;  %v1077_v26 = vrot.slane %v8252_v15, 4  ;;  %v1080_v11 = vsel %vm1021_vm10, %v8252_v15, %v1079_v34  ;;  %v8251_v19 = vunpack.i.l.bf16 %v8250_v30 }
 0x291   : > { %v9313_v49 = vsel %vm1021_vm10, 0.0, %v9286_v21  ;;  %v1554_v17 = vsel %vm1021_vm10, 0.0, %v1553_v53  ;;  %v9317_v32 = vsel %vm1021_vm10, %v1555_v18, %v1544_v54  ;;  %v1088_v33 = vperm.slane %v1080_v11, %v9198_v27 }
 0x292   : > { %v1741_v41 = vrot.slane %v1556_v13, 4  ;;  %v1078_v0 = vsel %vm1021_vm10, %v1077_v26, %v9149_v48  ;;  %v1020_v1 = vrot.slane %v8251_v19, 4  ;;  %v1024_v34 = vsel %vm1021_vm10, %v8251_v19, %v1023_v23 }
 0x293   : > { %v1084_v30 = vperm.slane %v1078_v0, %v9198_v27  ;;  %v1114_v15 = vsel %vm1021_vm10, %v1113_v38, %v1088_v33  ;;  %v1115_v54 = vrot.slane %v1088_v33, 4  ;;  %v1032_v18 = vperm.slane %v1024_v34, %v9198_v27 }
 0x294   : > { %v9332_v53 = vrot.slane %v10970_v20, 4  ;;  %v1120_v48 = vperm.slane %v1114_v15, %v9212_v44  ;;  %v1022_v13 = vsel %vm1021_vm10, %v1020_v1, %v9151_v50  ;;  %v8262_v26 = vunpack.i.h.bf16 %v8260_v37 }
 0x295   : > { %v1102_v23 = vsel %vm1021_vm10, %v1101_v22, %v1084_v30  ;;  %v1103_v11 = vrot.slane %v1084_v30, 4  ;;  %v1116_v19 = vsel %vm1021_vm10, %v9220_v57, %v1115_v54  ;;  %v1028_v38 = vperm.slane %v1022_v13, %v9198_v27 }
 0x296   : > { %v10969_v33 = vunpack.i.l.bf16 %v9279_v45  ;;  %v9343_v0 = vperm.slane %v1102_v23, %v9212_v44  ;;  %v1124_v34 = vperm.slane %v1116_v19, %v9212_v44  ;;  %v1058_v50 = vsel %vm1021_vm10, %v1057_v5, %v1032_v18 }
 0x297   : > { %v1104_v22 = vsel %vm1021_vm10, %v9226_v9, %v1103_v11  ;;  %v1046_v1 = vsel %vm1021_vm10, %v1045_v31, %v1028_v38  ;;  %v1047_v30 = vrot.slane %v1028_v38, 4  ;;  %v1059_v57 = vrot.slane %v1032_v18, 4 }
 0x298   : > { %v1112_v15 = vperm.slane %v1104_v22, %v9212_v44  ;;  %v1129_v54 = vrot.slane %v1120_v48, 4  ;;  %v1131_v13 = vrot.slane %v1124_v34, 4  ;;  %v1683_v40 = vrot.slane %v8262_v26, 4 }
 0x299   : > { %v1125_v23 = vrot.slane %v9343_v0, 4  ;;  %v1048_v19 = vsel %vm1021_vm10, %v9217_v56, %v1047_v30  ;;  %v9357_v46 = vperm.slane %v1046_v1, %v9212_v44  ;;  %v1060_v5 = vsel %vm1021_vm10, %v9210_v43, %v1059_v57  ;;  %v8265_v1 = vpop.permute.xlu0 %8264 }
 0x29a   : > { %v9361_v9 = vrot.slane %v1112_v15, 4  ;;  %v1132_v31 = vsel %vm1021_vm10, 0.0, %v1131_v13  ;;  %v1310_v18 = vsel %vm1021_vm10, %v1131_v13, %v1120_v48  ;;  %v1064_v11 = vperm.slane %v1058_v50, %v9212_v44 }
 0x29b   : > { %v9367_v38 = vperm.slane %v1310_v18, %v9198_v27  ;;  %v1315_v34 = vrot.slane %v1132_v31, 4  ;;  %v1056_v56 = vperm.slane %v1048_v19, %v9212_v44  ;;  %v1068_v22 = vperm.slane %v1060_v5, %v9212_v44 }
 0x29c   : > { %v9373_v43 = vsel %vm1021_vm10, %v1741_v41, %v1554_v17  ;;  %v9377_v30 = vsel %vm1021_vm10, 0.0, %v9361_v9  ;;  %v8261_v48 = vunpack.i.l.bf16 %v8260_v37  ;;  %v9381_v50 = vrot.slane %v10969_v33, 4 }
 0x29d   : > { %v1130_v57 = vsel %vm1021_vm10, 0.0, %v1129_v54  ;;  %v9384_v15 = vrot.slane %v1056_v56, 4  ;;  %v1682_v13 = vsel %vm1021_vm10, %v9284_v47, %v8262_v26  ;;  %v9389_v19 = vsel %vm1021_vm10, 0.0, %v1125_v23  ;;  %v8295_v56 = vpop.permute.xlu2 %8294 }
 0x29e   : > { %v1069_v17 = vrot.slane %v9357_v46, 4  ;;  %v1075_v41 = vrot.slane %v1068_v22, 4  ;;  %v1684_v37 = vsel %vm1021_vm10, %v8272_v63, %v1683_v40  ;;  %v1316_v31 = vsel %vm1021_vm10, %v1315_v34, %v1130_v57 }
 0x29f   : > { %v1073_v18 = vrot.slane %v1064_v11, 4  ;;  %v1626_v23 = vsel %vm1021_vm10, %v9290_v60, %v8261_v48  ;;  %v1627_v22 = vrot.slane %v8261_v48, 4  ;;  %v9404_v40 = vsel %vm1021_vm10, 0.0, %v9384_v15 }
 0x2a0   : > { %v1076_v47 = vsel %vm1021_vm10, 0.0, %v1075_v41  ;;  %v1256_v26 = vsel %vm1021_vm10, %v1075_v41, %v1064_v11  ;;  %v1688_v34 = vperm.slane %v1682_v13, %v9198_v27  ;;  %v1692_v57 = vperm.slane %v1684_v37, %v9198_v27 }
 0x2a1   : > { %v1261_v63 = vrot.slane %v1076_v47, 4  ;;  %v9409_v54 = vperm.slane %v1256_v26, %v9198_v27  ;;  %v1628_v11 = vsel %vm1021_vm10, %v8271_v4, %v1627_v22  ;;  %v8297_v41 = vunpack.i.h.bf16 %v8295_v56 }
 0x2a2   : > { %v8296_v60 = vunpack.i.l.bf16 %v8295_v56  ;;  %v9415_v48 = vperm.slane %v1316_v31, %v9198_v27  ;;  %v1074_v5 = vsel %vm1021_vm10, 0.0, %v1073_v18  ;;  %v1632_v47 = vperm.slane %v1626_v23, %v9198_v27 }
 0x2a3   : > { %v8267_v33 = vunpack.i.h.bf16 %v8265_v1  ;;  %v9420_v13 = vsel %vm1021_vm10, 0.0, %v1069_v17  ;;  %v1262_v26 = vsel %vm1021_vm10, %v1261_v63, %v1074_v5  ;;  %v1636_v29 = vperm.slane %v1628_v11, %v9198_v27 }
 0x2a4   : > { %v1693_v4 = vrot.slane %v1688_v34, 4  ;;  %v1705_v22 = vrot.slane %v1692_v57, 4  ;;  %v2037_v56 = vrot.slane %v8297_v41, 4  ;;  %v2040_v31 = vsel %vm1021_vm10, %v8297_v41, %v2039_v35 }
 0x2a5   : > { %v1981_v23 = vrot.slane %v8296_v60, 4  ;;  %v1669_v20 = vrot.slane %v8267_v33, 4  ;;  %v1672_v17 = vsel %vm1021_vm10, %v8267_v33, %v1671_v39  ;;  %v9433_v37 = vperm.slane %v1262_v26, %v9198_v27 }
 0x2a6   : > { %v1637_v5 = vrot.slane %v1632_v47, 4  ;;  %v1984_v63 = vsel %vm1021_vm10, %v8296_v60, %v1983_v24  ;;  %v1680_v11 = vperm.slane %v1672_v17, %v9198_v27  ;;  %v1649_v36 = vrot.slane %v1636_v29, 4 }
 0x2a7   : > { %v9440_v35 = vperm.slane %v2040_v31, %v9198_v27  ;;  %v1670_v41 = vsel %vm1021_vm10, %v1669_v20, %v9159_v59  ;;  %v8266_v18 = vunpack.i.l.bf16 %v8265_v1  ;;  %v2038_v39 = vsel %vm1021_vm10, %v2037_v56, %v9175_v2 }
 0x2a8   : > { %v1676_v33 = vperm.slane %v1670_v41, %v9198_v27  ;;  %v1706_v26 = vsel %vm1021_vm10, %v1705_v22, %v1680_v11  ;;  %v1707_v42 = vrot.slane %v1680_v11, 4  ;;  %v1982_v24 = vsel %vm1021_vm10, %v1981_v23, %v9177_v3 }
 0x2a9   : > { %v9451_v60 = vperm.slane %v1984_v63, %v9198_v27  ;;  %v1613_v31 = vrot.slane %v8266_v18, 4  ;;  %v11016_v17 = vrot.slane %v9157_v58, 4  ;;  %v9460_v22 = vperm.slane %v2038_v39, %v9198_v27 }
 0x2aa   : > { %v1694_v20 = vsel %vm1021_vm10, %v1693_v4, %v1676_v33  ;;  %v1695_v1 = vrot.slane %v1676_v33, 4  ;;  %v1708_v2 = vsel %vm1021_vm10, %v1692_v57, %v1707_v42  ;;  %v1712_v3 = vperm.slane %v1706_v26, %v9212_v44 }
 0x2ab   : > { %v1616_v59 = vsel %vm1021_vm10, %v8266_v18, %v11016_v17  ;;  %v1716_v23 = vperm.slane %v1708_v2, %v9212_v44  ;;  %v1614_v63 = vsel %vm1021_vm10, %v1613_v31, %v9157_v58  ;;  %v9470_v42 = vperm.slane %v1982_v24, %v9198_v27  ;;  %v8275_v2 = vpop.permute.xlu1 %8274 }
 0x2ac   : > { %v1624_v56 = vperm.slane %v1616_v59, %v9198_v27  ;;  %v1696_v18 = vsel %vm1021_vm10, %v1688_v34, %v1695_v1  ;;  %v1620_v4 = vperm.slane %v1614_v63, %v9198_v27  ;;  %v9473_v57 = vperm.slane %v1694_v20, %v9212_v44 }
 0x2ad   : > { %v1704_v39 = vperm.slane %v1696_v18, %v9212_v44  ;;  %v1723_v33 = vrot.slane %v1716_v23, 4  ;;  %v1721_v24 = vrot.slane %v1712_v3, 4 }
 0x2ae   : > { %v1651_v41 = vrot.slane %v1624_v56, 4  ;;  %v1638_v26 = vsel %vm1021_vm10, %v1637_v5, %v1620_v4  ;;  %v1639_v17 = vrot.slane %v1620_v4, 4  ;;  %v1650_v58 = vsel %vm1021_vm10, %v1649_v36, %v1624_v56  ;;  %v8280_v36 = vpop.permute.xlu0 %8279 }
 0x2af   : > { %v9481_v1 = vrot.slane %v1704_v39, 4  ;;  %v9484_v20 = vsel %vm1021_vm10, 0.0, %v1723_v33  ;;  %v1898_v23 = vsel %vm1021_vm10, %v1723_v33, %v1712_v3  ;;  %v9489_v63 = vperm.slane %v1638_v26, %v9212_v44 }
 0x2b0   : > { %v1652_v31 = vsel %vm1021_vm10, %v1636_v29, %v1651_v41  ;;  %11018 = vst [vmem:[#allocation29_spill] sm:$0xff] %v9484_v20  ;;  %v1640_v5 = vsel %vm1021_vm10, %v1632_v47, %v1639_v17  ;;  %v1656_v18 = vperm.slane %v1650_v58, %v9212_v44  ;;  %v8277_v39 = vunpack.i.h.bf16 %v8275_v2 }
 0x2b1   : > { %11017 = vst [vmem:[#allocation28_spill] sm:$0xff] %v9481_v1  ;;  %v1660_v4 = vperm.slane %v1652_v31, %v9212_v44  ;;  %v9497_v41 = vsel %vm1021_vm10, 0.0, %v9481_v1  ;;  %v1648_v3 = vperm.slane %v1640_v5, %v9212_v44  ;;  %v8276_v47 = vunpack.i.l.bf16 %v8275_v2 }
 0x2b2   : > { %11019 = vst [vmem:[#allocation30_spill] sm:$0xff] %v9497_v41  ;;  %v9501_v33 = vsel %vm1021_vm10, 0.0, %v1721_v24  ;;  %v9504_v26 = vperm.slane %v1898_v23, %v9198_v27  ;;  %v8282_v56 = vunpack.i.h.bf16 %v8280_v36  ;;  %v1202_v31 = vsel %vm1021_vm10, %v9332_v53, %v8277_v39 }
 0x2b3   : > { %11020 = vst [vmem:[#allocation31_spill] sm:$0xff] %v9501_v33  ;;  %v1203_v59 = vrot.slane %v8277_v39, 4  ;;  %v8281_v11 = vunpack.i.l.bf16 %v8280_v36  ;;  %v1665_v29 = vrot.slane %v1656_v18, 4  ;;  %v1667_v2 = vrot.slane %v1660_v4, 4 }
 0x2b4   : > { %11021 = vst [vmem:[#allocation32_spill] sm:$0xff] %v9504_v26  ;;  %v1208_v24 = vperm.slane %v1202_v31, %v9198_v27  ;;  %v9512_v34 = vrot.slane %v1648_v3, 4  ;;  %v11022_v23 = vunpack.i.h.bf16 %v9279_v45  ;;  %v1146_v58 = vsel %vm1021_vm10, %v9381_v50, %v8276_v47 }
 0x2b5   : > { %v1147_v10 = vrot.slane %v8276_v47, 4  ;;  %v1152_v36 = vperm.slane %v1146_v58, %v9198_v27  ;;  %v1189_v5 = vrot.slane %v8282_v56, 4  ;;  %v11023_v4 = vunpack.i.l.bf16 %v9279_v45 }
 0x2b6   : > { %v1204_v17 = vsel %vm1021_vm10, %v11022_v23, %v1203_v59  ;;  %v1213_v39 = vrot.slane %v1208_v24, 4  ;;  %v11024_v3 = vrot.slane %v9166_v61, 4  ;;  %v1133_v7 = vrot.slane %v8281_v11, 4 }
 0x2b7   : > { %v1212_v53 = vperm.slane %v1204_v17, %v9198_v27  ;;  %v1148_v31 = vsel %vm1021_vm10, %v11023_v4, %v1147_v10  ;;  %v11025_v59 = vrot.slane %v9168_v62, 4  ;;  %v1157_v23 = vrot.slane %v1152_v36, 4 }
 0x2b8   : > { %v1192_v6 = vsel %vm1021_vm10, %v8282_v56, %v11024_v3  ;;  %v1156_v17 = vperm.slane %v1148_v31, %v9198_v27  ;;  %v1190_v58 = vsel %vm1021_vm10, %v1189_v5, %v9166_v61  ;;  %v9534_v45 = vsel %vm1021_vm10, 0.0, %v1665_v29 }
 0x2b9   : > { %v1136_v50 = vsel %vm1021_vm10, %v8281_v11, %v11025_v59  ;;  %v1225_v47 = vrot.slane %v1212_v53, 4  ;;  %v1196_v10 = vperm.slane %v1190_v58, %v9198_v27  ;;  %v1200_v4 = vperm.slane %v1192_v6, %v9198_v27 }
 0x2ba   : > { %v1134_v56 = vsel %vm1021_vm10, %v1133_v7, %v9168_v62  ;;  %v9541_v3 = vsel %vm1021_vm10, 0.0, %v1667_v2  ;;  %v1169_v11 = vrot.slane %v1156_v17, 4  ;;  %v1144_v59 = vperm.slane %v1136_v50, %v9198_v27 }
 0x2bb   : > { %v1140_v31 = vperm.slane %v1134_v56, %v9198_v27  ;;  %v1214_v61 = vsel %vm1021_vm10, %v1213_v39, %v1196_v10  ;;  %v1215_v5 = vrot.slane %v1196_v10, 4  ;;  %v1226_v29 = vsel %vm1021_vm10, %v1225_v47, %v1200_v4  ;;  %v9554_v39 = vpop.permute.xlu1 %8299 }
 0x2bc   : > { %v1227_v8 = vrot.slane %v1200_v4, 4  ;;  %v1844_v58 = vsel %vm1021_vm10, %v1667_v2, %v1656_v18  ;;  %v1232_v6 = vperm.slane %v1226_v29, %v9212_v44  ;;  %v1220_v20 = vperm.slane %v1214_v61, %v9212_v44 }
 0x2bd   : > { %v1158_v62 = vsel %vm1021_vm10, %v1157_v23, %v1140_v31  ;;  %v1159_v7 = vrot.slane %v1140_v31, 4  ;;  %v1216_v26 = vsel %vm1021_vm10, %v1208_v24, %v1215_v5  ;;  %v1170_v50 = vsel %vm1021_vm10, %v1169_v11, %v1144_v59 }
 0x2be   : > { %v1228_v56 = vsel %vm1021_vm10, %v1212_v53, %v1227_v8  ;;  %v9558_v47 = vsel %vm1021_vm10, 0.0, %v9512_v34  ;;  %v1224_v18 = vperm.slane %v1216_v26, %v9212_v44  ;;  %v1241_v23 = vrot.slane %v1232_v6, 4 }
 0x2bf   : > { %v1236_v2 = vperm.slane %v1228_v56, %v9212_v44  ;;  %v9563_v10 = vperm.slane %v1844_v58, %v9198_v27  ;;  %v1160_v24 = vsel %vm1021_vm10, %v1152_v36, %v1159_v7  ;;  %v1164_v8 = vperm.slane %v1158_v62, %v9212_v44 }
 0x2c0   : > { %v1171_v53 = vrot.slane %v1144_v59, 4  ;;  %v1239_v4 = vrot.slane %v1224_v18, 4  ;;  %v1176_v31 = vperm.slane %v1170_v50, %v9212_v44  ;;  %v8302_v61 = vunpack.i.h.bf16 %v9554_v39 }
 0x2c1   : > { %11026 = vst [vmem:[#allocation33_spill] sm:$0xff] %v9563_v10  ;;  %v1243_v11 = vrot.slane %v1236_v2, 4  ;;  %v1237_v5 = vrot.slane %v1220_v20, 4  ;;  %v1168_v26 = vperm.slane %v1160_v24, %v9212_v44  ;;  %v8301_v56 = vunpack.i.l.bf16 %v9554_v39  ;;  %v8290_v39 = vpop.permute.xlu0 %8289 }
 0x2c2   : > { %v1172_v29 = vsel %vm1021_vm10, %v1156_v17, %v1171_v53  ;;  %v1240_v58 = vsel %vm1021_vm10, 0.0, %v1239_v4  ;;  %v1242_v36 = vsel %vm1021_vm10, 0.0, %v1241_v23  ;;  %v1181_v2 = vrot.slane %v1164_v8, 4 }
 0x2c3   : > { %v1244_v62 = vsel %vm1021_vm10, 0.0, %v1243_v11  ;;  %v1418_v59 = vsel %vm1021_vm10, %v1243_v11, %v1232_v6  ;;  %v1412_v33 = vrot.slane %v1240_v58, 4  ;;  %v1180_v24 = vperm.slane %v1172_v29, %v9212_v44 }
 0x2c4   : > { %v1423_v18 = vrot.slane %v1244_v62, 4  ;;  %v1183_v17 = vrot.slane %v1168_v26, 4  ;;  %v1185_v53 = vrot.slane %v1176_v31, 4  ;;  %v1407_v41 = vsel %vm1021_vm10, %v1239_v4, %v1220_v20 }
 0x2c5   : > { %v9581_v23 = vperm.slane %v1418_v59, %v9198_v27  ;;  %v2049_v6 = vrot.slane %v8302_v61, 4  ;;  %v1238_v11 = vsel %vm1021_vm10, 0.0, %v1237_v5  ;;  %v1187_v7 = vrot.slane %v1180_v24, 4 }
 0x2c6   : > { %v1424_v1 = vsel %vm1021_vm10, %v1423_v18, %v1242_v36  ;;  %v1353_v62 = vsel %vm1021_vm10, %v1183_v17, %v1164_v8  ;;  %v1993_v50 = vrot.slane %v8301_v56, 4  ;;  %v1182_v26 = vsel %vm1021_vm10, 0.0, %v1181_v2 }
 0x2c7   : > { %11027 = vst [vmem:[#allocation34_spill] sm:$0xff] %v9581_v23  ;;  %v9587_v58 = vperm.slane %v1424_v1, %v9198_v27  ;;  %v8292_v29 = vunpack.i.h.bf16 %v8290_v39  ;;  %v8291_v10 = vunpack.i.l.bf16 %v8290_v39  ;;  %v9591_v20 = vperm.slane %v1407_v41, %v9198_v27 }
 0x2c8   : > { %v9594_v4 = vsel %vm1021_vm10, %v1412_v33, %v1238_v11  ;;  %v1184_v36 = vsel %vm1021_vm10, 0.0, %v1183_v17  ;;  %v1186_v5 = vsel %vm1021_vm10, 0.0, %v1185_v53  ;;  %v1188_v59 = vsel %vm1021_vm10, 0.0, %v1187_v7 }
 0x2c9   : > { %11028 = vst [vmem:[#allocation35_spill] sm:$0xff] %v9591_v20  ;;  %v9601_v1 = vperm.slane %v1353_v62, %v9198_v27  ;;  %v2050_v18 = vsel %vm1021_vm10, %v2049_v6, %v8292_v29  ;;  %v2051_v2 = vrot.slane %v8292_v29, 4  ;;  %v1994_v24 = vsel %vm1021_vm10, %v1993_v50, %v8291_v10 }
 0x2ca   : > { %v2056_v41 = vperm.slane %v2050_v18, %v9198_v27  ;;  %v1995_v33 = vrot.slane %v8291_v10, 4  ;;  %v1441_v39 = vrot.slane %v9587_v58, 4  ;;  %v1358_v17 = vrot.slane %v1184_v36, 4 }
 0x2cb   : > { %v1364_v53 = vsel %vm1021_vm10, %v1187_v7, %v1176_v31  ;;  %v2000_v11 = vperm.slane %v1994_v24, %v9198_v27  ;;  %v1369_v8 = vrot.slane %v1188_v59, 4  ;;  %v2052_v23 = vsel %vm1021_vm10, %v8302_v61, %v2051_v2 }
 0x2cc   : > { %v2061_v62 = vrot.slane %v2056_v41, 4  ;;  %v11029_v20 = vrot.slane %v9460_v22, 4  ;;  %v2060_v29 = vperm.slane %v2052_v23, %v9198_v27  ;;  %v1996_v10 = vsel %vm1021_vm10, %v8301_v56, %v1995_v33 }
 0x2cd   : > { %v2005_v18 = vrot.slane %v2000_v11, 4  ;;  %v9617_v36 = vperm.slane %v1364_v53, %v9198_v27  ;;  %v2004_v61 = vperm.slane %v1996_v10, %v9198_v27  ;;  %v11030_v7 = vrot.slane %v9470_v42, 4 }
 0x2ce   : > { %v2064_v6 = vsel %vm1021_vm10, %v2056_v41, %v11029_v20  ;;  %v2062_v31 = vsel %vm1021_vm10, %v2061_v62, %v9460_v22  ;;  %v2073_v23 = vrot.slane %v2060_v29, 4  ;;  %v11031_v2 = vrot.slane %v9440_v35, 4 }
 0x2cf   : > { %v2072_v50 = vperm.slane %v2064_v6, %v9212_v44  ;;  %v2008_v59 = vsel %vm1021_vm10, %v2000_v11, %v11030_v7  ;;  %v2068_v20 = vperm.slane %v2062_v31, %v9212_v44  ;;  %v2006_v33 = vsel %vm1021_vm10, %v2005_v18, %v9470_v42 }
 0x2d0   : > { %v2076_v56 = vsel %vm1021_vm10, %v2060_v29, %v11031_v2  ;;  %v2017_v22 = vrot.slane %v2004_v61, 4  ;;  %v1725_v53 = vsel %vm1021_vm10, %v9286_v21, %v9262_v14  ;;  %v9636_v11 = vsel %vm1021_vm10, %v1358_v17, %v1182_v26 }
 0x2d1   : > { %v2087_v41 = vrot.slane %v2072_v50, 4  ;;  %v2084_v24 = vperm.slane %v2076_v56, %v9212_v44  ;;  %v1370_v62 = vsel %vm1021_vm10, %v1369_v8, %v1186_v5  ;;  %v2074_v6 = vsel %vm1021_vm10, %v2073_v23, %v9440_v35 }
 0x2d2   : > { %v2085_v29 = vrot.slane %v2068_v20, 4  ;;  %v2080_v50 = vperm.slane %v2074_v6, %v9212_v44  ;;  %v2016_v42 = vperm.slane %v2008_v59, %v9212_v44  ;;  %v1389_v18 = vrot.slane %v9617_v36, 4 }
 0x2d3   : > { %v2088_v10 = vsel %vm1021_vm10, 0.0, %v2087_v41  ;;  %v2091_v31 = vrot.slane %v2084_v24, 4  ;;  %v2012_v14 = vperm.slane %v2006_v33, %v9212_v44  ;;  %v2018_v21 = vsel %vm1021_vm10, %v2017_v22, %v9451_v60 }
 0x2d4   : > { %v11032_v26 = vrot.slane %v9451_v60, 4  ;;  %v9652_v35 = vperm.slane %v1370_v62, %v9198_v27  ;;  %v2089_v8 = vrot.slane %v2080_v50, 4  ;;  %v2259_v7 = vsel %vm1021_vm10, %v2087_v41, %v2068_v20 }
 0x2d5   : > { %v2092_v17 = vsel %vm1021_vm10, 0.0, %v2091_v31  ;;  %v2086_v59 = vsel %vm1021_vm10, 0.0, %v2085_v29  ;;  %v2264_v23 = vrot.slane %v2088_v10, 4  ;;  %v2024_v2 = vperm.slane %v2018_v21, %v9212_v44 }
 0x2d6   : > { %v2020_v5 = vsel %vm1021_vm10, %v2004_v61, %v11032_v26  ;;  %v2270_v24 = vsel %vm1021_vm10, %v2091_v31, %v2080_v50  ;;  %v2275_v60 = vrot.slane %v2092_v17, 4  ;;  %v2031_v33 = vrot.slane %v2016_v42, 4 }
 0x2d7   : > { %v2028_v56 = vperm.slane %v2020_v5, %v9212_v44  ;;  %v11033_v61 = vrot.slane %v9313_v49, 4  ;;  %v2029_v62 = vrot.slane %v2012_v14, 4  ;;  %v2033_v6 = vrot.slane %v2024_v2, 4 }
 0x2d8   : > { %v1387_v41 = vrot.slane %v9652_v35, 4  ;;  %v2090_v29 = vsel %vm1021_vm10, 0.0, %v2089_v8  ;;  %v2032_v10 = vsel %vm1021_vm10, 0.0, %v2031_v33  ;;  %v9671_v50 = vperm.slane %v1725_v53, %v9198_v27 }
 0x2d9   : > { %v1731_v22 = vsel %vm1021_vm10, %v11033_v61, %v9301_v16  ;;  %v2035_v26 = vrot.slane %v2028_v56, 4  ;;  %v9674_v31 = vperm.slane %v2259_v7, %v9198_v27  ;;  %v9677_v16 = vsel %vm1021_vm10, %v2264_v23, %v2086_v59 }
 0x2da   : > { %v9665_v20 = vperm.slane %v1731_v22, %v9198_v27  ;;  %v9680_v49 = vperm.slane %v2270_v24, %v9198_v27  ;;  %v2205_v42 = vsel %vm1021_vm10, %v2031_v33, %v2012_v14  ;;  %v2210_v5 = vrot.slane %v2032_v10, 4 }
 0x2db   : > { %v2036_v21 = vsel %vm1021_vm10, 0.0, %v2035_v26  ;;  %v9686_v8 = vperm.slane %v9373_v43, %v9198_v27  ;;  %v9690_v17 = vsel %vm1021_vm10, %v2275_v60, %v2090_v29  ;;  %v2030_v7 = vsel %vm1021_vm10, 0.0, %v2029_v62 }
 0x2dc   : > { %v1747_v53 = vrot.slane %v9665_v20, 4  ;;  %v2034_v59 = vsel %vm1021_vm10, 0.0, %v2033_v6  ;;  %v9696_v23 = vperm.slane %v9317_v32, %v9198_v27  ;;  %v9699_v14 = vperm.slane %v2205_v42, %v9198_v27 }
 0x2dd   : > { %v2216_v56 = vsel %vm1021_vm10, %v2035_v26, %v2024_v2  ;;  %v1759_v24 = vrot.slane %v9686_v8, 4  ;;  %v2221_v60 = vrot.slane %v2036_v21, 4  ;;  %v1779_v61 = vsel %vm1021_vm10, %v9267_v55, %v9251_v51 }
 0x2de   : > { %v1748_v43 = vsel %vm1021_vm10, %v1747_v53, %v9671_v50  ;;  %v11034_v32 = vrot.slane %v9277_v12, 4  ;;  %v9714_v62 = vsel %vm1021_vm10, %v2210_v5, %v2030_v7  ;;  %v9723_v26 = vperm.slane %v9306_v28, %v9198_v27 }
 0x2df   : > { %v1754_v33 = vperm.slane %v1748_v43, %v9212_v44  ;;  %v1760_v2 = vsel %vm1021_vm10, %v1759_v24, %v9696_v23  ;;  %v9726_v51 = vperm.slane %v2216_v56, %v9198_v27  ;;  %v1749_v55 = vrot.slane %v9671_v50, 4 }
 0x2e0   : > { %v1785_v22 = vsel %vm1021_vm10, %v11034_v32, %v9293_v52  ;;  %v1766_v12 = vperm.slane %v1760_v2, %v9212_v44  ;;  %v1783_v29 = vperm.slane %v1779_v61, %v9198_v27  ;;  %v9733_v10 = vperm.slane %v9297_v25, %v9198_v27 }
 0x2e1   : > { %v9719_v6 = vperm.slane %v1785_v22, %v9198_v27  ;;  %v1773_v52 = vrot.slane %v1754_v33, 4  ;;  %v1813_v21 = vrot.slane %v9723_v26, 4  ;;  %v1761_v28 = vrot.slane %v9696_v23, 4 }
 0x2e2   : > { %v1771_v5 = vrot.slane %v1766_v12, 4  ;;  %v11035_v50 = vrot.slane %v9404_v40, 4  ;;  %v9744_v56 = vsel %vm1021_vm10, %v2221_v60, %v2034_v59  ;;  %v1245_v40 = vsel %vm1021_vm10, %v9384_v15, %v9357_v46 }
 0x2e3   : > { %v1801_v42 = vrot.slane %v9719_v6, 4  ;;  %v1774_v53 = vsel %vm1021_vm10, %v1766_v12, %v1773_v52  ;;  %v1814_v43 = vsel %vm1021_vm10, %v1813_v21, %v9733_v10  ;;  %v1279_v52 = vrot.slane %v9433_v37, 4 }
 0x2e4   : > { %v1251_v7 = vsel %vm1021_vm10, %v11035_v50, %v9420_v13  ;;  %v2439_v24 = vpack.c.bf16 %v1774_v53, %v1774_v53  ;;  %v1772_v61 = vsel %vm1021_vm10, %v1771_v5, %v1754_v33  ;;  %v1820_v32 = vperm.slane %v1814_v43, %v9212_v44 }
 0x2e5   : > { %v1802_v25 = vsel %vm1021_vm10, %v1801_v42, %v1783_v29  ;;  %v1803_v13 = vrot.slane %v1783_v29, 4  ;;  %v2437_v22 = vpack.c.bf16 %v1772_v61, %v1772_v61  ;;  %v9756_v60 = vperm.slane %v1251_v7, %v9198_v27 }
 0x2e6   : > { %v1808_v23 = vperm.slane %v1802_v25, %v9212_v44  ;;  %v2491_v59 = vunpack.c.l.b16 %v2439_v24  ;;  %v1825_v2 = vrot.slane %v1820_v32, 4  ;;  %v1299_v33 = vsel %vm1021_vm10, %v9361_v9, %v9343_v0 }
 0x2e7   : > { %v2460_v42 = vunpack.c.l.b16 %v2437_v22  ;;  %v9763_v21 = vperm.slane %v1245_v40, %v9198_v27  ;;  %v1267_v46 = vrot.slane %v9756_v60, 4  ;;  %v9767_v15 = vperm.slane %v1299_v33, %v9198_v27 }
 0x2e8   : > { %v1827_v12 = vrot.slane %v1808_v23, 4  ;;  %v1826_v29 = vsel %vm1021_vm10, %v1825_v2, %v1808_v23  ;;  %v1280_v53 = vsel %vm1021_vm10, %v1279_v52, %v9409_v54  ;;  %v11036_v50 = vrot.slane %v9377_v30, 4 }
 0x2e9   : > { %v2438_v9 = vpack.c.bf16 %v1826_v29, %v1826_v29  ;;  %v1268_v25 = vsel %vm1021_vm10, %v1267_v46, %v9763_v21  ;;  %v9780_v43 = vperm.slane %v1280_v53, %v9212_v44  ;;  %v1815_v24 = vrot.slane %v9733_v10, 4 }
 0x2ea   : > { %v1828_v5 = vsel %vm1021_vm10, %v1820_v32, %v1827_v12  ;;  %v1305_v0 = vsel %vm1021_vm10, %v11036_v50, %v9389_v19  ;;  %v9784_v61 = vperm.slane %v1268_v25, %v9212_v44  ;;  %v1333_v30 = vrot.slane %v9415_v48, 4 }
 0x2eb   : > { %v2440_v7 = vpack.c.bf16 %v1828_v5, %v1828_v5  ;;  %v9787_v23 = vperm.slane %v1305_v0, %v9198_v27  ;;  %v2461_v32 = vunpack.c.l.b16 %v2438_v9  ;;  %v1269_v40 = vrot.slane %v9763_v21, 4 }
 0x2ec   : > { %v1291_v22 = vrot.slane %v9780_v43, 4  ;;  %v1323_v12 = vrot.slane %v9767_v15, 4  ;;  %v1334_v10 = vsel %vm1021_vm10, %v1333_v30, %v9367_v38  ;;  %v1750_v52 = vsel %vm1021_vm10, %v9665_v20, %v1749_v55 }
 0x2ed   : > { %v2492_v19 = vunpack.c.l.b16 %v2440_v7  ;;  %v1321_v2 = vrot.slane %v9787_v23, 4  ;;  %v2462_v33 = vpack.c.b16 %v2461_v32, %v2460_v42  ;;  %v9801_v5 = vperm.slane %v1334_v10, %v9212_v44 }
 0x2ee   : > { %v1292_v29 = vsel %vm1021_vm10, %v1291_v22, %v9784_v61  ;;  %v1762_v0 = vsel %vm1021_vm10, %v9686_v8, %v1761_v28  ;;  %v1804_v9 = vsel %vm1021_vm10, %v9719_v6, %v1803_v13  ;;  %v9816_v25 = vperm.slane %v1750_v52, %v9212_v44 }
 0x2ef   : > { %v2493_v46 = vpack.c.b16 %v2492_v19, %v2491_v59  ;;  %v1322_v53 = vsel %vm1021_vm10, %v1321_v2, %v9767_v15  ;;  %v2421_v50 = vpack.c.bf16 %v1292_v29, %v1292_v29  ;;  %v2468_v20 = vsel %vm2463_vm11, %v2462_v33, 0 }
 0x2f0   : > { %v9812_v59 = vperm.slane %v1322_v53, %v9212_v44  ;;  %v1345_v42 = vrot.slane %v9801_v5, 4  ;;  %2477 = vmatpush.bf16.xpose.msra.mxu3 %v2468_v20  ;;  %v9819_v30 = vperm.slane %v1762_v0, %v9212_v44  ;;  %v1816_v8 = vsel %vm1021_vm10, %v9723_v26, %v1815_v24 }
 0x2f1   : > { %v2498_v55 = vsel %vm2463_vm11, %v2493_v46, 0  ;;  %v2455_v7 = vunpack.c.l.b16 %v2421_v50  ;;  %v9826_v28 = vperm.slane %v1804_v9, %v9212_v44  ;;  %v9829_v13 = vperm.slane %v1816_v8, %v9212_v44 }
 0x2f2   : > { %v1346_v6 = vsel %vm1021_vm10, %v1345_v42, %v9812_v59  ;;  %v11037_v32 = vrot.slane %v9489_v63, 4  ;;  %v1775_v2 = vrot.slane %v9819_v30, 4  ;;  %v11038_v10 = vrot.slane %v9473_v57, 4  ;;  %v11041_v42 = vld [vmem:[#allocation33_spill] sm:$0xff] }
 0x2f3   : > { %v2422_v22 = vpack.c.bf16 %v1346_v6, %v1346_v6  ;;  %v1833_v24 = vsel %vm1021_vm10, %v9512_v34, %v9489_v63  ;;  %v1829_v52 = vrot.slane %v9829_v13, 4  ;;  %v11039_v46 = vrot.slane %v9558_v47, 4 }
 0x2f4   : > { %v1662_v19 = vsel %vm1021_vm10, 0.0, %v11037_v32  ;;  %v1718_v26 = vsel %vm1021_vm10, 0.0, %v11038_v10  ;;  %v1837_v33 = vperm.slane %v1833_v24, %v9198_v27  ;;  %v11040_v53 = vrot.slane %v9541_v3, 4  ;;  %v11042_v3 = vld [vmem:[#allocation28_spill] sm:$0xff] }
 0x2f5   : > { %v1839_v29 = vsel %vm1021_vm10, %v11039_v46, %v1662_v19  ;;  %v2456_v0 = vunpack.c.l.b16 %v2422_v22  ;;  %v1776_v9 = vsel %vm1021_vm10, %v1775_v2, %v9816_v25  ;;  %v1830_v63 = vsel %vm1021_vm10, %v1829_v52, %v9826_v28  ;;  %v11043_v19 = vld [vmem:[#allocation30_spill] sm:$0xff] }
 0x2f6   : > { %v1850_v50 = vsel %vm1021_vm10, %v11040_v53, %v9534_v45  ;;  %v1843_v20 = vperm.slane %v1839_v29, %v9198_v27  ;;  %v1857_v47 = vrot.slane %v1837_v33, 4  ;;  %v1869_v8 = vrot.slane %v11041_v42, 4 }
 0x2f7   : > { %v1854_v34 = vperm.slane %v1850_v50, %v9198_v27  ;;  %v2457_v6 = vpack.c.b16 %v2456_v0, %v2455_v7  ;;  %v2442_v32 = vpack.c.bf16 %v1830_v63, %v1830_v63  ;;  %v1887_v45 = vsel %vm1021_vm10, %v11042_v3, %v9473_v57  ;;  %v11045_v50 = vld [vmem:[#allocation31_spill] sm:$0xff] }
 0x2f8   : > { %2507 = vmatpush.bf16.xpose.msrb.mxu3 %v2498_v55  ;;  %v2441_v55 = vpack.c.bf16 %v1776_v9, %v1776_v9  ;;  %v11044_v22 = vrot.slane %v11043_v19, 4  ;;  %v1858_v24 = vsel %vm1021_vm10, %v1843_v20, %v1857_v47  ;;  %v1891_v52 = vperm.slane %v1887_v45, %v9198_v27 }
 0x2f9   : > { %v1870_v46 = vsel %vm1021_vm10, %v1854_v34, %v1869_v8  ;;  %6725 = vmatmul.msk.bf16.vlgmr.msra.gmra.mxu3 %vm2463_vm11, %v2457_v6  ;;  %v2522_v29 = vunpack.c.l.b16 %v2442_v32  ;;  %v9868_v7 = vperm.slane %v1858_v24, %v9212_v44  ;;  %v1855_v8 = vrot.slane %v1843_v20, 4 }
 0x2fa   : > { %v1893_v2 = vsel %vm1021_vm10, %v11044_v22, %v1718_v26  ;;  %v2521_v10 = vunpack.c.l.b16 %v2441_v55  ;;  %v9871_v53 = vperm.slane %v1870_v46, %v9212_v44  ;;  %v11046_v26 = vld [vmem:[#allocation29_spill] sm:$0xff]  ;;  %v1911_v63 = vrot.slane %v1891_v52, 4  ;;  %v11048_v55 = vld [vmem:[#allocation32_spill] sm:$0xff] }
 0x2fb   : > { %v1897_v57 = vperm.slane %v1893_v2, %v9198_v27  ;;  %v11047_v0 = vrot.slane %v11046_v26, 4  ;;  %v1923_v47 = vrot.slane %v11048_v55, 4  ;;  %v1293_v6 = vrot.slane %v9784_v61, 4 }
 0x2fc   : > { %v2523_v32 = vpack.c.b16 %v2522_v29, %v2521_v10  ;;  %v1883_v3 = vrot.slane %v9871_v53, 4  ;;  %v1856_v22 = vsel %vm1021_vm10, %v1855_v8, %v1837_v33  ;;  %v1867_v2 = vrot.slane %v1854_v34, 4 }
 0x2fd   : > { %v1904_v9 = vsel %vm1021_vm10, %v11047_v0, %v11045_v50  ;;  %v1912_v19 = vsel %vm1021_vm10, %v1897_v57, %v1911_v63  ;;  %v1909_v24 = vrot.slane %v1897_v57, 4  ;;  %v1862_v26 = vperm.slane %v1856_v22, %v9212_v44 }
 0x2fe   : > { %v1908_v45 = vperm.slane %v1904_v9, %v9198_v27  ;;  %v2528_v46 = vsel %vm2463_vm11, %v2523_v32, 0  ;;  %v1884_v50 = vsel %vm1021_vm10, %v1883_v3, %v9868_v7  ;;  %v9888_v20 = vperm.slane %v1912_v19, %v9212_v44 }
 0x2ff   : > { %v2449_v29 = vpack.c.bf16 %v1884_v50, %v1884_v50  ;;  %v1868_v33 = vsel %vm1021_vm10, %v1867_v2, %v11041_v42  ;;  %v1347_v34 = vrot.slane %v9812_v59, 4  ;;  %v1910_v0 = vsel %vm1021_vm10, %v1909_v24, %v1891_v52 }
 0x300   : > { %v1924_v61 = vsel %vm1021_vm10, %v1908_v45, %v1923_v47  ;;  %2537 = vmatpush.bf16.xpose.msra.mxu3 %v2528_v46  ;;  %v1874_v57 = vperm.slane %v1868_v33, %v9212_v44  ;;  %v1921_v9 = vrot.slane %v1908_v45, 4  ;;  %v1881_v8 = vrot.slane %v1862_v26, 4 }
 0x301   : > { %v9892_v10 = vperm.slane %v1924_v61, %v9212_v44  ;;  %v2641_v47 = vunpack.c.l.b16 %v2449_v29  ;;  %v1916_v32 = vperm.slane %v1910_v0, %v9212_v44  ;;  %v9906_v42 = vperm.slane %v9636_v11, %v9198_v27 }
 0x302   : > { %v1879_v3 = vrot.slane %v1874_v57, 4  ;;  %v1922_v19 = vsel %vm1021_vm10, %v1921_v9, %v11048_v55  ;;  %v1377_v59 = vrot.slane %v9601_v1, 4  ;;  %v1882_v2 = vsel %vm1021_vm10, %v1874_v57, %v1881_v8 }
 0x303   : > { %v1937_v63 = vrot.slane %v9892_v10, 4  ;;  %v1928_v45 = vperm.slane %v1922_v19, %v9212_v44  ;;  %v1935_v22 = vrot.slane %v1916_v32, 4  ;;  %v2447_v50 = vpack.c.bf16 %v1882_v2, %v1882_v2 }
 0x304   : > { %v1880_v46 = vsel %vm1021_vm10, %v1879_v3, %v1862_v26  ;;  %v1378_v55 = vsel %vm1021_vm10, %v9906_v42, %v1377_v59  ;;  %v1885_v11 = vrot.slane %v9868_v7, 4  ;;  %v1390_v57 = vsel %vm1021_vm10, %v9652_v35, %v1389_v18  ;;  %v11050_v18 = vld [vmem:[#allocation34_spill] sm:$0xff] }
 0x305   : > { %v1938_v52 = vsel %vm1021_vm10, %v1937_v63, %v9888_v20  ;;  %v1933_v61 = vrot.slane %v1928_v45, 4  ;;  %v2445_v29 = vpack.c.bf16 %v1880_v46, %v1880_v46  ;;  %v1936_v33 = vsel %vm1021_vm10, %v1928_v45, %v1935_v22 }
 0x306   : > { %v2450_v24 = vpack.c.bf16 %v1938_v52, %v1938_v52  ;;  %v2448_v9 = vpack.c.bf16 %v1936_v33, %v1936_v33  ;;  %v2611_v63 = vunpack.c.l.b16 %v2447_v50  ;;  %v9924_v3 = vperm.slane %v1378_v55, %v9212_v44 }
 0x307   : > { %v1934_v26 = vsel %vm1021_vm10, %v1933_v61, %v1916_v32  ;;  %v2581_v8 = vunpack.c.l.b16 %v2445_v29  ;;  %v9927_v19 = vperm.slane %v1390_v57, %v9212_v44  ;;  %v1417_v22 = vperm.slane %v9594_v4, %v9198_v27 }
 0x308   : > { %v2642_v0 = vunpack.c.l.b16 %v2450_v24  ;;  %v2446_v52 = vpack.c.bf16 %v1934_v26, %v1934_v26  ;;  %v2612_v45 = vunpack.c.l.b16 %v2448_v9  ;;  %v11049_v24 = vld [vmem:[#allocation35_spill] sm:$0xff]  ;;  %v11051_v50 = vrot.slane %v11050_v18, 4 }
 0x309   : > { %v1403_v2 = vrot.slane %v9927_v19, 4  ;;  %v1431_v46 = vrot.slane %v11049_v24, 4  ;;  %v1294_v55 = vsel %vm1021_vm10, %v9780_v43, %v1293_v6  ;;  %v1348_v9 = vsel %vm1021_vm10, %v9801_v5, %v1347_v34 }
 0x30a   : > { %v2643_v59 = vpack.c.b16 %v2642_v0, %v2641_v47  ;;  %v1444_v32 = vsel %vm1021_vm10, %v9587_v58, %v11051_v50  ;;  %v2582_v47 = vunpack.c.l.b16 %v2446_v52  ;;  %v2613_v29 = vpack.c.b16 %v2612_v45, %v2611_v63 }
 0x30b   : > { %v9941_v33 = vperm.slane %v1444_v32, %v9212_v44  ;;  %v1404_v4 = vsel %vm1021_vm10, %v1403_v2, %v9924_v3  ;;  %v1432_v0 = vsel %vm1021_vm10, %v1417_v22, %v1431_v46  ;;  %v2423_v57 = vpack.c.bf16 %v1294_v55, %v1294_v55 }
 0x30c   : > { %v2648_v61 = vsel %vm2463_vm11, %v2643_v59, 0  ;;  %v2583_v26 = vpack.c.b16 %v2582_v47, %v2581_v8  ;;  %v2618_v43 = vsel %vm2463_vm11, %v2613_v29, 0  ;;  %v9950_v6 = vperm.slane %v1432_v0, %v9212_v44 }
 0x30d   : > { %2657 = vmatpush.bf16.xpose.msrb.mxu2 %v2648_v61  ;;  %v1457_v63 = vrot.slane %v9941_v33, 4  ;;  %v2433_v59 = vpack.c.bf16 %v1404_v4, %v1404_v4  ;;  %v2424_v52 = vpack.c.bf16 %v1348_v9, %v1348_v9  ;;  %v2486_v45 = vunpack.c.l.b16 %v2423_v57 }
 0x30e   : > { %v1777_v50 = vrot.slane %v9816_v25, 4  ;;  %v1939_v2 = vrot.slane %v9888_v20, 4  ;;  %v2588_v46 = vsel %vm2463_vm11, %v2583_v26, 0  ;;  %v1831_v34 = vrot.slane %v9826_v28, 4 }
 0x30f   : > { %v1458_v5 = vsel %vm1021_vm10, %v1457_v63, %v9950_v6  ;;  %2597 = vmatpush.bf16.xpose.msrb.mxu1 %v2588_v46  ;;  %v2636_v32 = vunpack.c.l.b16 %v2433_v59  ;;  %v2487_v55 = vunpack.c.l.b16 %v2424_v52  ;;  %v1375_v29 = vrot.slane %v9906_v42, 4 }
 0x310   : > { %v2434_v8 = vpack.c.bf16 %v1458_v5, %v1458_v5  ;;  %v1778_v61 = vsel %vm1021_vm10, %v9819_v30, %v1777_v50  ;;  %v1832_v25 = vsel %vm1021_vm10, %v9829_v13, %v1831_v34  ;;  %v1388_v4 = vsel %vm1021_vm10, %v1387_v41, %v9617_v36 }
 0x311   : > { %v2443_v47 = vpack.c.bf16 %v1778_v61, %v1778_v61  ;;  %v2488_v0 = vpack.c.b16 %v2487_v55, %v2486_v45  ;;  %v2444_v9 = vpack.c.bf16 %v1832_v25, %v1832_v25  ;;  %v9969_v57 = vperm.slane %v1388_v4, %v9212_v44 }
 0x312   : > { %v2637_v28 = vunpack.c.l.b16 %v2434_v8  ;;  %v1376_v30 = vsel %vm1021_vm10, %v1375_v29, %v9601_v1  ;;  %v1442_v13 = vsel %vm1021_vm10, %v1441_v39, %v11050_v18  ;;  %v2215_v58 = vperm.slane %v9714_v62, %v9198_v27 }
 0x313   : > { %v2551_v26 = vunpack.c.l.b16 %v2443_v47  ;;  %6726 = vmatmul.msk.bf16.vlgmr.msrb.gmra.mxu3 %vm2463_vm11, %v2488_v0  ;;  %v2552_v36 = vunpack.c.l.b16 %v2444_v9  ;;  %v9979_v35 = vperm.slane %v1376_v30, %v9212_v44  ;;  %v1399_v41 = vrot.slane %v9969_v57, 4 }
 0x314   : > { %v2638_v42 = vpack.c.b16 %v2637_v28, %v2636_v32  ;;  %v9985_v1 = vperm.slane %v1442_v13, %v9212_v44  ;;  %v2226_v39 = vperm.slane %v9744_v56, %v9198_v27  ;;  %v2229_v50 = vrot.slane %v9699_v14, 4 }
 0x315   : > { %v1400_v18 = vsel %vm1021_vm10, %v1399_v41, %v9979_v35  ;;  %v1401_v59 = vrot.slane %v9979_v35, 4  ;;  %v2241_v62 = vrot.slane %v9726_v51, 4  ;;  %v2269_v5 = vperm.slane %v9677_v16, %v9198_v27 }
 0x316   : > { %6731 = vmatmul.msk.bf16.vlgmr.msrb.gmra.mxu2 %vm2463_vm11, %v2638_v42  ;;  %v2429_v45 = vpack.c.bf16 %v1400_v18, %v1400_v18  ;;  %v2280_v34 = vperm.slane %v9690_v17, %v9198_v27  ;;  %v2230_v55 = vsel %vm1021_vm10, %v2215_v58, %v2229_v50  ;;  %v2283_v16 = vrot.slane %v9674_v31, 4 }
 0x317   : > { %2627 = vmatpush.bf16.xpose.msra.mxu1 %v2618_v43  ;;  %v1429_v43 = vrot.slane %v1417_v22, 4  ;;  %v2553_v22 = vpack.c.b16 %v2552_v36, %v2551_v26  ;;  %v2242_v61 = vsel %vm1021_vm10, %v2226_v39, %v2241_v62  ;;  %v10012_v47 = vperm.slane %v2230_v55, %v9212_v44 }
 0x318   : > { %v2576_v32 = vunpack.c.l.b16 %v2429_v45  ;;  %v10015_v29 = vperm.slane %v2242_v61, %v9212_v44  ;;  %v2295_v17 = vrot.slane %v9680_v49, 4  ;;  %v2227_v4 = vrot.slane %v2215_v58, 4 }
 0x319   : > { %v1430_v63 = vsel %vm1021_vm10, %v1429_v43, %v11049_v24  ;;  %v1453_v24 = vrot.slane %v9985_v1, 4  ;;  %v2558_v56 = vsel %vm2463_vm11, %v2553_v22, 0  ;;  %v2239_v28 = vrot.slane %v2226_v39, 4 }
 0x31a   : > { %v9996_v52 = vperm.slane %v1430_v63, %v9212_v44  ;;  %2567 = vmatpush.bf16.xpose.msrb.mxu3 %v2558_v56  ;;  %v2281_v0 = vrot.slane %v2269_v5, 4  ;;  %v2255_v26 = vrot.slane %v10015_v29, 4  ;;  %v2284_v30 = vsel %vm1021_vm10, %v2269_v5, %v2283_v16 }
 0x31b   : > { %v2293_v43 = vrot.slane %v2280_v34, 4  ;;  %v10022_v13 = vperm.slane %v2284_v30, %v9212_v44  ;;  %v2296_v42 = vsel %vm1021_vm10, %v2280_v34, %v2295_v17  ;;  %v2228_v36 = vsel %vm1021_vm10, %v2227_v4, %v9699_v14 }
 0x31c   : > { %v1455_v46 = vrot.slane %v9996_v52, 4  ;;  %v1454_v8 = vsel %vm1021_vm10, %v1453_v24, %v9996_v52  ;;  %v2240_v41 = vsel %vm1021_vm10, %v2239_v28, %v9726_v51  ;;  %v2256_v58 = vsel %vm1021_vm10, %v2255_v26, %v10012_v47 }
 0x31d   : > { %v2430_v25 = vpack.c.bf16 %v1454_v8, %v1454_v8  ;;  %v10032_v39 = vperm.slane %v2296_v42, %v9212_v44  ;;  %v2234_v22 = vperm.slane %v2228_v36, %v9212_v44  ;;  %v2907_v18 = vpack.c.bf16 %v2256_v58, %v2256_v58 }
 0x31e   : > { %v2246_v24 = vperm.slane %v2240_v41, %v9212_v44  ;;  %v2282_v45 = vsel %vm1021_vm10, %v2281_v0, %v9674_v31  ;;  %v2294_v14 = vsel %vm1021_vm10, %v2293_v43, %v9680_v49  ;;  %v1270_v8 = vsel %vm1021_vm10, %v9756_v60, %v1269_v40 }
 0x31f   : > { %v2577_v9 = vunpack.c.l.b16 %v2430_v25  ;;  %v2309_v51 = vrot.slane %v10032_v39, 4  ;;  %v2253_v50 = vrot.slane %v2234_v22, 4  ;;  %v2288_v62 = vperm.slane %v2282_v45, %v9212_v44 }
 0x320   : > { %v2300_v56 = vperm.slane %v2294_v14, %v9212_v44  ;;  %v2982_v5 = vunpack.c.l.b16 %v2907_v18  ;;  %v2251_v34 = vrot.slane %v2246_v24, 4  ;;  %v11052_v31 = vrot.slane %v9409_v54, 4 }
 0x321   : > { %v2578_v63 = vpack.c.b16 %v2577_v9, %v2576_v32  ;;  %v2310_v32 = vsel %vm1021_vm10, %v2309_v51, %v10022_v13  ;;  %v2307_v61 = vrot.slane %v2288_v62, 4  ;;  %v2254_v25 = vsel %vm1021_vm10, %v2246_v24, %v2253_v50 }
 0x322   : > { %v1282_v49 = vsel %vm1021_vm10, %v9433_v37, %v11052_v31  ;;  %v2305_v55 = vrot.slane %v2300_v56, 4  ;;  %v2908_v16 = vpack.c.bf16 %v2310_v32, %v2310_v32  ;;  %v2252_v17 = vsel %vm1021_vm10, %v2251_v34, %v2234_v22 }
 0x323   : > { %6729 = vmatmul.msk.bf16.vlgmr.msrb.gmra.mxu1 %vm2463_vm11, %v2578_v63  ;;  %v2905_v4 = vpack.c.bf16 %v2254_v25, %v2254_v25  ;;  %v10057_v21 = vperm.slane %v1270_v8, %v9212_v44  ;;  %v2903_v54 = vpack.c.bf16 %v2252_v17, %v2252_v17  ;;  %v2308_v40 = vsel %vm1021_vm10, %v2300_v56, %v2307_v61 }
 0x324   : > { %v2306_v60 = vsel %vm1021_vm10, %v2305_v55, %v2288_v62  ;;  %v1290_v37 = vperm.slane %v1282_v49, %v9212_v44  ;;  %v2983_v28 = vunpack.c.l.b16 %v2908_v16  ;;  %v2906_v9 = vpack.c.bf16 %v2308_v40, %v2308_v40 }
 0x325   : > { %v2904_v0 = vpack.c.bf16 %v2306_v60, %v2306_v60  ;;  %v2954_v26 = vunpack.c.l.b16 %v2905_v4  ;;  %v2926_v30 = vunpack.c.l.b16 %v2903_v54  ;;  %v1324_v42 = vsel %vm1021_vm10, %v9787_v23, %v1323_v12 }
 0x326   : > { %v1295_v43 = vrot.slane %v1290_v37, 4  ;;  %v11053_v36 = vrot.slane %v9367_v38, 4  ;;  %v2984_v63 = vpack.c.b16 %v2983_v28, %v2982_v5  ;;  %v2955_v22 = vunpack.c.l.b16 %v2906_v9 }
 0x327   : > { %v2927_v58 = vunpack.c.l.b16 %v2904_v0  ;;  %v1332_v18 = vperm.slane %v1324_v42, %v9212_v44  ;;  %v1402_v15 = vsel %vm1021_vm10, %v9969_v57, %v1401_v59  ;;  %v1456_v38 = vsel %vm1021_vm10, %v9985_v1, %v1455_v46 }
 0x328   : > { %v1336_v41 = vsel %vm1021_vm10, %v9415_v48, %v11053_v36  ;;  %v1296_v24 = vsel %vm1021_vm10, %v1295_v43, %v10057_v21  ;;  %2996 = vmatpush.bf16.msra.mxu2 %v2984_v63  ;;  %v2956_v23 = vpack.c.b16 %v2955_v22, %v2954_v26  ;;  %v2431_v14 = vpack.c.bf16 %v1402_v15, %v1402_v15 }
 0x329   : > { %v1344_v45 = vperm.slane %v1336_v41, %v9212_v44  ;;  %v2928_v48 = vpack.c.b16 %v2927_v58, %v2926_v30  ;;  %v2425_v12 = vpack.c.bf16 %v1296_v24, %v1296_v24  ;;  %v2432_v50 = vpack.c.bf16 %v1456_v38, %v1456_v38 }
 0x32a   : > { %v1886_v35 = vsel %vm1021_vm10, %v9871_v53, %v1885_v11  ;;  %v1940_v57 = vsel %vm1021_vm10, %v9892_v10, %v1939_v2  ;;  %2968 = vmatpush.bf16.msrb.mxu1 %v2956_v23  ;;  %v2606_v1 = vunpack.c.l.b16 %v2431_v14  ;;  %v1405_v46 = vrot.slane %v9924_v3, 4 }
 0x32b   : > { %v1349_v51 = vrot.slane %v1344_v45, 4  ;;  %2940 = vmatpush.bf16.msrb.mxu0 %v2928_v48  ;;  %v2451_v59 = vpack.c.bf16 %v1886_v35, %v1886_v35  ;;  %v2452_v52 = vpack.c.bf16 %v1940_v57, %v1940_v57  ;;  %v1459_v62 = vrot.slane %v9950_v6, 4 }
 0x32c   : > { %v2607_v7 = vunpack.c.l.b16 %v2432_v50  ;;  %v2516_v34 = vunpack.c.l.b16 %v2425_v12  ;;  %v1406_v10 = vsel %vm1021_vm10, %v9927_v19, %v1405_v46  ;;  %v1297_v6 = vrot.slane %v10057_v21, 4 }
 0x32d   : > { %v1350_v56 = vsel %vm1021_vm10, %v1349_v51, %v1332_v18  ;;  %v2671_v53 = vunpack.c.l.b16 %v2451_v59  ;;  %v2672_v11 = vunpack.c.l.b16 %v2452_v52  ;;  %v1460_v3 = vsel %vm1021_vm10, %v9941_v33, %v1459_v62 }
 0x32e   : > { %v2426_v5 = vpack.c.bf16 %v1350_v56, %v1350_v56  ;;  %v2608_v20 = vpack.c.b16 %v2607_v7, %v2606_v1  ;;  %v1351_v49 = vrot.slane %v1332_v18, 4  ;;  %v2435_v32 = vpack.c.bf16 %v1406_v10, %v1406_v10 }
 0x32f   : > { %v2673_v31 = vpack.c.b16 %v2672_v11, %v2671_v53  ;;  %v2436_v55 = vpack.c.bf16 %v1460_v3, %v1460_v3  ;;  %v2257_v25 = vrot.slane %v10012_v47, 4  ;;  %v2311_v16 = vrot.slane %v10022_v13, 4 }
 0x330   : > { %v2517_v8 = vunpack.c.l.b16 %v2426_v5  ;;  %v2666_v17 = vunpack.c.l.b16 %v2435_v32  ;;  %v1298_v4 = vsel %vm1021_vm10, %v1290_v37, %v1297_v6  ;;  %v1352_v33 = vsel %vm1021_vm10, %v1344_v45, %v1351_v49 }
 0x331   : > { %v2678_v61 = vsel %vm2463_vm11, %v2673_v31, 0  ;;  %v2667_v19 = vunpack.c.l.b16 %v2436_v55  ;;  %v2258_v21 = vsel %vm1021_vm10, %v10015_v29, %v2257_v25  ;;  %v2312_v54 = vsel %vm1021_vm10, %v10032_v39, %v2311_v16 }
 0x332   : > { %v2518_v2 = vpack.c.b16 %v2517_v8, %v2516_v34  ;;  %v2427_v40 = vpack.c.bf16 %v1298_v4, %v1298_v4  ;;  %v2428_v28 = vpack.c.bf16 %v1352_v33, %v1352_v33  ;;  %v2909_v0 = vpack.c.bf16 %v2258_v21, %v2258_v21  ;;  %v11054_v33 = vld [vmem:[#allocation27_spill] sm:$0xff] }
 0x333   : > { %6730 = vmatmul.msk.bf16.vlgmr.msra.gmra.mxu1 %vm2463_vm11, %v2608_v20  ;;  %v2668_v60 = vpack.c.b16 %v2667_v19, %v2666_v17  ;;  %v2910_v47 = vpack.c.bf16 %v2312_v54, %v2312_v54 }
 0x334   : > { %6727 = vmatmul.msk.bf16.vlgmr.msra.gmra.mxu3 %vm2463_vm11, %v2518_v2  ;;  %v2546_v9 = vunpack.c.l.b16 %v2427_v40  ;;  %v2547_v13 = vunpack.c.l.b16 %v2428_v28  ;;  %v3010_v26 = vunpack.c.l.b16 %v2909_v0 }
 0x335   : > { %2687 = vmatpush.bf16.xpose.msra.mxu3 %v2678_v61  ;;  %v3011_v30 = vunpack.c.l.b16 %v2910_v47 }
 0x336   : > { %v2548_v43 = vpack.c.b16 %v2547_v13, %v2546_v9 }
 0x337   : > { %v3012_v42 = vpack.c.b16 %v3011_v30, %v3010_v26 }
 0x344   : > { %6728 = vmatmul.msk.bf16.vlgmr.msrb.gmra.mxu3 %vm2463_vm11, %v2548_v43 }
 0x345   : > { %3024 = vmatpush.bf16.msrb.mxu3 %v3012_v42 }
 0x354   : > { %6732 = vmatmul.msk.bf16.vlgmr.msra.gmra.mxu3 %vm2463_vm11, %v2668_v60  ;;  %v10165_v60 = vpop.permute.xlu1 %8304 }
 0x37c   : > { %v2479_v37 = vpop.f32.mrf.mxu3 }
 0x37d   : > { %v10111_v29 = vmul.f32 0.17677669, %v2479_v37 }
 0x37f   : > { %v2711_v39 = vsel %vm2710_vm12, %v10111_v29, -inf }
 0x380   : > { %2712 = vmax.xlane.f32.xlu0 %v2711_v39 }
 0x384   : > { %v2481_v36 = vpop.f32.mrf.mxu3 }
 0x385   : > { %v10115_v41 = vmul.f32 0.17677669, %v2481_v36 }
 0x387   : > { %v2714_v63 = vsel %vm2710_vm12, %v10115_v41, -inf }
 0x388   : > { %2715 = vmax.xlane.f32.xlu2 %v2714_v63 }
 0x396   : > { %v2509_v38 = vpop.f32.mrf.mxu3 }
 0x397   : > { %v10127_v48 = vmul.f32 0.17677669, %v2509_v38 }
 0x399   : > { %v2659_v58 = vpop.f32.mrf.mxu2  ;;  %v2717_v51 = vsel %vm2710_vm12, %v10127_v48, -inf }
 0x39a   : > { %v10119_v22 = vmul.f32 0.17677669, %v2659_v58 }
 0x39c   : > { %v2747_v18 = vsel %vm2710_vm12, %v10119_v22, -inf }
 0x39d   : > { %2748 = vmax.xlane.f32.xlu2 %v2747_v18 }
 0x39e   : > { %v2511_v35 = vpop.f32.mrf.mxu3 }
 0x39f   : > { %v2697_v1 = vmul.f32 0.17677669, %v2511_v35 }
 0x3a0   : > { %v2599_v24 = vpop.f32.mrf.mxu1 }
 0x3a1   : > { %v10123_v45 = vmul.f32 0.17677669, %v2599_v24  ;;  %v2661_v50 = vpop.f32.mrf.mxu2  ;;  %v2720_v56 = vsel %vm2710_vm12, %v2697_v1, -inf }
 0x3a2   : > { %v10135_v57 = vmul.f32 0.17677669, %v2661_v50 }
 0x3a3   : > { %v2735_v15 = vsel %vm2710_vm12, %v10123_v45, -inf }
 0x3a4   : > { %2736 = vmax.xlane.f32.xlu1 %v2735_v15  ;;  %v2750_v62 = vsel %vm2710_vm12, %v10135_v57, -inf }
 0x3a8   : > { %v2601_v23 = vpop.f32.mrf.mxu1 }
 0x3a9   : > { %v10129_v12 = vmul.f32 0.17677669, %v2601_v23 }
 0x3ab   : > { %v2738_v14 = vsel %vm2710_vm12, %v10129_v12, -inf }
 0x3ac   : > { %2739 = vmax.xlane.f32.xlu0 %v2738_v14  ;;  %2718 = vmax.xlane.f32.xlu1 %v2717_v51 }
 0x3b0   : > { %v2629_v59 = vpop.f32.mrf.mxu1 }
 0x3b1   : > { %v10137_v52 = vmul.f32 0.17677669, %v2629_v59 }
 0x3b3   : > { %v2741_v46 = vsel %vm2710_vm12, %v10137_v52, -inf }
 0x3b4   : > { %2742 = vmax.xlane.f32.xlu2 %v2741_v46  ;;  %2751 = vmax.xlane.f32.xlu1 %v2750_v62 }
 0x3b5   : > { %2721 = vmax.xlane.f32.xlu0 %v2720_v56 }
 0x3b7   : > { %v2539_v7 = vpop.f32.mrf.mxu3 }
 0x3b8   : > { %v2698_v5 = vmul.f32 0.17677669, %v2539_v7  ;;  %v2631_v53 = vpop.f32.mrf.mxu1 }
 0x3b9   : > { %v10145_v11 = vmul.f32 0.17677669, %v2631_v53 }
 0x3ba   : > { %v2723_v34 = vsel %vm2710_vm12, %v2698_v5, -inf }
 0x3bb   : > { %v2744_v10 = vsel %vm2710_vm12, %v10145_v11, -inf }
 0x3bc   : > { %2724 = vmax.xlane.f32.xlu1 %v2723_v34 }
 0x3bf   : > { %v2541_v20 = vpop.f32.mrf.mxu3 }
 0x3c0   : > { %v2699_v8 = vmul.f32 0.17677669, %v2541_v20 }
 0x3c2   : > { %v2726_v31 = vsel %vm2710_vm12, %v2699_v8, -inf }
 0x3c3   : > { %2727 = vmax.xlane.f32.xlu0 %v2726_v31 }
 0x3c4   : > { %2745 = vmax.xlane.f32.xlu1 %v2744_v10 }
 0x3c7   : > { %v2569_v3 = vpop.f32.mrf.mxu3 }
 0x3c8   : > { %v2700_v2 = vmul.f32 0.17677669, %v2569_v3 }
 0x3ca   : > { %v2729_v6 = vsel %vm2710_vm12, %v2700_v2, -inf }
 0x3cb   : > { %2730 = vmax.xlane.f32.xlu2 %v2729_v6 }
 0x3cf   : > { %v2571_v49 = vpop.f32.mrf.mxu3 }
 0x3d0   : > { %v10151_v32 = vmul.f32 0.17677669, %v2571_v49 }
 0x3d2   : > { %v2732_v55 = vsel %vm2710_vm12, %v10151_v32, -inf }
 0x3d3   : > { %2733 = vmax.xlane.f32.xlu1 %v2732_v55 }
 0x3d7   : > { %v2689_v61 = vpop.f32.mrf.mxu3 }
 0x3d8   : > { %v10155_v25 = vmul.f32 0.17677669, %v2689_v61 }
 0x3da   : > { %v2753_v16 = vsel %vm2710_vm12, %v10155_v25, -inf }
 0x3db   : > { %2754 = vmax.xlane.f32.xlu0 %v2753_v16 }
 0x3df   : > { %v2691_v17 = vpop.f32.mrf.mxu3 }
 0x3e0   : > { %v10159_v19 = vmul.f32 0.17677669, %v2691_v17 }
 0x3e2   : > { %v2756_v4 = vsel %vm2710_vm12, %v10159_v19, -inf }
 0x3e3   : > { %2757 = vmax.xlane.f32.xlu2 %v2756_v4 }
 0x3ec   : > { %8309 = vrot.lane.b32.xlu1 %v11054_v33, %s8799_s30 }
 0x3f3   : > { %v2713_v21 = vpop.xlane.xlu0 %2712 }
 0x3f4   : > { %v2759_v37 = vsub.f32 %v10111_v29, %v2713_v21 }
 0x3f6   : > { %v2775_v58 = vmul.f32 1.442695, %v2759_v37 }
 0x3fb   : > { %v2716_v0 = vpop.xlane.xlu2 %2715 }
 0x3fc   : > { %v2760_v23 = vsub.f32 %v10115_v41, %v2716_v0 }
 0x3fe   : > { %v2777_v51 = vmul.f32 1.442695, %v2760_v23 }
 0x410   : > { %v10169_v30 = vpop.xlane.xlu2 %2748 }
 0x417   : > { %v2737_v54 = vpop.xlane.xlu1 %2736 }
 0x418   : > { %v2767_v59 = vsub.f32 %v10123_v45, %v2737_v54 }
 0x41f   : > { %v10167_v40 = vpop.xlane.xlu0 %2739  ;;  %v2719_v28 = vpop.xlane.xlu1 %2718 }
 0x420   : > { %v2761_v62 = vsub.f32 %v10127_v48, %v2719_v28 }
 0x422   : > { %v2779_v34 = vmul.f32 1.442695, %v2761_v62 }
 0x427   : > { %v2752_v47 = vpop.xlane.xlu1 %2751  ;;  %v2743_v18 = vpop.xlane.xlu2 %2742 }
 0x428   : > { %v2722_v9 = vpop.xlane.xlu0 %2721  ;;  %v2772_v48 = vsub.f32 %v10135_v57, %v2752_v47  ;;  %v2769_v61 = vsub.f32 %v10137_v52, %v2743_v18  ;;  %v2768_v52 = vsub.f32 %v10129_v12, %v10167_v40 }
 0x429   : > { %v2762_v13 = vsub.f32 %v2697_v1, %v2722_v9 }
 0x42a   : > { %v2801_v3 = vmul.f32 1.442695, %v2772_v48  ;;  %v2795_v21 = vmul.f32 1.442695, %v2769_v61  ;;  %v2793_v47 = vmul.f32 1.442695, %v2768_v52 }
 0x42b   : > { %v2781_v26 = vmul.f32 1.442695, %v2762_v13 }
 0x42d   : > { %8374 = vpow2.f32 %v2781_v26 }
 0x42f   : > { %v2725_v43 = vpop.xlane.xlu1 %2724 }
 0x430   : > { %v2763_v42 = vsub.f32 %v2698_v5, %v2725_v43  ;;  %v2791_v5 = vmul.f32 1.442695, %v2767_v59 }
 0x432   : > { %v2783_v39 = vmul.f32 1.442695, %v2763_v42 }
 0x433   : > { %v10172_v36 = vpop.eup %8374 }
 0x434   : > { %8376 = vpow2.f32 %v2783_v39  ;;  %v2816_v63 = vsel %vm2710_vm12, %v10172_v36, 0.0 }
 0x435   : > { %2817 = vadd.xlane.f32.xlu1 %v2816_v63  ;;  %8378 = vpow2.f32 %v2775_v58  ;;  %v2771_v58 = vsub.f32 %v10119_v22, %v10169_v30 }
 0x436   : > { %v2728_v24 = vpop.xlane.xlu0 %2727 }
 0x437   : > { %v2764_v15 = vsub.f32 %v2699_v8, %v2728_v24  ;;  %v2746_v45 = vpop.xlane.xlu1 %2745  ;;  %v2799_v24 = vmul.f32 1.442695, %v2771_v58 }
 0x438   : > { %v2770_v37 = vsub.f32 %v10145_v11, %v2746_v45 }
 0x439   : > { %v2785_v14 = vmul.f32 1.442695, %v2764_v15 }
 0x43a   : > { %v10176_v38 = vpop.eup %8376  ;;  %v2797_v63 = vmul.f32 1.442695, %v2770_v37 }
 0x43b   : > { %v2819_v29 = vsel %vm2710_vm12, %v10176_v38, 0.0  ;;  %8380 = vpow2.f32 %v2785_v14  ;;  %v10181_v35 = vpop.eup %8378 }
 0x43c   : > { %2820 = vadd.xlane.f32.xlu0 %v2819_v29  ;;  %8382 = vpow2.f32 %v2777_v51  ;;  %v2807_v7 = vsel %vm2710_vm12, %v10181_v35, 0.0 }
 0x43e   : > { %v2731_v50 = vpop.xlane.xlu2 %2730 }
 0x43f   : > { %v2765_v1 = vsub.f32 %v2700_v2, %v2731_v50 }
 0x441   : > { %v10184_v46 = vpop.eup %8380  ;;  %v2787_v56 = vmul.f32 1.442695, %v2765_v1 }
 0x442   : > { %v2822_v41 = vsel %vm2710_vm12, %v10184_v46, 0.0  ;;  %v10191_v53 = vpop.eup %8382 }
 0x443   : > { %8384 = vpow2.f32 %v2787_v56  ;;  %2823 = vadd.xlane.f32.xlu2 %v2822_v41  ;;  %v2810_v31 = vsel %vm2710_vm12, %v10191_v53, 0.0  ;;  %v11055_v41 = vld [vmem:[#allocation26_spill] sm:$0xff] }
 0x444   : > { %2808 = vadd.xlane.f32.xlu0 %v2807_v7  ;;  %8386 = vpow2.f32 %v2791_v5  ;;  %v2095_v7 = vrot.slane %v11055_v41, 4  ;;  %v11056_v5 = vld [vmem:[#allocation25_spill] sm:$0xff] }
 0x445   : > { %8388 = vpow2.f32 %v2779_v34  ;;  %v2151_v34 = vrot.slane %v11056_v5, 4 }
 0x446   : > { %v2734_v49 = vpop.xlane.xlu1 %2733  ;;  %8390 = vpow2.f32 %v2801_v3  ;;  %v8307_v3 = vunpack.i.h.bf16 %v10165_v60 }
 0x447   : > { %v2766_v16 = vsub.f32 %v10151_v32, %v2734_v49 }
 0x449   : > { %v10193_v20 = vpop.eup %8384  ;;  %v2789_v54 = vmul.f32 1.442695, %v2766_v16 }
 0x44a   : > { %v2825_v8 = vsel %vm2710_vm12, %v10193_v20, 0.0  ;;  %v10200_v10 = vpop.eup %8386 }
 0x44b   : > { %2826 = vadd.xlane.f32.xlu1 %v2825_v8  ;;  %v10202_v6 = vpop.eup %8388  ;;  %v2831_v17 = vsel %vm2710_vm12, %v10200_v10, 0.0 }
 0x44c   : > { %2811 = vadd.xlane.f32.xlu0 %v2810_v31  ;;  %v2813_v4 = vsel %vm2710_vm12, %v10202_v6, 0.0  ;;  %v10211_v28 = vpop.eup %8390 }
 0x44d   : > { %v2846_v0 = vsel %vm2710_vm12, %v10211_v28, 0.0 }
 0x44e   : > { %v2755_v2 = vpop.xlane.xlu0 %2754 }
 0x44f   : > { %v2773_v55 = vsub.f32 %v10155_v25, %v2755_v2  ;;  %v8306_v2 = vunpack.i.l.bf16 %v10165_v60 }
 0x451   : > { %v2803_v57 = vmul.f32 1.442695, %v2773_v55 }
 0x453   : > { %8392 = vpow2.f32 %v2803_v57  ;;  %2832 = vadd.xlane.f32.xlu1 %v2831_v17 }
 0x454   : > { %2814 = vadd.xlane.f32.xlu0 %v2813_v4  ;;  %8394 = vpow2.f32 %v2795_v21  ;;  %v2163_v21 = vrot.slane %v8307_v3, 4 }
 0x455   : > { %8396 = vpow2.f32 %v2789_v54  ;;  %v2107_v54 = vrot.slane %v8306_v2, 4 }
 0x456   : > { %v2758_v13 = vpop.xlane.xlu2 %2757  ;;  %8398 = vpow2.f32 %v2793_v47 }
 0x457   : > { %v2774_v12 = vsub.f32 %v10159_v19, %v2758_v13 }
 0x459   : > { %v10213_v25 = vpop.eup %8392  ;;  %v2805_v43 = vmul.f32 1.442695, %v2774_v12 }
 0x45a   : > { %v2849_v32 = vsel %vm2710_vm12, %v10213_v25, 0.0  ;;  %v10223_v9 = vpop.eup %8394 }
 0x45b   : > { %2850 = vadd.xlane.f32.xlu1 %v2849_v32  ;;  %8314 = vrot.lane.b32.xlu2 %v11054_v33, %s8798_s13  ;;  %v10225_v26 = vpop.eup %8396  ;;  %v2837_v40 = vsel %vm2710_vm12, %v10223_v9, 0.0  ;;  %8400 = vpow2.f32 %v2805_v43 }
 0x45c   : > { %2847 = vadd.xlane.f32.xlu0 %v2846_v0  ;;  %v2828_v33 = vsel %vm2710_vm12, %v10225_v26, 0.0  ;;  %v10232_v42 = vpop.eup %8398  ;;  %8402 = vpow2.f32 %v2797_v63 }
 0x45d   : > { %v2834_v39 = vsel %vm2710_vm12, %v10232_v42, 0.0  ;;  %8404 = vpow2.f32 %v2799_v24 }
 0x45e   : > { %v8310_v22 = vpop.permute.xlu1 %8309 }
 0x45f   : > { %v8312_v29 = vunpack.i.h.bf16 %v8310_v22  ;;  %v8311_v51 = vunpack.i.l.bf16 %v8310_v22 }
 0x461   : > { %v10237_v19 = vpop.eup %8400  ;;  %v2149_v50 = vrot.slane %v8312_v29, 4  ;;  %v2093_v45 = vrot.slane %v8311_v51, 4  ;;  %v2152_v8 = vsel %vm1021_vm10, %v8312_v29, %v2151_v34  ;;  %v2096_v31 = vsel %vm1021_vm10, %v8311_v51, %v2095_v7 }
 0x462   : > { %v2852_v18 = vsel %vm2710_vm12, %v10237_v19, 0.0  ;;  %v10243_v15 = vpop.eup %8402  ;;  %v2160_v61 = vperm.slane %v2152_v8, %v9198_v27  ;;  %v2104_v16 = vperm.slane %v2096_v31, %v9198_v27 }
 0x463   : > { %2838 = vadd.xlane.f32.xlu1 %v2837_v40  ;;  %v2840_v11 = vsel %vm2710_vm12, %v10243_v15, 0.0  ;;  %v10247_v23 = vpop.eup %8404  ;;  %v2150_v48 = vsel %vm1021_vm10, %v2149_v50, %v11056_v5  ;;  %v2094_v57 = vsel %vm1021_vm10, %v2093_v45, %v11055_v41 }
 0x464   : > { %2829 = vadd.xlane.f32.xlu0 %v2828_v33  ;;  %v2843_v14 = vsel %vm2710_vm12, %v10247_v23, 0.0  ;;  %v2156_v55 = vperm.slane %v2150_v48, %v9198_v27  ;;  %v2100_v60 = vperm.slane %v2094_v57, %v9198_v27  ;;  %v2187_v40 = vrot.slane %v2160_v61, 4 }
 0x465   : > { %v2131_v33 = vrot.slane %v2104_v16, 4 }
 0x466   : > { %v2175_v12 = vrot.slane %v2156_v55, 4 }
 0x46c   : > { %2835 = vadd.xlane.f32.xlu0 %v2834_v39 }
 0x474   : > { %2853 = vadd.xlane.f32.xlu0 %v2852_v18 }
 0x47c   : > { %2841 = vadd.xlane.f32.xlu0 %v2840_v11 }
 0x484   : > { %2844 = vadd.xlane.f32.xlu2 %v2843_v14  ;;  %v2119_v14 = vrot.slane %v2100_v60, 4 }
 0x4a8   : > { %v2818_v1 = vpop.xlane.xlu1 %2817 }
 0x4af   : > { %v2821_v30 = vpop.xlane.xlu0 %2820 }
 0x4b0   : > { %8406 = vrcp.f32 %v2821_v30 }
 0x4b6   : > { %v2824_v59 = vpop.xlane.xlu2 %2823  ;;  %v8407_v56 = vpop.eup %8406 }
 0x4b7   : > { %v2809_v62 = vpop.xlane.xlu0 %2808  ;;  %8408 = vrcp.f32 %v2824_v59  ;;  %v2875_v49 = vmul.f32 %v8407_v56, %v10176_v38 }
 0x4b8   : > { %8410 = vrcp.f32 %v2818_v1 }
 0x4b9   : > { %v2891_v52 = vpack.c.bf16 %v2875_v49, %v2875_v49  ;;  %8412 = vrcp.f32 %v2809_v62 }
 0x4bb   : > { %v2977_v18 = vunpack.c.l.b16 %v2891_v52 }
 0x4bd   : > { %v8409_v17 = vpop.eup %8408 }
 0x4be   : > { %v8411_v4 = vpop.eup %8410  ;;  %v2876_v32 = vmul.f32 %v8409_v17, %v10184_v46  ;;  %v8315_v0 = vpop.permute.xlu2 %8314 }
 0x4bf   : > { %v8317_v38 = vunpack.i.h.bf16 %v8315_v0  ;;  %v8316_v47 = vunpack.i.l.bf16 %v8315_v0  ;;  %v2812_v13 = vpop.xlane.xlu0 %2811  ;;  %v10268_v37 = vmul.f32 %v8411_v4, %v10172_v36  ;;  %v8413_v59 = vpop.eup %8412 }
 0x4c0   : > { %v2892_v43 = vpack.c.bf16 %v2876_v32, %v2876_v32  ;;  %8414 = vrcp.f32 %v2812_v13  ;;  %v2871_v49 = vmul.f32 %v8413_v59, %v10181_v35 }
 0x4c1   : > { %v2161_v39 = vrot.slane %v8317_v38, 4  ;;  %v2164_v63 = vsel %vm1021_vm10, %v8317_v38, %v2163_v21  ;;  %v2105_v58 = vrot.slane %v8316_v47, 4  ;;  %v2108_v11 = vsel %vm1021_vm10, %v8316_v47, %v2107_v54  ;;  %v2827_v21 = vpop.xlane.xlu1 %2826 }
 0x4c2   : > { %v2978_v46 = vunpack.c.l.b16 %v2892_v43  ;;  %v2172_v24 = vperm.slane %v2164_v63, %v9198_v27  ;;  %v2116_v29 = vperm.slane %v2108_v11, %v9198_v27  ;;  %v2890_v62 = vpack.c.bf16 %v10268_v37, %v10268_v37 }
 0x4c3   : > { %v2162_v22 = vsel %vm1021_vm10, %v2161_v39, %v8307_v3  ;;  %v2106_v30 = vsel %vm1021_vm10, %v2105_v58, %v8306_v2  ;;  %v2887_v43 = vpack.c.bf16 %v2871_v49, %v2871_v49  ;;  %8416 = vrcp.f32 %v2827_v21 }
 0x4c4   : > { %v2979_v51 = vpack.c.b16 %v2978_v46, %v2977_v18  ;;  %v2168_v36 = vperm.slane %v2162_v22, %v9198_v27  ;;  %v2185_v50 = vrot.slane %v2172_v24, 4  ;;  %v2188_v1 = vsel %vm1021_vm10, %v2172_v24, %v2187_v40 }
 0x4c5   : > { %v2196_v56 = vperm.slane %v2188_v1, %v9212_v44  ;;  %v2112_v41 = vperm.slane %v2106_v30, %v9198_v27  ;;  %v2129_v45 = vrot.slane %v2116_v29, 4  ;;  %v2132_v4 = vsel %vm1021_vm10, %v2116_v29, %v2131_v33 }
 0x4c6   : > { %v2173_v7 = vrot.slane %v2168_v36, 4  ;;  %v2176_v5 = vsel %vm1021_vm10, %v2168_v36, %v2175_v12  ;;  %v2186_v34 = vsel %vm1021_vm10, %v2185_v50, %v2160_v61  ;;  %6735 = vmatmul.msk.bf16.vlgmr.msra.gmra.mxu2 %vm2710_vm12, %v2979_v51  ;;  %v8415_v13 = vpop.eup %8414  ;;  %v2140_v11 = vperm.slane %v2132_v4, %v9212_v44 }
 0x4c7   : > { %v2184_v48 = vperm.slane %v2176_v5, %v9212_v44  ;;  %v2192_v8 = vperm.slane %v2186_v34, %v9212_v44  ;;  %v2203_v31 = vrot.slane %v2196_v56, 4  ;;  %v2117_v3 = vrot.slane %v2112_v41, 4  ;;  %v2815_v2 = vpop.xlane.xlu0 %2814 }
 0x4c8   : > { %v2174_v57 = vsel %vm1021_vm10, %v2173_v7, %v2156_v55  ;;  %v2120_v17 = vsel %vm1021_vm10, %v2112_v41, %v2119_v14  ;;  %v2130_v35 = vsel %vm1021_vm10, %v2129_v45, %v2104_v16  ;;  %v2872_v14 = vmul.f32 %v8415_v13, %v10191_v53 }
 0x4c9   : > { %v2180_v61 = vperm.slane %v2174_v57, %v9212_v44  ;;  %v2199_v54 = vrot.slane %v2184_v48, 4  ;;  %v2201_v52 = vrot.slane %v2192_v8, 4  ;;  %v2204_v32 = vsel %vm1021_vm10, 0.0, %v2203_v31  ;;  %v8417_v5 = vpop.eup %8416  ;;  %v2833_v57 = vpop.xlane.xlu1 %2832 }
 0x4ca   : > { %v2378_v0 = vsel %vm1021_vm10, %v2203_v31, %v2192_v8  ;;  %v2383_v38 = vrot.slane %v2204_v32, 4  ;;  %v2118_v47 = vsel %vm1021_vm10, %v2117_v3, %v2100_v60  ;;  %v2128_v18 = vperm.slane %v2120_v17, %v9212_v44 }
 0x4cb   : > { %v2197_v55 = vrot.slane %v2180_v61, 4  ;;  %v2200_v12 = vsel %vm1021_vm10, 0.0, %v2199_v54  ;;  %v2202_v40 = vsel %vm1021_vm10, 0.0, %v2201_v52  ;;  %v2367_v33 = vsel %vm1021_vm10, %v2199_v54, %v2180_v61 }
 0x4cc   : > { %v10300_v39 = vperm.slane %v2378_v0, %v9198_v27  ;;  %v2384_v63 = vsel %vm1021_vm10, %v2383_v38, %v2202_v40  ;;  %v10304_v58 = vperm.slane %v2367_v33, %v9198_v27  ;;  %v2372_v60 = vrot.slane %v2200_v12, 4 }
 0x4cd   : > { %v2124_v16 = vperm.slane %v2118_v47, %v9212_v44  ;;  %v2198_v46 = vsel %vm1021_vm10, 0.0, %v2197_v55  ;;  %v2136_v24 = vperm.slane %v2130_v35, %v9212_v44  ;;  %v10313_v22 = vperm.slane %v2384_v63, %v9198_v27 }
 0x4ce   : > { %v2403_v30 = vrot.slane %v10300_v39, 4  ;;  %v2143_v51 = vrot.slane %v2128_v18, 4  ;;  %v2147_v1 = vrot.slane %v2140_v11, 4  ;;  %v2888_v59 = vpack.c.bf16 %v2872_v14, %v2872_v14 }
 0x4cf   : > { %v2141_v29 = vrot.slane %v2124_v16, 4  ;;  %v10316_v36 = vpop.xlane.xlu0 %2847  ;;  %v2145_v50 = vrot.slane %v2136_v24, 4  ;;  %8418 = vrcp.f32 %v2815_v2  ;;  %v2373_v53 = vsel %vm1021_vm10, %v2372_v60, %v2198_v46 }
 0x4d0   : > { %v2144_v41 = vsel %vm1021_vm10, 0.0, %v2143_v51  ;;  %v2313_v7 = vsel %vm1021_vm10, %v2143_v51, %v2124_v16  ;;  %v2148_v45 = vsel %vm1021_vm10, 0.0, %v2147_v1  ;;  %v2921_v31 = vunpack.c.l.b16 %v2887_v43 }
 0x4d1   : > { %v2142_v56 = vsel %vm1021_vm10, 0.0, %v2141_v29  ;;  %v2146_v34 = vsel %vm1021_vm10, 0.0, %v2145_v50  ;;  %v2317_v48 = vperm.slane %v2313_v7, %v9198_v27  ;;  %v2318_v8 = vrot.slane %v2144_v41, 4 }
 0x4d2   : > { %v2324_v3 = vsel %vm1021_vm10, %v2147_v1, %v2136_v24  ;;  %v2329_v2 = vrot.slane %v2148_v45, 4  ;;  %v2922_v49 = vunpack.c.l.b16 %v2888_v59  ;;  %v2377_v61 = vperm.slane %v2373_v53, %v9198_v27  ;;  %v2851_v59 = vpop.xlane.xlu1 %2850 }
 0x4d3   : > { %v2328_v17 = vperm.slane %v2324_v3, %v9198_v27  ;;  %v2319_v4 = vsel %vm1021_vm10, %v2318_v8, %v2142_v56  ;;  %v2337_v21 = vrot.slane %v2317_v48, 4  ;;  %v2391_v0 = vrot.slane %v10304_v58, 4 }
 0x4d4   : > { %v2330_v54 = vsel %vm1021_vm10, %v2329_v2, %v2146_v34  ;;  %v2923_v52 = vpack.c.b16 %v2922_v49, %v2921_v31  ;;  %v2323_v32 = vperm.slane %v2319_v4, %v9198_v27  ;;  %v2877_v47 = vmul.f32 %v8417_v5, %v10193_v20 }
 0x4d5   : > { %v8419_v38 = vpop.eup %8418  ;;  %v2334_v35 = vperm.slane %v2330_v54, %v9198_v27  ;;  %v2349_v13 = vrot.slane %v2328_v17, 4  ;;  %v2404_v55 = vsel %vm1021_vm10, %v10313_v22, %v2403_v30  ;;  %v2392_v43 = vsel %vm1021_vm10, %v2377_v61, %v2391_v0 }
 0x4d6   : > { %v2873_v12 = vmul.f32 %v8419_v38, %v10202_v6  ;;  %6733 = vmatmul.msk.bf16.vlgmr.msrb.gmra.mxu0 %vm2710_vm12, %v2923_v52  ;;  %v2338_v33 = vsel %vm1021_vm10, %v2323_v32, %v2337_v21  ;;  %v2400_v20 = vperm.slane %v2392_v43, %v9212_v44  ;;  %v2412_v16 = vperm.slane %v2404_v55, %v9212_v44 }
 0x4d7   : > { %v2830_v40 = vpop.xlane.xlu0 %2829  ;;  %v2350_v60 = vsel %vm1021_vm10, %v2334_v35, %v2349_v13  ;;  %v2950_v18 = vunpack.c.l.b16 %v2890_v62  ;;  %v2893_v6 = vpack.c.bf16 %v2877_v47, %v2877_v47  ;;  %v2346_v46 = vperm.slane %v2338_v33, %v9212_v44 }
 0x4d8   : > { %8420 = vrcp.f32 %v2830_v40  ;;  %v2889_v63 = vpack.c.bf16 %v2873_v12, %v2873_v12  ;;  %v2358_v24 = vperm.slane %v2350_v60, %v9212_v44  ;;  %v2417_v14 = vrot.slane %v2412_v16, 4 }
 0x4d9   : > { %v2335_v30 = vrot.slane %v2323_v32, 4  ;;  %v2347_v29 = vrot.slane %v2334_v35, 4  ;;  %v2389_v50 = vrot.slane %v2377_v61, 4  ;;  %v3005_v7 = vunpack.c.l.b16 %v2893_v6 }
 0x4da   : > { %v2949_v11 = vunpack.c.l.b16 %v2889_v63  ;;  %v2363_v51 = vrot.slane %v2358_v24, 4  ;;  %v2418_v56 = vsel %vm1021_vm10, %v2417_v14, %v2400_v20  ;;  %8422 = vrcp.f32 %v2833_v57  ;;  %v2839_v60 = vpop.xlane.xlu1 %2838 }
 0x4db   : > { %v2336_v41 = vsel %vm1021_vm10, %v2335_v30, %v2317_v48  ;;  %v2348_v37 = vsel %vm1021_vm10, %v2347_v29, %v2328_v17  ;;  %v2916_v5 = vpack.c.bf16 %v2418_v56, %v2418_v56  ;;  %v2390_v48 = vsel %vm1021_vm10, %v2389_v50, %v10304_v58 }
 0x4dc   : > { %v2951_v1 = vpack.c.b16 %v2950_v18, %v2949_v11  ;;  %v2364_v53 = vsel %vm1021_vm10, %v2363_v51, %v2346_v46  ;;  %v2342_v8 = vperm.slane %v2336_v41, %v9212_v44  ;;  %v2354_v31 = vperm.slane %v2348_v37, %v9212_v44 }
 0x4dd   : > { %v2915_v45 = vpack.c.bf16 %v2364_v53, %v2364_v53  ;;  %v3095_v2 = vunpack.c.l.b16 %v2916_v5  ;;  %v2401_v49 = vrot.slane %v10313_v22, 4  ;;  %8424 = vrcp.f32 %v2851_v59 }
 0x4de   : > { %v8421_v62 = vpop.eup %8420  ;;  %6734 = vmatmul.msk.bf16.vlgmr.msrb.gmra.mxu1 %vm2710_vm12, %v2951_v1  ;;  %v2359_v21 = vrot.slane %v2354_v31, 4  ;;  %v2396_v61 = vperm.slane %v2390_v48, %v9212_v44  ;;  %v2365_v54 = vrot.slane %v2346_v46, 4  ;;  %v2419_v52 = vrot.slane %v2400_v20, 4 }
 0x4df   : > { %v2878_v34 = vmul.f32 %v8421_v62, %v10225_v26  ;;  %v2836_v3 = vpop.xlane.xlu0 %2835  ;;  %v3094_v4 = vunpack.c.l.b16 %v2915_v45  ;;  %v2402_v26 = vsel %vm1021_vm10, %v2401_v49, %v10300_v39  ;;  %v2361_v35 = vrot.slane %v2342_v8, 4 }
 0x4e0   : > { %v2360_v57 = vsel %vm1021_vm10, %v2359_v21, %v2342_v8  ;;  %v2408_v38 = vperm.slane %v2402_v26, %v9212_v44  ;;  %v2366_v22 = vsel %vm1021_vm10, %v2358_v24, %v2365_v54  ;;  %v2420_v47 = vsel %vm1021_vm10, %v2412_v16, %v2419_v52  ;;  %v8423_v39 = vpop.eup %8422 }
 0x4e1   : > { %v2894_v17 = vpack.c.bf16 %v2878_v34, %v2878_v34  ;;  %v3096_v0 = vpack.c.b16 %v3095_v2, %v3094_v4  ;;  %v2911_v58 = vpack.c.bf16 %v2360_v57, %v2360_v57  ;;  %v2917_v12 = vpack.c.bf16 %v2366_v22, %v2366_v22 }
 0x4e2   : > { %v2413_v55 = vrot.slane %v2408_v38, 4  ;;  %v2918_v40 = vpack.c.bf16 %v2420_v47, %v2420_v47  ;;  %v2362_v33 = vsel %vm1021_vm10, %v2354_v31, %v2361_v35  ;;  %v2415_v43 = vrot.slane %v2396_v61, 4 }
 0x4e3   : > { %v3006_v32 = vunpack.c.l.b16 %v2894_v17  ;;  %3108 = vmatpush.bf16.msrb.mxu2 %v3096_v0  ;;  %8426 = vrcp.f32 %v2836_v3  ;;  %v8425_v63 = vpop.eup %8424  ;;  %v3122_v18 = vunpack.c.l.b16 %v2917_v12  ;;  %v2913_v46 = vpack.c.bf16 %v2362_v33, %v2362_v33 }
 0x4e4   : > { %v2414_v20 = vsel %vm1021_vm10, %v2413_v55, %v2396_v61  ;;  %v3123_v6 = vunpack.c.l.b16 %v2918_v40  ;;  %v3038_v11 = vunpack.c.l.b16 %v2911_v58  ;;  %v2416_v14 = vsel %vm1021_vm10, %v2408_v38, %v2415_v43 }
 0x4e5   : > { %v3007_v13 = vpack.c.b16 %v3006_v32, %v3005_v7  ;;  %v2912_v24 = vpack.c.bf16 %v2414_v20, %v2414_v20  ;;  %v2879_v30 = vmul.f32 %v8423_v39, %v10200_v10  ;;  %v2914_v51 = vpack.c.bf16 %v2416_v14, %v2416_v14 }
 0x4e6   : > { %v3124_v29 = vpack.c.b16 %v3123_v6, %v3122_v18  ;;  %v3066_v50 = vunpack.c.l.b16 %v2913_v46  ;;  %v2885_v59 = vmul.f32 %v8425_v63, %v10213_v25 }
 0x4e7   : > { %6736 = vmatmul.msk.bf16.vlgmr.msrb.gmra.mxu3 %vm2710_vm12, %v3007_v13  ;;  %v2854_v16 = vpop.xlane.xlu0 %2853  ;;  %v3039_v1 = vunpack.c.l.b16 %v2912_v24  ;;  %v3067_v56 = vunpack.c.l.b16 %v2914_v51  ;;  %v2895_v62 = vpack.c.bf16 %v2879_v30, %v2879_v30 }
 0x4e8   : > { %8428 = vrcp.f32 %v2854_v16  ;;  %3136 = vmatpush.bf16.msra.mxu3 %v3124_v29  ;;  %v2901_v34 = vpack.c.bf16 %v2885_v59, %v2885_v59 }
 0x4e9   : > { %8430 = vrcp.f32 %v2839_v60  ;;  %v8427_v41 = vpop.eup %8426  ;;  %v3040_v37 = vpack.c.b16 %v3039_v1, %v3038_v11  ;;  %v3068_v7 = vpack.c.b16 %v3067_v56, %v3066_v50  ;;  %v3033_v3 = vunpack.c.l.b16 %v2895_v62 }
 0x4ea   : > { %v2880_v53 = vmul.f32 %v8427_v41, %v10232_v42  ;;  %v3117_v48 = vunpack.c.l.b16 %v2901_v34 }
 0x4eb   : > { %3052 = vmatpush.bf16.msra.mxu0 %v3040_v37  ;;  %3080 = vmatpush.bf16.msra.mxu1 %v3068_v7 }
 0x4ec   : > { %v2896_v10 = vpack.c.bf16 %v2880_v53, %v2880_v53 }
 0x4ee   : > { %v8429_v5 = vpop.eup %8428  ;;  %v3034_v25 = vunpack.c.l.b16 %v2896_v10 }
 0x4ef   : > { %v2886_v45 = vmul.f32 %v8429_v5, %v10237_v19  ;;  %v2842_v8 = vpop.xlane.xlu0 %2841  ;;  %v8431_v31 = vpop.eup %8430 }
 0x4f0   : > { %8432 = vrcp.f32 %v2842_v8  ;;  %v2881_v49 = vmul.f32 %v8431_v31, %v10223_v9  ;;  %v3035_v17 = vpack.c.b16 %v3034_v25, %v3033_v3 }
 0x4f1   : > { %v2902_v2 = vpack.c.bf16 %v2886_v45, %v2886_v45  ;;  %8434 = vrcp.f32 %v10316_v36 }
 0x4f2   : > { %6737 = vmatmul.msk.bf16.vlgmr.msra.gmra.mxu0 %vm2710_vm12, %v3035_v17  ;;  %v2897_v61 = vpack.c.bf16 %v2881_v49, %v2881_v49 }
 0x4f3   : > { %v3118_v42 = vunpack.c.l.b16 %v2902_v2 }
 0x4f4   : > { %v3061_v32 = vunpack.c.l.b16 %v2897_v61 }
 0x4f5   : > { %v3119_v4 = vpack.c.b16 %v3118_v42, %v3117_v48 }
 0x4f6   : > { %v8433_v21 = vpop.eup %8432 }
 0x4f7   : > { %v2882_v19 = vmul.f32 %v8433_v21, %v10243_v15  ;;  %v2845_v26 = vpop.xlane.xlu2 %2844  ;;  %6740 = vmatmul.msk.bf16.vlgmr.msra.gmra.mxu3 %vm2710_vm12, %v3119_v4  ;;  %v8435_v54 = vpop.eup %8434 }
 0x4f8   : > { %8436 = vrcp.f32 %v2845_v26  ;;  %v2884_v36 = vmul.f32 %v8435_v54, %v10211_v28 }
 0x4f9   : > { %v2898_v52 = vpack.c.bf16 %v2882_v19, %v2882_v19 }
 0x4fa   : > { %v2900_v38 = vpack.c.bf16 %v2884_v36, %v2884_v36 }
 0x4fb   : > { %v3062_v0 = vunpack.c.l.b16 %v2898_v52 }
 0x4fc   : > { %v3090_v47 = vunpack.c.l.b16 %v2900_v38 }
 0x4fd   : > { %v3063_v9 = vpack.c.b16 %v3062_v0, %v3061_v32 }
 0x4fe   : > { %v8437_v57 = vpop.eup %8436 }
 0x4ff   : > { %v2883_v58 = vmul.f32 %v8437_v57, %v10247_v23  ;;  %6738 = vmatmul.msk.bf16.vlgmr.msra.gmra.mxu1 %vm2710_vm12, %v3063_v9 }
 0x501   : > { %v2899_v22 = vpack.c.bf16 %v2883_v58, %v2883_v58 }
 0x503   : > { %v3089_v15 = vunpack.c.l.b16 %v2899_v22 }
 0x505   : > { %v3091_v35 = vpack.c.b16 %v3090_v47, %v3089_v15 }
 0x507   : > { %6739 = vmatmul.msk.bf16.vlgmr.msrb.gmra.mxu2 %vm2710_vm12, %v3091_v35 }
 0x549   : > { %v2998_v55 = vpop.f32.mrf.mxu2 }
 0x54a   : > { %v3143_v40 = vrot.slane %v2998_v55, 4 }
 0x551   : > { %v3000_v20 = vpop.f32.mrf.mxu2 }
 0x552   : > { %v3199_v14 = vrot.slane %v3000_v20, 4 }
 0x553   : > { %v2942_v13 = vpop.f32.mrf.mxu0 }
 0x554   : > { %v3145_v12 = vrot.slane %v2942_v13, 4  ;;  %v3144_v33 = vsel %vm1021_vm10, %v3143_v40, %v2942_v13 }
 0x555   : > { %v3150_v60 = vperm.slane %v3144_v33, %v9198_v27 }
 0x556   : > { %v3146_v28 = vsel %vm1021_vm10, %v2998_v55, %v3145_v12 }
 0x557   : > { %v3154_v43 = vperm.slane %v3146_v28, %v9198_v27  ;;  %v3169_v29 = vrot.slane %v3150_v60, 4 }
 0x559   : > { %v3181_v24 = vrot.slane %v3154_v43, 4 }
 0x55b   : > { %v2970_v39 = vpop.f32.mrf.mxu1  ;;  %v2944_v23 = vpop.f32.mrf.mxu0 }
 0x55c   : > { %v3157_v63 = vrot.slane %v2970_v39, 4  ;;  %v3201_v6 = vrot.slane %v2944_v23, 4  ;;  %v3200_v59 = vsel %vm1021_vm10, %v3199_v14, %v2944_v23 }
 0x55d   : > { %v3206_v45 = vperm.slane %v3200_v59, %v9198_v27 }
 0x55e   : > { %v3202_v56 = vsel %vm1021_vm10, %v3000_v20, %v3201_v6 }
 0x55f   : > { %v3210_v8 = vperm.slane %v3202_v56, %v9198_v27  ;;  %v3225_v52 = vrot.slane %v3206_v45, 4 }
 0x561   : > { %v3237_v36 = vrot.slane %v3210_v8, 4 }
 0x563   : > { %v2972_v53 = vpop.f32.mrf.mxu1 }
 0x564   : > { %v3213_v17 = vrot.slane %v2972_v53, 4 }
 0x56a   : > { %v3026_v18 = vpop.f32.mrf.mxu3 }
 0x56b   : > { %v3155_v46 = vrot.slane %v3026_v18, 4  ;;  %v3158_v16 = vsel %vm1021_vm10, %v3026_v18, %v3157_v63 }
 0x56c   : > { %v3166_v11 = vperm.slane %v3158_v16, %v9198_v27 }
 0x56d   : > { %v3156_v30 = vsel %vm1021_vm10, %v3155_v46, %v2970_v39 }
 0x56e   : > { %v3162_v51 = vperm.slane %v3156_v30, %v9198_v27  ;;  %v3179_v50 = vrot.slane %v3166_v11, 4  ;;  %v3182_v1 = vsel %vm1021_vm10, %v3166_v11, %v3181_v24 }
 0x56f   : > { %v3190_v41 = vperm.slane %v3182_v1, %v9212_v44 }
 0x570   : > { %v3167_v37 = vrot.slane %v3162_v51, 4  ;;  %v3170_v62 = vsel %vm1021_vm10, %v3162_v51, %v3169_v29  ;;  %v3180_v7 = vsel %vm1021_vm10, %v3179_v50, %v3154_v43 }
 0x571   : > { %v3178_v5 = vperm.slane %v3170_v62, %v9212_v44  ;;  %v3186_v34 = vperm.slane %v3180_v7, %v9212_v44  ;;  %v3197_v10 = vrot.slane %v3190_v41, 4 }
 0x572   : > { %v3168_v31 = vsel %vm1021_vm10, %v3167_v37, %v3150_v60  ;;  %v3028_v3 = vpop.f32.mrf.mxu3 }
 0x573   : > { %v3174_v25 = vperm.slane %v3168_v31, %v9212_v44  ;;  %v3193_v2 = vrot.slane %v3178_v5, 4  ;;  %v3195_v48 = vrot.slane %v3186_v34, 4  ;;  %v3198_v49 = vsel %vm1021_vm10, 0.0, %v3197_v10 }
 0x574   : > { %v3378_v42 = vsel %vm1021_vm10, %v3197_v10, %v3186_v34  ;;  %v3383_v4 = vrot.slane %v3198_v49, 4  ;;  %v3211_v21 = vrot.slane %v3028_v3, 4  ;;  %v3214_v57 = vsel %vm1021_vm10, %v3028_v3, %v3213_v17 }
 0x575   : > { %v3191_v61 = vrot.slane %v3174_v25, 4  ;;  %v3194_v19 = vsel %vm1021_vm10, 0.0, %v3193_v2  ;;  %v3196_v26 = vsel %vm1021_vm10, 0.0, %v3195_v48  ;;  %v3367_v54 = vsel %vm1021_vm10, %v3193_v2, %v3174_v25  ;;  %v3054_v48 = vpop.f32.mrf.mxu0 }
 0x576   : > { %v3372_v32 = vrot.slane %v3194_v19, 4  ;;  %v3212_v0 = vsel %vm1021_vm10, %v3211_v21, %v2972_v53  ;;  %v10410_v9 = vperm.slane %v3378_v42, %v9198_v27  ;;  %v3384_v22 = vsel %vm1021_vm10, %v3383_v4, %v3196_v26 }
 0x577   : > { %v3218_v38 = vperm.slane %v3212_v0, %v9198_v27  ;;  %v3192_v58 = vsel %vm1021_vm10, 0.0, %v3191_v61  ;;  %v3222_v47 = vperm.slane %v3214_v57, %v9198_v27  ;;  %v3371_v15 = vperm.slane %v3367_v54, %v9198_v27 }
 0x578   : > { %v3373_v35 = vsel %vm1021_vm10, %v3372_v32, %v3192_v58  ;;  %v10424_v23 = vperm.slane %v3384_v22, %v9198_v27  ;;  %v3403_v63 = vrot.slane %v10410_v9, 4  ;;  %v3257_v32 = vrot.slane %v3054_v48, 4 }
 0x579   : > { %v3223_v13 = vrot.slane %v3218_v38, 4  ;;  %v3226_v55 = vsel %vm1021_vm10, %v3218_v38, %v3225_v52  ;;  %v3377_v12 = vperm.slane %v3373_v35, %v9198_v27  ;;  %v3235_v28 = vrot.slane %v3222_v47, 4 }
 0x57a   : > { %v3234_v40 = vperm.slane %v3226_v55, %v9212_v44  ;;  %v3238_v39 = vsel %vm1021_vm10, %v3222_v47, %v3237_v36  ;;  %v3138_v33 = vpop.f32.mrf.mxu3  ;;  %v3391_v43 = vrot.slane %v3371_v15, 4  ;;  %v3401_v35 = vrot.slane %v10424_v23, 4 }
 0x57b   : > { %v3224_v60 = vsel %vm1021_vm10, %v3223_v13, %v3206_v45  ;;  %v3246_v20 = vperm.slane %v3238_v39, %v9212_v44  ;;  %v3236_v6 = vsel %vm1021_vm10, %v3235_v28, %v3210_v8  ;;  %v3267_v16 = vrot.slane %v3138_v33, 4 }
 0x57c   : > { %v3230_v18 = vperm.slane %v3224_v60, %v9212_v44  ;;  %v3249_v46 = vrot.slane %v3234_v40, 4  ;;  %v3082_v24 = vpop.f32.mrf.mxu1  ;;  %v3242_v11 = vperm.slane %v3236_v6, %v9212_v44  ;;  %v3392_v29 = vsel %vm1021_vm10, %v3377_v12, %v3391_v43 }
 0x57d   : > { %v3253_v14 = vrot.slane %v3246_v20, 4  ;;  %v3269_v30 = vrot.slane %v3082_v24, 4  ;;  %v3268_v7 = vsel %vm1021_vm10, %v3267_v16, %v3082_v24  ;;  %v3400_v53 = vperm.slane %v3392_v29, %v9212_v44 }
 0x57e   : > { %v3247_v51 = vrot.slane %v3230_v18, 4  ;;  %v3250_v50 = vsel %vm1021_vm10, 0.0, %v3249_v46  ;;  %v3251_v1 = vrot.slane %v3242_v11, 4  ;;  %v3404_v45 = vsel %vm1021_vm10, %v10424_v23, %v3403_v63 }
 0x57f   : > { %v3254_v59 = vsel %vm1021_vm10, 0.0, %v3253_v14  ;;  %v3426_v56 = vrot.slane %v3250_v50, 4  ;;  %v3432_v41 = vsel %vm1021_vm10, %v3253_v14, %v3242_v11  ;;  %v3270_v34 = vsel %vm1021_vm10, %v3138_v33, %v3269_v30 }
 0x580   : > { %v10437_v37 = vperm.slane %v3432_v41, %v9198_v27  ;;  %v3437_v62 = vrot.slane %v3254_v59, 4  ;;  %v3252_v5 = vsel %vm1021_vm10, 0.0, %v3251_v1  ;;  %v3248_v10 = vsel %vm1021_vm10, 0.0, %v3247_v51 }
 0x581   : > { %v3412_v3 = vperm.slane %v3404_v45, %v9212_v44  ;;  %v3421_v25 = vsel %vm1021_vm10, %v3249_v46, %v3230_v18  ;;  %v3427_v2 = vsel %vm1021_vm10, %v3426_v56, %v3248_v10  ;;  %v10453_v4 = vperm.slane %v3268_v7, %v9198_v27  ;;  %v3056_v7 = vpop.f32.mrf.mxu0 }
 0x582   : > { %v3438_v8 = vsel %vm1021_vm10, %v3437_v62, %v3252_v5  ;;  %v3140_v31 = vpop.f32.mrf.mxu3  ;;  %v3425_v17 = vperm.slane %v3421_v25, %v9198_v27  ;;  %v3431_v42 = vperm.slane %v3427_v2, %v9198_v27  ;;  %v3278_v21 = vperm.slane %v3270_v34, %v9198_v27 }
 0x583   : > { %v3323_v49 = vrot.slane %v3140_v31, 4  ;;  %v3442_v19 = vperm.slane %v3438_v8, %v9198_v27  ;;  %v3457_v26 = vrot.slane %v10437_v37, 4  ;;  %v3417_v54 = vrot.slane %v3412_v3, 4 }
 0x584   : > { %v3084_v61 = vpop.f32.mrf.mxu1  ;;  %v3445_v52 = vrot.slane %v3425_v17, 4  ;;  %v3389_v36 = vrot.slane %v3377_v12, 4  ;;  %v3419_v38 = vrot.slane %v3400_v53, 4  ;;  %v3279_v13 = vrot.slane %v10453_v4, 4 }
 0x585   : > { %v3324_v0 = vsel %vm1021_vm10, %v3323_v49, %v3084_v61  ;;  %v3458_v57 = vsel %vm1021_vm10, %v3442_v19, %v3457_v26  ;;  %v3291_v55 = vrot.slane %v3278_v21, 4  ;;  %v3325_v40 = vrot.slane %v3084_v61, 4 }
 0x586   : > { %v3446_v58 = vsel %vm1021_vm10, %v3431_v42, %v3445_v52  ;;  %v3466_v22 = vperm.slane %v3458_v57, %v9212_v44  ;;  %v3390_v47 = vsel %vm1021_vm10, %v3389_v36, %v3371_v15  ;;  %v10467_v28 = vperm.slane %v3324_v0, %v9198_v27 }
 0x587   : > { %v3454_v12 = vperm.slane %v3446_v58, %v9212_v44  ;;  %v3418_v39 = vsel %vm1021_vm10, %v3417_v54, %v3400_v53  ;;  %v3443_v43 = vrot.slane %v3431_v42, 4  ;;  %v3420_v60 = vsel %vm1021_vm10, %v3412_v3, %v3419_v38 }
 0x588   : > { %v3471_v33 = vrot.slane %v3466_v22, 4  ;;  %v10472_v15 = vperm.slane %v3390_v47, %v9212_v44  ;;  %v3455_v23 = vrot.slane %v3442_v19, 4  ;;  %v3326_v24 = vsel %vm1021_vm10, %v3140_v31, %v3325_v40 }
 0x589   : > { %v3473_v20 = vrot.slane %v3454_v12, 4  ;;  %v3444_v16 = vsel %vm1021_vm10, %v3443_v43, %v3425_v17  ;;  %v3402_v50 = vsel %vm1021_vm10, %v3401_v35, %v10410_v9  ;;  %v3334_v53 = vperm.slane %v3326_v24, %v9198_v27 }
 0x58a   : > { %v3110_v63 = vpop.f32.mrf.mxu2  ;;  %v3472_v18 = vsel %vm1021_vm10, %v3471_v33, %v3454_v12  ;;  %v10484_v1 = vperm.slane %v3444_v16, %v9212_v44  ;;  %v3456_v62 = vsel %vm1021_vm10, %v3455_v23, %v10437_v37  ;;  %v3415_v9 = vrot.slane %v10472_v15, 4 }
 0x58b   : > { %v3255_v6 = vrot.slane %v3110_v63, 4  ;;  %v3258_v46 = vsel %vm1021_vm10, %v3110_v63, %v3257_v32  ;;  %v8323_v11 = vpack.i.bf16 %v3472_v18, %v3418_v39  ;;  %v3474_v30 = vsel %vm1021_vm10, %v3466_v22, %v3473_v20 }
 0x58c   : > { %v3266_v14 = vperm.slane %v3258_v46, %v9198_v27  ;;  %v8328_v51 = vpack.i.bf16 %v3474_v30, %v3420_v60  ;;  %v3469_v34 = vrot.slane %v10484_v1, 4  ;;  %v10499_v31 = vperm.slane %v3456_v62, %v9212_v44 }
 0x58d   : > { %v3256_v29 = vsel %vm1021_vm10, %v3255_v6, %v3054_v48  ;;  %8324 = vrot.lane.b32.xlu0 %v8323_v11, %s8799_s30  ;;  %v10504_v2 = vperm.slane %v3402_v50, %v9212_v44  ;;  %v3313_v48 = vrot.slane %v3056_v7, 4  ;;  %v3335_v49 = vrot.slane %v10467_v28, 4 }
 0x58e   : > { %v3262_v59 = vperm.slane %v3256_v29, %v9198_v27  ;;  %v3292_v56 = vsel %vm1021_vm10, %v3291_v55, %v3266_v14  ;;  %v3293_v41 = vrot.slane %v3266_v14, 4  ;;  %8329 = vrot.lane.b32.xlu2 %v8328_v51, %s8800_s23  ;;  %v3470_v42 = vsel %vm1021_vm10, %v10499_v31, %v3469_v34 }
 0x58f   : > { %v3298_v5 = vperm.slane %v3292_v56, %v9212_v44  ;;  %v3416_v54 = vsel %vm1021_vm10, %v10504_v2, %v3415_v9  ;;  %v3347_v52 = vrot.slane %v3334_v53, 4 }
 0x590   : > { %v3280_v10 = vsel %vm1021_vm10, %v3279_v13, %v3262_v59  ;;  %v3281_v45 = vrot.slane %v3262_v59, 4  ;;  %v3294_v8 = vsel %vm1021_vm10, %v3278_v21, %v3293_v41  ;;  %v8318_v36 = vpack.i.bf16 %v3470_v42, %v3416_v54 }
 0x591   : > { %v3286_v37 = vperm.slane %v3280_v10, %v9212_v44  ;;  %v3302_v3 = vperm.slane %v3294_v8, %v9212_v44  ;;  %v3307_v25 = vrot.slane %v3298_v5, 4 }
 0x592   : > { %v3282_v17 = vsel %vm1021_vm10, %v10453_v4, %v3281_v45  ;;  %v3112_v21 = vpop.f32.mrf.mxu2  ;;  %8319 = vrot.lane.b32.xlu1 %v8318_v36, %s8798_s13 }
 0x593   : > { %v3290_v61 = vperm.slane %v3282_v17, %v9212_v44  ;;  %v3303_v19 = vrot.slane %v3286_v37, 4  ;;  %v3309_v26 = vrot.slane %v3302_v3, 4  ;;  %v3311_v32 = vrot.slane %v3112_v21, 4 }
 0x594   : > { %v3314_v0 = vsel %vm1021_vm10, %v3112_v21, %v3313_v48  ;;  %v3308_v38 = vsel %vm1021_vm10, 0.0, %v3307_v25 }
 0x595   : > { %v3305_v57 = vrot.slane %v3290_v61, 4  ;;  %v3310_v4 = vsel %vm1021_vm10, 0.0, %v3309_v26  ;;  %v3486_v58 = vsel %vm1021_vm10, %v3309_v26, %v3298_v5  ;;  %v3312_v35 = vsel %vm1021_vm10, %v3311_v32, %v3056_v7 }
 0x596   : > { %v10519_v22 = vperm.slane %v3486_v58, %v9198_v27  ;;  %v3491_v47 = vrot.slane %v3310_v4, 4  ;;  %v3322_v13 = vperm.slane %v3314_v0, %v9198_v27  ;;  %v3304_v55 = vsel %vm1021_vm10, 0.0, %v3303_v19 }
 0x597   : > { %v3306_v40 = vsel %vm1021_vm10, 0.0, %v3305_v57  ;;  %v3475_v12 = vsel %vm1021_vm10, %v3305_v57, %v3286_v37  ;;  %v3318_v39 = vperm.slane %v3312_v35, %v9198_v27 }
 0x598   : > { %v3480_v33 = vrot.slane %v3306_v40, 4  ;;  %v3492_v43 = vsel %vm1021_vm10, %v3491_v47, %v3308_v38  ;;  %v3511_v63 = vrot.slane %v10519_v22, 4  ;;  %v3348_v60 = vsel %vm1021_vm10, %v3347_v52, %v3322_v13 }
 0x599   : > { %v3496_v20 = vperm.slane %v3492_v43, %v9198_v27  ;;  %v3336_v23 = vsel %vm1021_vm10, %v3335_v49, %v3318_v39  ;;  %v3337_v18 = vrot.slane %v3318_v39, 4  ;;  %v3349_v6 = vrot.slane %v3322_v13, 4 }
 0x59a   : > { %v3342_v46 = vperm.slane %v3336_v23, %v9212_v44  ;;  %v3354_v16 = vperm.slane %v3348_v60, %v9212_v44  ;;  %v3479_v24 = vperm.slane %v3475_v12, %v9198_v27  ;;  %v3481_v11 = vsel %vm1021_vm10, %v3480_v33, %v3304_v55 }
 0x59b   : > { %v3338_v14 = vsel %vm1021_vm10, %v10467_v28, %v3337_v18  ;;  %v3350_v30 = vsel %vm1021_vm10, %v3334_v53, %v3349_v6  ;;  %v3485_v29 = vperm.slane %v3481_v11, %v9198_v27  ;;  %v3512_v56 = vsel %vm1021_vm10, %v3496_v20, %v3511_v63 }
 0x59c   : > { %v3346_v51 = vperm.slane %v3338_v14, %v9212_v44  ;;  %v3358_v50 = vperm.slane %v3350_v30, %v9212_v44  ;;  %v3363_v59 = vrot.slane %v3354_v16, 4  ;;  %v3359_v41 = vrot.slane %v3342_v46, 4 }
 0x59d   : > { %v3499_v5 = vrot.slane %v3479_v24, 4  ;;  %v3497_v9 = vrot.slane %v3485_v29, 4  ;;  %v3520_v34 = vperm.slane %v3512_v56, %v9212_v44  ;;  %v3509_v36 = vrot.slane %v3496_v20, 4  ;;  %v7831_v56 = vld [vmem:[#allocation10 + $0x10] sm:$0xff] }
 0x59e   : > { %v3361_v62 = vrot.slane %v3346_v51, 4  ;;  %v3365_v7 = vrot.slane %v3358_v50, 4  ;;  %v3364_v53 = vsel %vm1021_vm10, 0.0, %v3363_v59  ;;  %v3360_v48 = vsel %vm1021_vm10, 0.0, %v3359_v41  ;;  %v7834_v51 = vld [vmem:[#allocation10 + $0x28] sm:$0xff]  ;;  %v7833_v50 = vld [vmem:[#allocation10 + $0x20] sm:$0xff] }
 0x59f   : > { %v3500_v49 = vsel %vm1021_vm10, %v3485_v29, %v3499_v5  ;;  %v3498_v42 = vsel %vm1021_vm10, %v3497_v9, %v3479_v24  ;;  %v3525_v0 = vrot.slane %v3520_v34, 4  ;;  %v7835_v29 = vld [vmem:[#allocation10 + $0x30] sm:$0xff]  ;;  %v7832_v59 = vld [vmem:[#allocation10 + $0x18] sm:$0xff]  ;;  %v7830_v41 = vld [vmem:[#allocation10 + $0x8] sm:$0xff]  ;;  %v3467_v5 = vrot.slane %v10499_v31, 4 }
 0x5a0   : > { %v3362_v28 = vsel %vm1021_vm10, 0.0, %v3361_v62  ;;  %v3366_v10 = vsel %vm1021_vm10, 0.0, %v3365_v7  ;;  %v3540_v45 = vsel %vm1021_vm10, %v3365_v7, %v3354_v16  ;;  %v3529_v25 = vsel %vm1021_vm10, %v3361_v62, %v3342_v46  ;;  %v7829_v62 = vld [vmem:[#allocation10] sm:$0xff] }
 0x5a1   : > { %v3534_v8 = vrot.slane %v3362_v28, 4  ;;  %v3544_v37 = vperm.slane %v3540_v45, %v9198_v27  ;;  %v3545_v3 = vrot.slane %v3366_v10, 4  ;;  %v3533_v17 = vperm.slane %v3529_v25, %v9198_v27 }
 0x5a2   : > { %v3508_v32 = vperm.slane %v3500_v49, %v9212_v44  ;;  %v10561_v57 = vperm.slane %v3498_v42, %v9212_v44  ;;  %v3413_v7 = vrot.slane %v10504_v2, 4 }
 0x5a3   : > { %v3546_v21 = vsel %vm1021_vm10, %v3545_v3, %v3364_v53  ;;  %v3535_v61 = vsel %vm1021_vm10, %v3534_v8, %v3360_v48  ;;  %v3565_v19 = vrot.slane %v3544_v37, 4  ;;  %v3553_v52 = vrot.slane %v3533_v17, 4 }
 0x5a4   : > { %v3539_v26 = vperm.slane %v3535_v61, %v9198_v27  ;;  %v3550_v54 = vperm.slane %v3546_v21, %v9198_v27  ;;  %v3510_v27 = vsel %vm1021_vm10, %v3509_v36, %v10519_v22  ;;  %v3523_v39 = vrot.slane %v10561_v57, 4 }
 0x5a5   : > { %v3526_v43 = vsel %vm1021_vm10, %v3525_v0, %v3508_v32  ;;  %v3516_v60 = vperm.slane %v3510_v27, %v9212_v44  ;;  %v3527_v24 = vrot.slane %v3508_v32, 4  ;;  %v3414_v53 = vsel %vm1021_vm10, %v3413_v7, %v10472_v15 }
 0x5a6   : > { %v3554_v38 = vsel %vm1021_vm10, %v3539_v26, %v3553_v52  ;;  %v3566_v4 = vsel %vm1021_vm10, %v3550_v54, %v3565_v19  ;;  %v3551_v58 = vrot.slane %v3539_v26, 4  ;;  %v3563_v47 = vrot.slane %v3550_v54, 4 }
 0x5a7   : > { %v3562_v35 = vperm.slane %v3554_v38, %v9212_v44  ;;  %v3574_v13 = vperm.slane %v3566_v4, %v9212_v44  ;;  %v3524_v18 = vsel %vm1021_vm10, %v3516_v60, %v3523_v39  ;;  %v3528_v14 = vsel %vm1021_vm10, %v3520_v34, %v3527_v24  ;;  %v8350_v39 = vld [vmem:[%s10962_s8] ss:$0 sm:$0xff] }
 0x5a8   : > { %v3552_v55 = vsel %vm1021_vm10, %v3551_v58, %v3533_v17  ;;  %v3564_v40 = vsel %vm1021_vm10, %v3563_v47, %v3544_v37  ;;  %v3468_v3 = vsel %vm1021_vm10, %v3467_v5, %v10484_v1  ;;  %v3521_v19 = vrot.slane %v3516_v60, 4 }
 0x5a9   : > { %v3579_v12 = vrot.slane %v3574_v13, 4  ;;  %v10573_v33 = vperm.slane %v3552_v55, %v9212_v44  ;;  %v3570_v20 = vperm.slane %v3564_v40, %v9212_v44  ;;  %v3581_v16 = vrot.slane %v3562_v35, 4  ;;  %v7836_v44 = vld [vmem:[#allocation10 + $0x38] sm:$0xff] }
 0x5aa   : > { %3715 = vmatpush.bf16.msrb.mxu0 %v7836_v44  ;;  %v3522_v36 = vsel %vm1021_vm10, %v3521_v19, %v10561_v57 }
 0x5ab   : > { %v3580_v63 = vsel %vm1021_vm10, %v3579_v12, %v3562_v35  ;;  %v3577_v22 = vrot.slane %v10573_v33, 4  ;;  %v3582_v11 = vsel %vm1021_vm10, %v3574_v13, %v3581_v16  ;;  %v3575_v1 = vrot.slane %v3570_v20, 4  ;;  %v8456_v16 = vld [vmem:[%s9014_s20 + $0x10] sm:$0xff] }
 0x5ac   : > { %v8333_v23 = vpack.i.bf16 %v3580_v63, %v3526_v43  ;;  %v8343_v30 = vpack.i.bf16 %v3582_v11, %v3528_v14  ;;  %v8454_v63 = vld [vmem:[%s9014_s20] sm:$0xff] }
 0x5ad   : > { %v3578_v6 = vsel %vm1021_vm10, %v3570_v20, %v3577_v22  ;;  %v3576_v32 = vsel %vm1021_vm10, %v3575_v1, %v10573_v33 }
 0x5ae   : > { %8334 = vrot.lane.b32.xlu0 %v8333_v23, %s8799_s30  ;;  %v8338_v46 = vpack.i.bf16 %v3578_v6, %v3524_v18  ;;  %3716 = vmatpush.bf16.msrb.mxu0 %v7835_v29  ;;  %v8455_v23 = vld [vmem:[%s9014_s20 + $0x8] sm:$0xff] }
 0x5b0   : > { %8339 = vrot.lane.b32.xlu1 %v8338_v46, %s8798_s13  ;;  %s11065_s13 = sld [smem:[#allocation43_spill]] }
 0x5b2   : > { %3717 = vmatpush.bf16.msrb.mxu0 %v7834_v51  ;;  %v11057_v51 = vld [vmem:[#allocation23_spill] sm:$0xff] }
 0x5b6   : > { %3718 = vmatpush.bf16.msrb.mxu0 %v7833_v50  ;;  %s6461_s30 = scalar_lea.hbm %s11065_s13, %s8094_s7  ;;  %s8718_s9 = scalar_lea.hbm %s11065_s13, 64 }
 0x5b7   : > { %s6464_s18 = sshll.u32 %s6461_s30, 4  ;;  %s6465_s18 = int_to_ptr.hbm [resolvable:$true] %s6464_s18 }
 0x5b8   : > { %8344 = vrot.lane.b32.xlu1 %v8343_v30, %s8800_s23  ;;  %v8457_v30 = vld [vmem:[%s9014_s20 + $0x18] sm:$0xff]  ;;  %s6462_s23 = sshll.u32 %s10911_s16, 4  ;;  %s8712_s21 = sshra.s32 %s6465_s18, 4  ;;  %s6463_s23 = int_to_ptr.vmem [resolvable:$true] %s6462_s23  ;;  %s8713_s21 = int_to_ptr.hbm [resolvable:$true] %s8712_s21 }
 0x5b9   : > { %s8714_s3 = scalar_lea.hbm %s8713_s21, 32  ;;  %p8719_p12 = scmp.lt.s32.totalorder %s8713_s21, %s11065_s13 }
 0x5ba   : > { %3719 = vmatpush.bf16.msrb.mxu0 %v7832_v59  ;;  %p8715_p1 = scmp.ne.s32.totalorder %s8713_s21, %s8714_s3  ;;  %p8720_p7 = scmp.lt.s32.totalorder %s8718_s9, %s8714_s3 }
 0x5bc   : > { %p8716_p3 = pnand %p8715_p1, %p8977_p5  ;;  %p8721_p8 = por %p8720_p7, %p8719_p12 }
 0x5be   : > { %3720 = vmatpush.bf16.msrb.mxu0 %v7831_v56  ;;  %p8717_p4 = pneg %p8716_p3 }
 0x5c0   : > { %p8722_p9 = pnand %p8721_p8, %p8717_p4 }
 0x5c2   : > { %3721 = vmatpush.bf16.msrb.mxu0 %v7830_v41 }
 0x5c6   : > { %3722 = vmatpush.bf16.msrb.mxu0 %v7829_v62 }
 0x5e8   : > { %v8330_v34 = vpop.permute.xlu2 %8329 }
 0x5e9   : > { %v8332_v25 = vunpack.i.h.bf16 %v8330_v34  ;;  %v8331_v48 = vunpack.i.l.bf16 %v8330_v34 }
 0x5ff   : > { %v8325_v9 = vpop.permute.xlu0 %8324 }
 0x600   : > { %v8327_v8 = vunpack.i.h.bf16 %v8325_v9  ;;  %v8326_v37 = vunpack.i.l.bf16 %v8325_v9 }
 0x604   : > { %v8320_v28 = vpop.permute.xlu1 %8319 }
 0x605   : > { %v8322_v10 = vunpack.i.h.bf16 %v8320_v28  ;;  %v8321_v45 = vunpack.i.l.bf16 %v8320_v28 }
 0x607   : > { %v3631_v2 = vsel %vm2463_vm11, %v3414_v53, %v8321_v45  ;;  %v3632_v31 = vsel %vm2463_vm11, %v3468_v3, %v8322_v10 }
 0x608   : > { %v3636_v49 = vsel %vm3635_vm13, %v3631_v2, %v8326_v37  ;;  %v3637_v17 = vsel %vm3635_vm13, %v3632_v31, %v8327_v8 }
 0x609   : > { %v3641_v15 = vsel %vm3640_vm14, %v3636_v49, %v8331_v48  ;;  %v3642_v42 = vsel %vm3640_vm14, %v3637_v17, %v8332_v25  ;;  %v11058_v25 = vld [vmem:[#allocation24_spill] sm:$0xff] }
 0x60a   : > { %v3645_v21 = vpack.c.bf16 %v3642_v42, %v3641_v15 }
 0x60c   : > { %3723 = vmatmul.bf16.vlgmr.msrb.gmra.mxu0 %v3645_v21 }
 0x620   : > { %v8335_v52 = vpop.permute.xlu0 %8334 }
 0x621   : > { %v8337_v4 = vunpack.i.h.bf16 %v8335_v52  ;;  %v8336_v58 = vunpack.i.l.bf16 %v8335_v52 }
 0x622   : > { %v8340_v61 = vpop.permute.xlu1 %8339 }
 0x623   : > { %v8342_v26 = vunpack.i.h.bf16 %v8340_v61  ;;  %v8341_v54 = vunpack.i.l.bf16 %v8340_v61 }
 0x625   : > { %v3633_v0 = vsel %vm2463_vm11, %v3522_v36, %v8341_v54  ;;  %v3634_v38 = vsel %vm2463_vm11, %v3576_v32, %v8342_v26 }
 0x626   : > { %v3638_v27 = vsel %vm3635_vm13, %v3633_v0, %v8336_v58  ;;  %v3639_v55 = vsel %vm3635_vm13, %v3634_v38, %v8337_v4  ;;  %v7223_v58 = vld [vmem:[#allocation11 + $0x380] sm:$0xf] }
 0x62a   : > { %v8345_v47 = vpop.permute.xlu1 %8344 }
 0x62b   : > { %v8347_v35 = vunpack.i.h.bf16 %v8345_v47  ;;  %v8346_v13 = vunpack.i.l.bf16 %v8345_v47  ;;  %v7957_v47 = vld [vmem:[#allocation11 + $0x3bc] sm:$0xf0] }
 0x62d   : > { %v3643_v57 = vsel %vm3640_vm14, %v3638_v27, %v8346_v13  ;;  %v3644_v40 = vsel %vm3640_vm14, %v3639_v55, %v8347_v35  ;;  %v7949_v35 = vld [vmem:[#allocation11 + $0x384] sm:$0xf]  ;;  %v7224_v55 = vor.u32 %v7957_v47, %v7223_v58  ;;  %v7031_v58 = vld [vmem:[#allocation11 + $0x200] sm:$0xf] }
 0x62e   : > { %v3646_v12 = vpack.c.bf16 %v3644_v40, %v3643_v57  ;;  %v7225_v57 = vld [vmem:[#allocation11 + $0x3c0] sm:$0xf0]  ;;  %v7231_v40 = vld [vmem:[#allocation11 + $0x388] sm:$0xf]  ;;  %v7909_v47 = vld [vmem:[#allocation11 + $0x23c] sm:$0xf0] }
 0x62f   : > { %4704 = vmatpush.bf16.msrb.mxu1 %v7224_v55 }
 0x630   : > { %3728 = vmatmul.bf16.gmra.mxu0 %v3646_v12  ;;  %v7958_v12 = vld [vmem:[#allocation11 + $0x3c4] sm:$0xf0] }
 0x689   : > { %v3724_v33 = vpop.f32.mrf.mxu0 }
 0x68a   : > { %v3725_v43 = vadd.f32 %v8350_v39, %v3724_v33  ;;  %v7232_v33 = vor.u32 %v7958_v12, %v7231_v40  ;;  %v7033_v40 = vld [vmem:[#allocation11 + $0x240] sm:$0xf0]  ;;  %v7039_v12 = vld [vmem:[#allocation11 + $0x208] sm:$0xf] }
 0x68c   : > { %v10613_v60 = vadd.f32 %v8454_v63, %v3725_v43  ;;  %v7950_v43 = vld [vmem:[#allocation11 + $0x38c] sm:$0xf]  ;;  %4742 = vmatpush.bf16.msrb.mxu3 %v7232_v33 }
 0x68d   : > { %v7233_v63 = vld [vmem:[#allocation11 + $0x3c8] sm:$0xf0] }
 0x68e   : > { %3740 = vadd.xlane.f32.xlu0 %v10613_v60 }
 0x691   : > { %v3726_v20 = vpop.f32.mrf.mxu0 }
 0x692   : > { %v3727_v22 = vadd.f32 %v8350_v39, %v3726_v20 }
 0x694   : > { %v10617_v18 = vadd.f32 %v8455_v23, %v3727_v22 }
 0x696   : > { %3742 = vadd.xlane.f32.xlu2 %v10617_v18 }
 0x6ad   : > { %v3729_v6 = vpop.f32.mrf.mxu0 }
 0x6ae   : > { %v3730_v46 = vadd.f32 %v8350_v39, %v3729_v6  ;;  %v7236_v6 = vor.u32 %v7950_v43, %v7233_v63  ;;  %v7910_v63 = vld [vmem:[#allocation11 + $0x244] sm:$0xf0] }
 0x6b0   : > { %v10621_v24 = vadd.f32 %v8456_v16, %v3730_v46  ;;  %v7159_v46 = vld [vmem:[#allocation11 + $0x300] sm:$0xf]  ;;  %4761 = vmatpush.bf16.msra.mxu0 %v7236_v6  ;;  %v7040_v6 = vor.u32 %v7910_v63, %v7039_v12  ;;  %v7878_v12 = vld [vmem:[#allocation11 + $0x144] sm:$0xf0] }
 0x6b1   : > { %v7941_v16 = vld [vmem:[#allocation11 + $0x33c] sm:$0xf0] }
 0x6b2   : > { %3744 = vadd.xlane.f32.xlu1 %v10621_v24 }
 0x6b5   : > { %v3731_v11 = vpop.f32.mrf.mxu0 }
 0x6b6   : > { %v3732_v14 = vadd.f32 %v8350_v39, %v3731_v11  ;;  %v7228_v39 = vor.u32 %v7949_v35, %v7225_v57  ;;  %v7160_v11 = vor.u32 %v7941_v16, %v7159_v46  ;;  %v7901_v35 = vld [vmem:[#allocation11 + $0x204] sm:$0xf]  ;;  %v7032_v57 = vor.u32 %v7909_v47, %v7031_v58  ;;  %v7041_v46 = vld [vmem:[#allocation11 + $0x248] sm:$0xf0]  ;;  %v6967_v16 = vld [vmem:[#allocation11 + $0x180] sm:$0xf] }
 0x6b7   : > { %v7036_v43 = vor.u32 %v7901_v35, %v7033_v40  ;;  %v6903_v47 = vld [vmem:[#allocation11 + $0x100] sm:$0xf]  ;;  %v6911_v40 = vld [vmem:[#allocation11 + $0x108] sm:$0xf] }
 0x6b8   : > { %v10625_v44 = vadd.f32 %v8457_v30, %v3732_v14  ;;  %4723 = vmatpush.bf16.msra.mxu2 %v7228_v39  ;;  %v7933_v14 = vld [vmem:[#allocation11 + $0x304] sm:$0xf]  ;;  %4705 = vmatpush.bf16.msrb.mxu1 %v7160_v11  ;;  %v7893_v11 = vld [vmem:[#allocation11 + $0x1bc] sm:$0xf0] }
 0x6b9   : > { %v7161_v30 = vld [vmem:[#allocation11 + $0x340] sm:$0xf0]  ;;  %v7877_v35 = vld [vmem:[#allocation11 + $0x13c] sm:$0xf0] }
 0x6ba   : > { %3746 = vadd.xlane.f32.xlu0 %v10625_v44 }
 0x701   : > { %v3741_v29 = vpop.xlane.xlu0 %3740 }
 0x702   : > { %v3748_v50 = vmul.f32 %v3741_v29, %v11057_v51  ;;  %v7167_v29 = vld [vmem:[#allocation11 + $0x308] sm:$0xf] }
 0x704   : > { %v10630_v59 = vsub.f32 %v10613_v60, %v3748_v50 }
 0x706   : > { %v3756_v56 = vmul.f32 %v10630_v59, %v10630_v59 }
 0x708   : > { %3760 = vadd.xlane.f32.xlu2 %v3756_v56  ;;  %v7164_v56 = vor.u32 %v7933_v14, %v7161_v30  ;;  %v6968_v30 = vor.u32 %v7893_v11, %v6967_v16 }
 0x709   : > { %v3743_v41 = vpop.xlane.xlu2 %3742 }
 0x70a   : > { %v3749_v62 = vmul.f32 %v3743_v41, %v11057_v51  ;;  %v7942_v41 = vld [vmem:[#allocation11 + $0x344] sm:$0xf0]  ;;  %4724 = vmatpush.bf16.msra.mxu2 %v7164_v56 }
 0x70b   : > { %v6975_v56 = vld [vmem:[#allocation11 + $0x188] sm:$0xf] }
 0x70c   : > { %v10636_v7 = vsub.f32 %v10617_v18, %v3749_v62  ;;  %v7934_v62 = vld [vmem:[#allocation11 + $0x30c] sm:$0xf] }
 0x70e   : > { %v3757_v5 = vmul.f32 %v10636_v7, %v10636_v7 }
 0x710   : > { %3762 = vadd.xlane.f32.xlu1 %v3757_v5  ;;  %v7169_v5 = vld [vmem:[#allocation11 + $0x348] sm:$0xf0] }
 0x725   : > { %v3745_v9 = vpop.xlane.xlu1 %3744 }
 0x726   : > { %v3750_v34 = vmul.f32 %v3745_v9, %v11057_v51 }
 0x728   : > { %v10642_v28 = vsub.f32 %v10621_v24, %v3750_v34  ;;  %v7168_v34 = vor.u32 %v7942_v41, %v7167_v29  ;;  %v7885_v29 = vld [vmem:[#allocation11 + $0x184] sm:$0xf] }
 0x72a   : > { %v3758_v53 = vmul.f32 %v10642_v28, %v10642_v28  ;;  %4743 = vmatpush.bf16.msrb.mxu3 %v7168_v34  ;;  %v7886_v34 = vld [vmem:[#allocation11 + $0x18c] sm:$0xf] }
 0x72c   : > { %3764 = vadd.xlane.f32.xlu0 %v3758_v53  ;;  %v7172_v53 = vor.u32 %v7934_v62, %v7169_v5 }
 0x72d   : > { %v3747_v10 = vpop.xlane.xlu0 %3746 }
 0x72e   : > { %v3751_v45 = vmul.f32 %v3747_v10, %v11057_v51  ;;  %v7095_v10 = vld [vmem:[#allocation11 + $0x280] sm:$0xf]  ;;  %4762 = vmatpush.bf16.msra.mxu0 %v7172_v53  ;;  %v6977_v53 = vld [vmem:[#allocation11 + $0x1c8] sm:$0xf0] }
 0x730   : > { %v10648_v8 = vsub.f32 %v10625_v44, %v3751_v45  ;;  %v7925_v45 = vld [vmem:[#allocation11 + $0x2bc] sm:$0xf0] }
 0x732   : > { %v3759_v37 = vmul.f32 %v10648_v8, %v10648_v8 }
 0x734   : > { %3766 = vadd.xlane.f32.xlu2 %v3759_v37  ;;  %v7917_v37 = vld [vmem:[#allocation11 + $0x284] sm:$0xf] }
 0x77b   : > { %v3761_v3 = vpop.xlane.xlu2 %3760 }
 0x77c   : > { %v3768_v48 = vmul.f32 %v3761_v3, %v11058_v25 }
 0x77e   : > { %8438 = vrsqrt.f32 %v3768_v48  ;;  %vm3779_vm15 = vcmp.eq.f32.partialorder %v3768_v48, inf  ;;  %v3782_v26 = vand.u32 2147483648, %v3768_v48  ;;  %vm3781_vm0 = vcmp.eq.f32.partialorder %v3768_v48, 0.0 }
 0x783   : > { %v3763_v15 = vpop.xlane.xlu1 %3762 }
 0x784   : > { %v8439_v2 = vpop.eup %8438  ;;  %v3769_v21 = vmul.f32 %v3763_v15, %v11058_v25  ;;  %v7926_v15 = vld [vmem:[#allocation11 + $0x2c4] sm:$0xf0] }
 0x785   : > { %v3773_v31 = vmul.f32 %v8439_v2, %v3768_v48 }
 0x786   : > { %8440 = vrsqrt.f32 %v3769_v21  ;;  %vm3791_vm1 = vcmp.eq.f32.partialorder %v3769_v21, inf  ;;  %vm3793_vm2 = vcmp.eq.f32.partialorder %v3769_v21, 0.0  ;;  %v3794_v23 = vand.u32 2147483648, %v3769_v21 }
 0x787   : > { %v3774_v49 = vmul.f32 %v8439_v2, %v3773_v31  ;;  %v7103_v31 = vld [vmem:[#allocation11 + $0x288] sm:$0xf] }
 0x789   : > { %v3775_v17 = vmul.f32 0.5, %v3774_v49 }
 0x78b   : > { %v3776_v42 = vsub.f32 1.5, %v3775_v17 }
 0x78c   : > { %v8441_v54 = vpop.eup %8440 }
 0x78d   : > { %v3777_v61 = vmul.f32 %v8439_v2, %v3776_v42  ;;  %v3785_v36 = vmul.f32 %v8441_v54, %v3769_v21  ;;  %v7097_v2 = vld [vmem:[#allocation11 + $0x2c0] sm:$0xf0]  ;;  %v7918_v42 = vld [vmem:[#allocation11 + $0x28c] sm:$0xf] }
 0x78e   : > { %v7100_v17 = vor.u32 %v7917_v37, %v7097_v2 }
 0x78f   : > { %v3778_v19 = vmul.f32 %v3777_v61, %v3768_v48  ;;  %v3786_v0 = vmul.f32 %v8441_v54, %v3785_v36 }
 0x790   : > { %4725 = vmatpush.bf16.msra.mxu2 %v7100_v17 }
 0x791   : > { %v3780_v1 = vsel %vm3779_vm15, %v3768_v48, %v3778_v19  ;;  %v3787_v38 = vmul.f32 0.5, %v3786_v0  ;;  %v7096_v48 = vor.u32 %v7925_v45, %v7095_v10  ;;  %v7104_v19 = vor.u32 %v7926_v15, %v7103_v31 }
 0x792   : > { %v3783_v52 = vsel %vm3781_vm0, %v3782_v26, %v3780_v1 }
 0x793   : > { %v10654_v32 = vadd.f32 1e-06, %v3783_v52  ;;  %v3788_v4 = vsub.f32 1.5, %v3787_v38  ;;  %4706 = vmatpush.bf16.msrb.mxu1 %v7096_v48  ;;  %4744 = vmatpush.bf16.msrb.mxu3 %v7104_v19  ;;  %v6980_v48 = vor.u32 %v7886_v34, %v6977_v53  ;;  %v7854_v34 = vld [vmem:[#allocation11 + $0x8c] sm:$0xf] }
 0x794   : > { %4726 = vmatpush.bf16.msra.mxu2 %v7036_v43  ;;  %v6849_v53 = vld [vmem:[#allocation11 + $0xc8] sm:$0xf0] }
 0x795   : > { %8442 = vrcp.f32 %v10654_v32  ;;  %v3789_v27 = vmul.f32 %v8441_v54, %v3788_v4  ;;  %vm3829_vm9 = vweird.f32 %v10654_v32 }
 0x797   : > { %v3790_v22 = vmul.f32 %v3789_v27, %v3769_v21  ;;  %4707 = vmatpush.bf16.msrb.mxu1 %v7032_v57  ;;  %4745 = vmatpush.bf16.msrb.mxu3 %v7040_v6  ;;  %v6905_v57 = vld [vmem:[#allocation11 + $0x140] sm:$0xf0] }
 0x799   : > { %v3792_v50 = vsel %vm3791_vm1, %v3769_v21, %v3790_v22  ;;  %v7105_v21 = vld [vmem:[#allocation11 + $0x2c8] sm:$0xf0] }
 0x79a   : > { %v3795_v9 = vsel %vm3793_vm2, %v3794_v23, %v3792_v50  ;;  %v7108_v1 = vor.u32 %v7918_v42, %v7105_v21  ;;  %v7902_v22 = vld [vmem:[#allocation11 + $0x20c] sm:$0xf]  ;;  %v6969_v50 = vld [vmem:[#allocation11 + $0x1c0] sm:$0xf0] }
 0x79b   : > { %v10661_v51 = vpop.eup %8442  ;;  %v10665_v3 = vadd.f32 1e-06, %v3795_v9  ;;  %v6972_v5 = vor.u32 %v7885_v29, %v6969_v50  ;;  %v7894_v9 = vld [vmem:[#allocation11 + $0x1c4] sm:$0xf0]  ;;  %4708 = vmatpush.bf16.msrb.mxu1 %v6968_v30  ;;  %v7853_v50 = vld [vmem:[#allocation11 + $0x84] sm:$0xf] }
 0x79c   : > { %v3825_v49 = vmul.f32 %v10661_v51, %v10654_v32  ;;  %4763 = vmatpush.bf16.msra.mxu0 %v7108_v1  ;;  %vm3830_vm4 = vweird.f32 %v10661_v51  ;;  %v6976_v37 = vor.u32 %v7894_v9, %v6975_v56  ;;  %v6841_v56 = vld [vmem:[#allocation11 + $0xc0] sm:$0xf0]  ;;  %v7862_v9 = vld [vmem:[#allocation11 + $0xc4] sm:$0xf0] }
 0x79d   : > { %v3849_v27 = vand.u32 2147483648, %v10665_v3  ;;  %vm3843_vm6 = vweird.f32 %v10665_v3  ;;  %v3847_v2 = vand.u32 2147483647, %v10665_v3  ;;  %4727 = vmatpush.bf16.msra.mxu2 %v6972_v5  ;;  %vm3831_vm10 = vmor %vm3829_vm9, %vm3830_vm4  ;;  %v6844_v5 = vor.u32 %v7853_v50, %v6841_v56  ;;  %v7111_v50 = vld [vmem:[#allocation11 + $0x290] sm:$0xf] }
 0x79e   : > { %v3826_v54 = vsub.f32 1.0, %v3825_v49  ;;  %v3835_v49 = vand.u32 2147483648, %v10654_v32  ;;  %4746 = vmatpush.bf16.msrb.mxu3 %v6976_v37 }
 0x79f   : > { %v3765_v13 = vpop.xlane.xlu0 %3764  ;;  %vm3848_vm11 = vcmp.eq.f32.partialorder %v3847_v2, 8.507059e+37  ;;  %v6775_v2 = vld [vmem:[#allocation11] sm:$0xf] }
 0x7a0   : > { %v10658_v20 = vmul.f32 %v3765_v13, %v11058_v25  ;;  %v3827_v38 = vmul.f32 %v10661_v51, %v3826_v54 }
 0x7a2   : > { %8444 = vrsqrt.f32 %v10658_v20  ;;  %vm3803_vm3 = vcmp.eq.f32.partialorder %v10658_v20, inf  ;;  %v3828_v41 = vadd.f32 %v10661_v51, %v3827_v38  ;;  %v3806_v45 = vand.u32 2147483648, %v10658_v20  ;;  %v10718_v38 = vld [vmem:[%s11061_s24] ss:$0 sm:$0xff] }
 0x7a3   : > { %8446 = vrcp.f32 %v10665_v3  ;;  %vm3805_vm7 = vcmp.eq.f32.partialorder %v10658_v20, 0.0 }
 0x7a4   : > { %v3832_v1 = vsel %vm3831_vm10, %v10661_v51, %v3828_v41  ;;  %v6847_v41 = vld [vmem:[#allocation11 + $0x88] sm:$0xf] }
 0x7a5   : > { %v6848_v37 = vor.u32 %v7862_v9, %v6847_v41  ;;  %v7919_v9 = vld [vmem:[#allocation11 + $0x294] sm:$0xf] }
 0x7a7   : > { %v3767_v13 = vpop.xlane.xlu2 %3766 }
 0x7a8   : > { %v8445_v61 = vpop.eup %8444  ;;  %v10678_v39 = vmul.f32 %v3767_v13, %v11058_v25  ;;  %v7044_v25 = vor.u32 %v7902_v22, %v7041_v46  ;;  %v7869_v13 = vld [vmem:[#allocation11 + $0x104] sm:$0xf]  ;;  %v6912_v22 = vor.u32 %v7878_v12, %v6911_v40 }
 0x7a9   : > { %v3797_v26 = vmul.f32 %v8445_v61, %v10658_v20  ;;  %v10671_v36 = vpop.eup %8446  ;;  %v6908_v63 = vor.u32 %v7869_v13, %v6905_v57  ;;  %v7887_v57 = vld [vmem:[#allocation11 + $0x194] sm:$0xf] }
 0x7aa   : > { %v3839_v4 = vmul.f32 %v10671_v36, %v10665_v3  ;;  %8448 = vrsqrt.f32 %v10678_v39  ;;  %vm3844_vm5 = vweird.f32 %v10671_v36  ;;  %4764 = vmatpush.bf16.msra.mxu0 %v7044_v25  ;;  %v3833_v3 = vand.u32 2147483647, %v10654_v32  ;;  %v7861_v25 = vld [vmem:[#allocation11 + $0xbc] sm:$0xf0]  ;;  %4747 = vmatpush.bf16.msrb.mxu3 %v6912_v22 }
 0x7ab   : > { %v3798_v52 = vmul.f32 %v8445_v61, %v3797_v26  ;;  %vm10698_vm8 = vmor %vm3843_vm6, %vm3844_vm5  ;;  %v3836_v32 = vor.u32 1.1754944e-38, %v3835_v49  ;;  %vm3815_vm13 = vcmp.eq.f32.partialorder %v10678_v39, inf  ;;  %vm3817_vm14 = vcmp.eq.f32.partialorder %v10678_v39, 0.0  ;;  %4728 = vmatpush.bf16.msra.mxu2 %v6908_v63  ;;  %v7837_v49 = vld [vmem:[#allocation11 + $0x4] sm:$0xf] }
 0x7ac   : > { %v3840_v33 = vsub.f32 1.0, %v3839_v4  ;;  %vm3834_vm12 = vcmp.eq.f32.partialorder %v3833_v3, 8.507059e+37  ;;  %v3818_v16 = vand.u32 2147483648, %v10678_v39  ;;  %v6783_v3 = vld [vmem:[#allocation11 + $0x8] sm:$0xf] }
 0x7ad   : > { %v3799_v0 = vmul.f32 0.5, %v3798_v52  ;;  %v3837_v52 = vsel %vm3834_vm12, %v3836_v32, %v3832_v1  ;;  %v7838_v1 = vld [vmem:[#allocation11 + $0xc] sm:$0xf]  ;;  %v7249_v63 = vld [vmem:[#allocation11 + $0x3d8] sm:$0xf0] }
 0x7ae   : > { %v3841_v14 = vmul.f32 %v10671_v36, %v3840_v33  ;;  %4765 = vmatpush.bf16.msra.mxu0 %v6980_v48  ;;  %v3880_v58 = vmul.f32 %v3837_v52, %v10630_v59  ;;  %v10726_v33 = vld [vmem:[#allocation7] ss:$0 sm:$0xff]  ;;  %v7870_v59 = vld [vmem:[#allocation11 + $0x10c] sm:$0xf]  ;;  %v6852_v48 = vor.u32 %v7854_v34, %v6849_v53  ;;  %4748 = vmatpush.bf16.msrb.mxu3 %v6848_v37  ;;  %v7113_v34 = vld [vmem:[#allocation11 + $0x2d0] sm:$0xf0] }
 0x7af   : > { %v3800_v55 = vsub.f32 1.5, %v3799_v0  ;;  %4729 = vmatpush.bf16.msra.mxu2 %v6844_v5  ;;  %v6785_v32 = vld [vmem:[#allocation11 + $0x48] sm:$0xf0]  ;;  %v7927_v5 = vld [vmem:[#allocation11 + $0x2cc] sm:$0xf0] }
 0x7b0   : > { %v3842_v10 = vadd.f32 %v10671_v36, %v3841_v14  ;;  %v8449_v42 = vpop.eup %8448  ;;  %v6839_v14 = vld [vmem:[#allocation11 + $0x80] sm:$0xf]  ;;  %v3887_v30 = vmul.f32 %v10718_v38, %v3880_v58  ;;  %v7241_v58 = vld [vmem:[#allocation11 + $0x3d0] sm:$0xf0]  ;;  %v7119_v37 = vld [vmem:[#allocation11 + $0x298] sm:$0xf] }
 0x7b1   : > { %v3801_v23 = vmul.f32 %v8445_v61, %v3800_v55  ;;  %v3850_v61 = vor.u32 1.1754944e-38, %v3849_v27  ;;  %v3809_v19 = vmul.f32 %v8449_v42, %v10678_v39  ;;  %v6840_v29 = vor.u32 %v7861_v25, %v6839_v14  ;;  %v7944_v14 = vld [vmem:[#allocation11 + $0x354] sm:$0xf0] }
 0x7b3   : > { %v3802_v62 = vmul.f32 %v3801_v23, %v10658_v20  ;;  %v3810_v54 = vmul.f32 %v8449_v42, %v3809_v19  ;;  %v6913_v23 = vld [vmem:[#allocation11 + $0x148] sm:$0xf0] }
 0x7b4   : > { %v6916_v11 = vor.u32 %v7870_v59, %v6913_v23  ;;  %v7175_v59 = vld [vmem:[#allocation11 + $0x310] sm:$0xf] }
 0x7b5   : > { %v3804_v31 = vsel %vm3803_vm3, %v10658_v20, %v3802_v62  ;;  %v3846_v20 = vsel %vm10698_vm8, %v10671_v36, %v3842_v10  ;;  %v3811_v36 = vmul.f32 0.5, %v3810_v54  ;;  %v7959_v54 = vld [vmem:[#allocation11 + $0x3cc] sm:$0xf0] }
 0x7b6   : > { %v3807_v15 = vsel %vm3805_vm7, %v3806_v45, %v3804_v31  ;;  %v3851_v26 = vsel %vm3848_vm11, %v3850_v61, %v3846_v20  ;;  %4766 = vmatpush.bf16.msra.mxu0 %v6916_v11  ;;  %v7845_v31 = vld [vmem:[#allocation11 + $0x3c] sm:$0xf0]  ;;  %v3894_v20 = vadd.f32 %v10726_v33, %v3887_v30  ;;  %v7943_v23 = vld [vmem:[#allocation11 + $0x34c] sm:$0xf0]  ;;  %v7183_v11 = vld [vmem:[#allocation11 + $0x318] sm:$0xf] }
 0x7b7   : > { %v10707_v21 = vadd.f32 1e-06, %v3807_v15  ;;  %v3881_v0 = vmul.f32 %v3851_v26, %v10636_v7  ;;  %v3812_v4 = vsub.f32 1.5, %v3811_v36  ;;  %v6904_v7 = vor.u32 %v7877_v35, %v6903_v47  ;;  %v7239_v26 = vld [vmem:[#allocation11 + $0x390] sm:$0xf] }
 0x7b8   : > { %v6776_v15 = vor.u32 %v7845_v31, %v6775_v2  ;;  %v7240_v35 = vor.u32 %v7959_v54, %v7239_v26  ;;  %v7936_v30 = vld [vmem:[#allocation11 + $0x31c] sm:$0xf]  ;;  %v7116_v31 = vor.u32 %v7919_v9, %v7113_v34 }
 0x7b9   : > { %8450 = vrcp.f32 %v10707_v21  ;;  %v3813_v55 = vmul.f32 %v8449_v42, %v3812_v4  ;;  %v3888_v43 = vmul.f32 %v10718_v38, %v3881_v0  ;;  %4709 = vmatpush.bf16.msrb.mxu1 %v6904_v7  ;;  %v6777_v42 = vld [vmem:[#allocation11 + $0x40] sm:$0xf0]  ;;  %v6788_v0 = vor.u32 %v7838_v1, %v6785_v32  ;;  %v7951_v4 = vld [vmem:[#allocation11 + $0x394] sm:$0xf]  ;;  %v7872_v9 = vld [vmem:[#allocation11 + $0x11c] sm:$0xf] }
 0x7ba   : > { %v6780_v19 = vor.u32 %v7837_v49, %v6777_v42  ;;  %4767 = vmatpush.bf16.msra.mxu0 %v6852_v48  ;;  %vm3857_vm0 = vweird.f32 %v10707_v21  ;;  %v3861_v47 = vand.u32 2147483647, %v10707_v21  ;;  %v7244_v13 = vor.u32 %v7951_v4, %v7241_v58  ;;  %v7928_v48 = vld [vmem:[#allocation11 + $0x2d4] sm:$0xf0]  ;;  %v7920_v49 = vld [vmem:[#allocation11 + $0x29c] sm:$0xf] }
 0x7bb   : > { %v3814_v46 = vmul.f32 %v3813_v55, %v10678_v39  ;;  %v3895_v10 = vadd.f32 %v10726_v33, %v3888_v43  ;;  %v7960_v55 = vld [vmem:[#allocation11 + $0x3d4] sm:$0xf0]  ;;  %v3863_v40 = vand.u32 2147483648, %v10707_v21  ;;  %v7952_v43 = vld [vmem:[#allocation11 + $0x39c] sm:$0xf]  ;;  %v7120_v1 = vor.u32 %v7928_v48, %v7119_v37 }
 0x7bc   : > { %4730 = vmatpush.bf16.msra.mxu2 %v6780_v19  ;;  %v7252_v22 = vor.u32 %v7952_v43, %v7249_v63  ;;  %vm3862_vm2 = vcmp.eq.f32.partialorder %v3861_v47, 8.507059e+37  ;;  %v7049_v32 = vld [vmem:[#allocation11 + $0x250] sm:$0xf0]  ;;  %v7904_v4 = vld [vmem:[#allocation11 + $0x21c] sm:$0xf] }
 0x7bd   : > { %v3816_v62 = vsel %vm3815_vm13, %v10678_v39, %v3814_v46  ;;  %4710 = vmatpush.bf16.msrb.mxu1 %v6840_v29  ;;  %v7846_v39 = vld [vmem:[#allocation11 + $0x44] sm:$0xf0]  ;;  %v10745_v52 = vpack.c.bf16 %v3895_v10, %v3894_v20  ;;  %v7176_v46 = vor.u32 %v7943_v23, %v7175_v59  ;;  %v7185_v29 = vld [vmem:[#allocation11 + $0x358] sm:$0xf0]  ;;  %v3864_v53 = vor.u32 1.1754944e-38, %v3863_v40 }
 0x7be   : > { %v3819_v45 = vsel %vm3817_vm14, %v3818_v16, %v3816_v62  ;;  %v6784_v36 = vor.u32 %v7846_v39, %v6783_v3  ;;  %4768 = vmatpush.bf16.msra.mxu0 %v6788_v0  ;;  %v7177_v16 = vld [vmem:[#allocation11 + $0x350] sm:$0xf0]  ;;  %v7184_v62 = vor.u32 %v7944_v14, %v7183_v11  ;;  %v7188_v10 = vor.u32 %v7936_v30, %v7185_v29  ;;  %v7047_v3 = vld [vmem:[#allocation11 + $0x210] sm:$0xf]  ;;  %v7912_v0 = vld [vmem:[#allocation11 + $0x254] sm:$0xf0] }
 0x7bf   : > { %v10721_v51 = vpop.eup %8450  ;;  %v10739_v17 = vadd.f32 1e-06, %v3819_v45  ;;  %4731 = vmatmul.bf16.vlgmr.msra.gmra.mxu2 %v10745_v52  ;;  %v7112_v45 = vor.u32 %v7927_v5, %v7111_v50  ;;  %v7911_v20 = vld [vmem:[#allocation11 + $0x24c] sm:$0xf0]  ;;  %v6985_v40 = vld [vmem:[#allocation11 + $0x1d0] sm:$0xf0] }
 0x7c0   : > { %v3853_v27 = vmul.f32 %v10721_v51, %v10707_v21  ;;  %vm3858_vm15 = vweird.f32 %v10721_v51  ;;  %4749 = vmatpush.bf16.msrb.mxu3 %v6784_v36  ;;  %4799 = vmatpush.bf16.msrb.mxu2 %v7244_v13  ;;  %v7048_v54 = vor.u32 %v7911_v20, %v7047_v3  ;;  %v7055_v36 = vld [vmem:[#allocation11 + $0x218] sm:$0xf]  ;;  %v7057_v13 = vld [vmem:[#allocation11 + $0x258] sm:$0xf0]  ;;  %v6919_v14 = vld [vmem:[#allocation11 + $0x110] sm:$0xf] }
 0x7c1   : > { %8452 = vrcp.f32 %v10739_v17  ;;  %4711 = vmatpush.bf16.msrb.mxu1 %v6776_v15  ;;  %vm10752_vm1 = vmor %vm3857_vm0, %vm3858_vm15  ;;  %4769 = vmatmul.bf16.vlgmr.msra.gmra.mxu0 %v10745_v52  ;;  %v7121_v15 = vld [vmem:[#allocation11 + $0x2d8] sm:$0xf0]  ;;  %v3875_v39 = vand.u32 2147483647, %v10739_v17  ;;  %vm3871_vm4 = vweird.f32 %v10739_v17  ;;  %v7896_v59 = vld [vmem:[#allocation11 + $0x1d4] sm:$0xf0] }
 0x7c2   : > { %v3854_v6 = vsub.f32 1.0, %v3853_v27  ;;  %v7247_v27 = vld [vmem:[#allocation11 + $0x398] sm:$0xf]  ;;  %4837 = vmatpush.bf16.msrb.mxu0 %v7252_v22  ;;  %v7124_v26 = vor.u32 %v7920_v49, %v7121_v15  ;;  %v7888_v23 = vld [vmem:[#allocation11 + $0x19c] sm:$0xf] }
 0x7c3   : > { %v7248_v12 = vor.u32 %v7960_v55, %v7247_v27  ;;  %4750 = vmatmul.bf16.vlgmr.msrb.gmra.mxu3 %v10745_v52  ;;  %v6983_v27 = vld [vmem:[#allocation11 + $0x190] sm:$0xf]  ;;  %vm3876_vm6 = vcmp.eq.f32.partialorder %v3875_v39, 8.507059e+37  ;;  %v6991_v22 = vld [vmem:[#allocation11 + $0x198] sm:$0xf] }
 0x7c4   : > { %v3855_v61 = vmul.f32 %v10721_v51, %v3854_v6  ;;  %v7935_v6 = vld [vmem:[#allocation11 + $0x314] sm:$0xf]  ;;  %4712 = vmatmul.bf16.vlgmr.msrb.gmra.mxu1 %v10745_v52  ;;  %v7895_v55 = vld [vmem:[#allocation11 + $0x1cc] sm:$0xf0]  ;;  %v6993_v11 = vld [vmem:[#allocation11 + $0x1d8] sm:$0xf0]  ;;  %v6992_v30 = vor.u32 %v7896_v59, %v6991_v22 }
 0x7c5   : > { %4780 = vmatpush.bf16.msra.mxu1 %v7240_v35  ;;  %v7180_v21 = vor.u32 %v7935_v6, %v7177_v16  ;;  %4818 = vmatpush.bf16.msra.mxu3 %v7248_v12  ;;  %v6984_v63 = vor.u32 %v7895_v55, %v6983_v27  ;;  %v6988_v16 = vor.u32 %v7887_v57, %v6985_v40  ;;  %v7871_v29 = vld [vmem:[#allocation11 + $0x114] sm:$0xf]  ;;  %v7880_v5 = vld [vmem:[#allocation11 + $0x154] sm:$0xf0]  ;;  %v7856_v3 = vld [vmem:[#allocation11 + $0x9c] sm:$0xf] }
 0x7c6   : > { %v3856_v7 = vadd.f32 %v10721_v51, %v3855_v61  ;;  %v7903_v61 = vld [vmem:[#allocation11 + $0x214] sm:$0xf]  ;;  %4838 = vmatpush.bf16.msrb.mxu0 %v7188_v10  ;;  %v6855_v10 = vld [vmem:[#allocation11 + $0x90] sm:$0xf]  ;;  %v6863_v15 = vld [vmem:[#allocation11 + $0x98] sm:$0xf] }
 0x7c7   : > { %v10758_v25 = vpop.eup %8452  ;;  %4800 = vmatpush.bf16.msrb.mxu2 %v7180_v21  ;;  %v7052_v35 = vor.u32 %v7903_v61, %v7049_v32  ;;  %v6921_v50 = vld [vmem:[#allocation11 + $0x150] sm:$0xf0]  ;;  %v6791_v20 = vld [vmem:[#allocation11 + $0x10] sm:$0xf]  ;;  %v7961_v39 = vld [vmem:[#allocation11 + $0x3dc] sm:$0xf0] }
 0x7c8   : > { %v3860_v56 = vsel %vm10752_vm1, %v10721_v51, %v3856_v7  ;;  %v3867_v41 = vmul.f32 %v10758_v25, %v10739_v17  ;;  %v3877_v51 = vand.u32 2147483648, %v10739_v17  ;;  %vm3872_vm3 = vweird.f32 %v10758_v25  ;;  %v7847_v61 = vld [vmem:[#allocation11 + $0x4c] sm:$0xf0]  ;;  %v7953_v27 = vld [vmem:[#allocation11 + $0x3a4] sm:$0xf] }
 0x7c9   : > { %4781 = vmatpush.bf16.msra.mxu1 %v7176_v46  ;;  %v3865_v42 = vsel %vm3862_vm2, %v3864_v53, %v3860_v56  ;;  %4819 = vmatpush.bf16.msra.mxu3 %v7184_v62  ;;  %vm3873_vm5 = vmor %vm3871_vm4, %vm3872_vm3  ;;  %v7060_v17 = vor.u32 %v7904_v4, %v7057_v13  ;;  %v6996_v56 = vor.u32 %v7888_v23, %v6993_v11  ;;  %v6927_v62 = vld [vmem:[#allocation11 + $0x118] sm:$0xf]  ;;  %v6929_v53 = vld [vmem:[#allocation11 + $0x158] sm:$0xf0] }
 0x7ca   : > { %v3868_v2 = vsub.f32 1.0, %v3867_v41  ;;  %v3882_v58 = vmul.f32 %v3865_v42, %v10642_v28  ;;  %v3878_v7 = vor.u32 1.1754944e-38, %v3877_v51  ;;  %v7056_v28 = vor.u32 %v7912_v0, %v7055_v36  ;;  %4839 = vmatpush.bf16.msrb.mxu0 %v7124_v26  ;;  %v6857_v51 = vld [vmem:[#allocation11 + $0xd0] sm:$0xf0]  ;;  %v7864_v42 = vld [vmem:[#allocation11 + $0xd4] sm:$0xf0] }
 0x7cb   : > { %4801 = vmatpush.bf16.msrb.mxu2 %v7116_v31  ;;  %v6924_v37 = vor.u32 %v7871_v29, %v6921_v50  ;;  %v6928_v48 = vor.u32 %v7880_v5, %v6927_v62  ;;  %v6932_v31 = vor.u32 %v7872_v9, %v6929_v53  ;;  %v6864_v32 = vor.u32 %v7864_v42, %v6863_v15  ;;  %v7839_v26 = vld [vmem:[#allocation11 + $0x14] sm:$0xf]  ;;  %v6799_v36 = vld [vmem:[#allocation11 + $0x18] sm:$0xf]  ;;  %v7257_v55 = vld [vmem:[#allocation11 + $0x3e0] sm:$0xf0] }
 0x7cc   : > { %v3869_v19 = vmul.f32 %v10758_v25, %v3868_v2  ;;  %v3889_v6 = vmul.f32 %v10718_v38, %v3882_v58  ;;  %v7855_v2 = vld [vmem:[#allocation11 + $0x94] sm:$0xf]  ;;  %v6792_v4 = vor.u32 %v7847_v61, %v6791_v20  ;;  %v7848_v58 = vld [vmem:[#allocation11 + $0x54] sm:$0xf0]  ;;  %v7962_v57 = vld [vmem:[#allocation11 + $0x3e4] sm:$0xf0]  ;;  %v7260_v59 = vor.u32 %v7953_v27, %v7257_v55 }
 0x7cd   : > { %4782 = vmatpush.bf16.msra.mxu1 %v7112_v45  ;;  %4820 = vmatpush.bf16.msra.mxu3 %v7120_v1  ;;  %v7863_v45 = vld [vmem:[#allocation11 + $0xcc] sm:$0xf0]  ;;  %v6860_v1 = vor.u32 %v7855_v2, %v6857_v51  ;;  %v7954_v40 = vld [vmem:[#allocation11 + $0x3ac] sm:$0xf]  ;;  %v7127_v50 = vld [vmem:[#allocation11 + $0x2a0] sm:$0xf] }
 0x7ce   : > { %v3870_v47 = vadd.f32 %v10758_v25, %v3869_v19  ;;  %4840 = vmatpush.bf16.msrb.mxu0 %v7060_v17  ;;  %v6856_v49 = vor.u32 %v7863_v45, %v6855_v10  ;;  %v7255_v19 = vld [vmem:[#allocation11 + $0x3a0] sm:$0xf]  ;;  %v7201_v29 = vld [vmem:[#allocation11 + $0x368] sm:$0xf0]  ;;  %v7129_v62 = vld [vmem:[#allocation11 + $0x2e0] sm:$0xf0] }
 0x7cf   : > { %4802 = vmatpush.bf16.msrb.mxu2 %v7052_v35  ;;  %v6801_v35 = vld [vmem:[#allocation11 + $0x58] sm:$0xf0]  ;;  %v7256_v13 = vor.u32 %v7961_v39, %v7255_v19  ;;  %v7191_v17 = vld [vmem:[#allocation11 + $0x320] sm:$0xf]  ;;  %v7922_v45 = vld [vmem:[#allocation11 + $0x2ac] sm:$0xf] }
 0x7d0   : > { %v3874_v12 = vsel %vm3873_vm5, %v10758_v25, %v3870_v47  ;;  %v7879_v25 = vld [vmem:[#allocation11 + $0x14c] sm:$0xf0]  ;;  %v7840_v47 = vld [vmem:[#allocation11 + $0x1c] sm:$0xf]  ;;  %v7913_v2 = vld [vmem:[#allocation11 + $0x25c] sm:$0xf0] }
 0x7d1   : > { %v3879_v43 = vsel %vm3876_vm6, %v3878_v7, %v3874_v12  ;;  %4783 = vmatpush.bf16.msra.mxu1 %v7048_v54  ;;  %4821 = vmatpush.bf16.msra.mxu3 %v7056_v28  ;;  %v6920_v41 = vor.u32 %v7879_v25, %v6919_v14  ;;  %v6793_v54 = vld [vmem:[#allocation11 + $0x50] sm:$0xf0]  ;;  %v7263_v7 = vld [vmem:[#allocation11 + $0x3a8] sm:$0xf]  ;;  %v7265_v12 = vld [vmem:[#allocation11 + $0x3e8] sm:$0xf0]  ;;  %v6804_v22 = vor.u32 %v7840_v47, %v6801_v35 }
 0x7d2   : > { %v3883_v46 = vmul.f32 %v3879_v43, %v10648_v8  ;;  %v3896_v8 = vadd.f32 %v10726_v33, %v3889_v6  ;;  %4841 = vmatpush.bf16.msrb.mxu0 %v6996_v56  ;;  %v6796_v28 = vor.u32 %v7839_v26, %v6793_v54  ;;  %v6800_v43 = vor.u32 %v7848_v58, %v6799_v36  ;;  %v7199_v14 = vld [vmem:[#allocation11 + $0x328] sm:$0xf]  ;;  %v7929_v56 = vld [vmem:[#allocation11 + $0x2dc] sm:$0xf0]  ;;  %v7905_v51 = vld [vmem:[#allocation11 + $0x224] sm:$0xf] }
 0x7d3   : > { %4803 = vmatpush.bf16.msrb.mxu2 %v6988_v16  ;;  %v7264_v23 = vor.u32 %v7962_v57, %v7263_v7  ;;  %v7268_v6 = vor.u32 %v7954_v40, %v7265_v12  ;;  %v7193_v16 = vld [vmem:[#allocation11 + $0x360] sm:$0xf0]  ;;  %v7946_v25 = vld [vmem:[#allocation11 + $0x364] sm:$0xf0]  ;;  %v7128_v53 = vor.u32 %v7929_v56, %v7127_v50  ;;  %v7906_v61 = vld [vmem:[#allocation11 + $0x22c] sm:$0xf] }
 0x7d4   : > { %v3890_v21 = vmul.f32 %v10718_v38, %v3883_v46  ;;  %v7937_v46 = vld [vmem:[#allocation11 + $0x324] sm:$0xf]  ;;  %v7200_v5 = vor.u32 %v7946_v25, %v7199_v14  ;;  %v7071_v42 = vld [vmem:[#allocation11 + $0x228] sm:$0xf]  ;;  %v7073_v19 = vld [vmem:[#allocation11 + $0x268] sm:$0xf0] }
 0x7d5   : > { %4784 = vmatpush.bf16.msra.mxu1 %v6984_v63  ;;  %4822 = vmatpush.bf16.msra.mxu3 %v6992_v30  ;;  %v7945_v63 = vld [vmem:[#allocation11 + $0x35c] sm:$0xf0]  ;;  %v7938_v30 = vld [vmem:[#allocation11 + $0x32c] sm:$0xf]  ;;  %v7001_v26 = vld [vmem:[#allocation11 + $0x1e0] sm:$0xf0]  ;;  %v7076_v36 = vor.u32 %v7906_v61, %v7073_v19 }
 0x7d6   : > { %v3897_v34 = vadd.f32 %v10726_v33, %v3890_v21  ;;  %v6865_v33 = vld [vmem:[#allocation11 + $0xd8] sm:$0xf0]  ;;  %4842 = vmatpush.bf16.msrb.mxu0 %v6932_v31  ;;  %v7192_v11 = vor.u32 %v7945_v63, %v7191_v17  ;;  %v7196_v21 = vor.u32 %v7937_v46, %v7193_v16  ;;  %v7204_v9 = vor.u32 %v7938_v30, %v7201_v29  ;;  %v7065_v31 = vld [vmem:[#allocation11 + $0x260] sm:$0xf0]  ;;  %v6999_v39 = vld [vmem:[#allocation11 + $0x1a0] sm:$0xf] }
 0x7d7   : > { %4804 = vmatpush.bf16.msrb.mxu2 %v6924_v37  ;;  %v6868_v0 = vor.u32 %v7856_v3, %v6865_v33  ;;  %v7137_v37 = vld [vmem:[#allocation11 + $0x2e8] sm:$0xf0]  ;;  %v7914_v3 = vld [vmem:[#allocation11 + $0x264] sm:$0xf0]  ;;  %v7068_v20 = vor.u32 %v7905_v51, %v7065_v31  ;;  %v6935_v27 = vld [vmem:[#allocation11 + $0x120] sm:$0xf] }
 0x7d8   : > { %v10783_v38 = vpack.c.bf16 %v3897_v34, %v3896_v8  ;;  %v7135_v8 = vld [vmem:[#allocation11 + $0x2a8] sm:$0xf]  ;;  %v7140_v15 = vor.u32 %v7922_v45, %v7137_v37  ;;  %v7072_v54 = vor.u32 %v7914_v3, %v7071_v42  ;;  %v7890_v35 = vld [vmem:[#allocation11 + $0x1ac] sm:$0xf]  ;;  %v7881_v55 = vld [vmem:[#allocation11 + $0x15c] sm:$0xf0] }
 0x7d9   : > { %4785 = vmatpush.bf16.msra.mxu1 %v6920_v41  ;;  %4823 = vmatpush.bf16.msra.mxu3 %v6928_v48  ;;  %v7921_v41 = vld [vmem:[#allocation11 + $0x2a4] sm:$0xf]  ;;  %v7930_v34 = vld [vmem:[#allocation11 + $0x2e4] sm:$0xf0]  ;;  %v7063_v48 = vld [vmem:[#allocation11 + $0x220] sm:$0xf]  ;;  %v6936_v17 = vor.u32 %v7881_v55, %v6935_v27 }
 0x7da   : > { %4717 = vmatmul.bf16.gmra.mxu1 %v10783_v38  ;;  %4736 = vmatmul.bf16.gmra.mxu2 %v10783_v38  ;;  %v7132_v10 = vor.u32 %v7921_v41, %v7129_v62  ;;  %v7064_v33 = vor.u32 %v7913_v2, %v7063_v48  ;;  %v7873_v7 = vld [vmem:[#allocation11 + $0x124] sm:$0xf]  ;;  %v6879_v25 = vld [vmem:[#allocation11 + $0xa8] sm:$0xf]  ;;  %v7858_v30 = vld [vmem:[#allocation11 + $0xac] sm:$0xf] }
 0x7db   : > { %4755 = vmatmul.bf16.gmra.mxu3 %v10783_v38  ;;  %4774 = vmatmul.bf16.gmra.mxu0 %v10783_v38  ;;  %v6937_v57 = vld [vmem:[#allocation11 + $0x160] sm:$0xf0]  ;;  %v6881_v56 = vld [vmem:[#allocation11 + $0xe8] sm:$0xf0]  ;;  %v6807_v41 = vld [vmem:[#allocation11 + $0x20] sm:$0xf] }
 0x7dc   : > { %4805 = vmatpush.bf16.msrb.mxu2 %v6860_v1  ;;  %4843 = vmatpush.bf16.msrb.mxu0 %v6868_v0  ;;  %v7897_v1 = vld [vmem:[#allocation11 + $0x1dc] sm:$0xf0]  ;;  %v7007_v0 = vld [vmem:[#allocation11 + $0x1a8] sm:$0xf]  ;;  %v6940_v63 = vor.u32 %v7873_v7, %v6937_v57  ;;  %v7857_v46 = vld [vmem:[#allocation11 + $0xa4] sm:$0xf]  ;;  %v6884_v37 = vor.u32 %v7858_v30, %v6881_v56 }
 0x7dd   : > { %4786 = vmatpush.bf16.msra.mxu1 %v6856_v49  ;;  %4824 = vmatpush.bf16.msra.mxu3 %v6864_v32  ;;  %v7136_v49 = vor.u32 %v7930_v34, %v7135_v8  ;;  %v7889_v32 = vld [vmem:[#allocation11 + $0x1a4] sm:$0xf]  ;;  %v7000_v58 = vor.u32 %v7897_v1, %v6999_v39  ;;  %v7849_v62 = vld [vmem:[#allocation11 + $0x5c] sm:$0xf0]  ;;  %v7271_v8 = vld [vmem:[#allocation11 + $0x3b0] sm:$0xf] }
 0x7de   : > { %v7004_v47 = vor.u32 %v7889_v32, %v7001_v26  ;;  %v6873_v16 = vld [vmem:[#allocation11 + $0xe0] sm:$0xf0]  ;;  %v7963_v34 = vld [vmem:[#allocation11 + $0x3ec] sm:$0xf0]  ;;  %v6815_v48 = vld [vmem:[#allocation11 + $0x28] sm:$0xf]  ;;  %v6808_v31 = vor.u32 %v7849_v62, %v6807_v41 }
 0x7df   : > { %v6876_v50 = vor.u32 %v7857_v46, %v6873_v16  ;;  %v7850_v2 = vld [vmem:[#allocation11 + $0x64] sm:$0xf0]  ;;  %v7842_v51 = vld [vmem:[#allocation11 + $0x2c] sm:$0xf]  ;;  %v7279_v42 = vld [vmem:[#allocation11 + $0x3b8] sm:$0xf] }
 0x7e0   : > { %4806 = vmatpush.bf16.msrb.mxu2 %v6796_v28  ;;  %4844 = vmatpush.bf16.msrb.mxu0 %v6804_v22  ;;  %v6943_v28 = vld [vmem:[#allocation11 + $0x128] sm:$0xf]  ;;  %v7874_v22 = vld [vmem:[#allocation11 + $0x12c] sm:$0xf]  ;;  %v7964_v3 = vld [vmem:[#allocation11 + $0x3f4] sm:$0xf0] }
 0x7e1   : > { %4787 = vmatpush.bf16.msra.mxu1 %v6792_v4  ;;  %4825 = vmatpush.bf16.msra.mxu3 %v6800_v43  ;;  %v7898_v4 = vld [vmem:[#allocation11 + $0x1e4] sm:$0xf0]  ;;  %v7956_v61 = vld [vmem:[#allocation11 + $0x3bc] sm:$0xf]  ;;  %v7207_v39 = vld [vmem:[#allocation11 + $0x330] sm:$0xf] }
 0x7e2   : > { %v7008_v40 = vor.u32 %v7898_v4, %v7007_v0  ;;  %v7882_v43 = vld [vmem:[#allocation11 + $0x164] sm:$0xf0]  ;;  %v7281_v19 = vld [vmem:[#allocation11 + $0x3f8] sm:$0xf0]  ;;  %v7947_v1 = vld [vmem:[#allocation11 + $0x36c] sm:$0xf0]  ;;  %v7280_v0 = vor.u32 %v7964_v3, %v7279_v42 }
 0x7e3   : > { %v7939_v32 = vld [vmem:[#allocation11 + $0x334] sm:$0xf]  ;;  %v7284_v4 = vor.u32 %v7956_v61, %v7281_v19  ;;  %v7940_v27 = vld [vmem:[#allocation11 + $0x33c] sm:$0xf]  ;;  %v7143_v7 = vld [vmem:[#allocation11 + $0x2b0] sm:$0xf] }
 0x7e4   : > { %4875 = vmatpush.bf16.msra.mxu2 %v7260_v59  ;;  %4913 = vmatpush.bf16.msra.mxu0 %v7268_v6  ;;  %v6945_v59 = vld [vmem:[#allocation11 + $0x168] sm:$0xf0]  ;;  %v7865_v6 = vld [vmem:[#allocation11 + $0xdc] sm:$0xf0]  ;;  %v7209_v26 = vld [vmem:[#allocation11 + $0x370] sm:$0xf0] }
 0x7e5   : > { %4856 = vmatpush.bf16.msrb.mxu1 %v7256_v13  ;;  %4894 = vmatpush.bf16.msrb.mxu3 %v7264_v23  ;;  %v7009_v13 = vld [vmem:[#allocation11 + $0x1e8] sm:$0xf0]  ;;  %v6871_v23 = vld [vmem:[#allocation11 + $0xa0] sm:$0xf]  ;;  %v6948_v14 = vor.u32 %v7874_v22, %v6945_v59  ;;  %v7217_v55 = vld [vmem:[#allocation11 + $0x378] sm:$0xf0] }
 0x7e6   : > { %v7012_v12 = vor.u32 %v7890_v35, %v7009_v13  ;;  %v6872_v29 = vor.u32 %v7865_v6, %v6871_v23  ;;  %v7212_v35 = vor.u32 %v7939_v32, %v7209_v26  ;;  %v7948_v13 = vld [vmem:[#allocation11 + $0x374] sm:$0xf0]  ;;  %v7931_v57 = vld [vmem:[#allocation11 + $0x2ec] sm:$0xf0]  ;;  %v7924_v22 = vld [vmem:[#allocation11 + $0x2bc] sm:$0xf] }
 0x7e7   : > { %v7153_v59 = vld [vmem:[#allocation11 + $0x2f8] sm:$0xf0]  ;;  %v7144_v23 = vor.u32 %v7931_v57, %v7143_v7  ;;  %v7079_v46 = vld [vmem:[#allocation11 + $0x230] sm:$0xf]  ;;  %v7087_v30 = vld [vmem:[#allocation11 + $0x238] sm:$0xf] }
 0x7e8   : > { %4876 = vmatpush.bf16.msra.mxu2 %v7196_v21  ;;  %4914 = vmatpush.bf16.msra.mxu0 %v7204_v9  ;;  %v7866_v21 = vld [vmem:[#allocation11 + $0xe4] sm:$0xf0]  ;;  %v6809_v9 = vld [vmem:[#allocation11 + $0x60] sm:$0xf0]  ;;  %v7915_v16 = vld [vmem:[#allocation11 + $0x26c] sm:$0xf0] }
 0x7e9   : > { %4857 = vmatpush.bf16.msrb.mxu1 %v7192_v11  ;;  %4895 = vmatpush.bf16.msrb.mxu3 %v7200_v5  ;;  %v6944_v11 = vor.u32 %v7882_v43, %v6943_v28  ;;  %v7841_v5 = vld [vmem:[#allocation11 + $0x24] sm:$0xf]  ;;  %v6880_v45 = vor.u32 %v7866_v21, %v6879_v25  ;;  %v7923_v28 = vld [vmem:[#allocation11 + $0x2b4] sm:$0xf]  ;;  %v7089_v56 = vld [vmem:[#allocation11 + $0x278] sm:$0xf0]  ;;  %v7080_v41 = vor.u32 %v7915_v16, %v7079_v46 }
 0x7ea   : > { %4788 = vmatmul.bf16.vlgmr.msra.gmra.mxu1 %v10745_v52  ;;  %4807 = vmatmul.bf16.vlgmr.msrb.gmra.mxu2 %v10745_v52  ;;  %v7145_v43 = vld [vmem:[#allocation11 + $0x2f0] sm:$0xf0]  ;;  %v6959_v61 = vld [vmem:[#allocation11 + $0x138] sm:$0xf] }
 0x7eb   : > { %4826 = vmatmul.bf16.vlgmr.msra.gmra.mxu3 %v10745_v52  ;;  %4845 = vmatmul.bf16.vlgmr.msrb.gmra.mxu0 %v10745_v52  ;;  %v7148_v6 = vor.u32 %v7923_v28, %v7145_v43  ;;  %v7907_v25 = vld [vmem:[#allocation11 + $0x234] sm:$0xf]  ;;  %v7884_v19 = vld [vmem:[#allocation11 + $0x174] sm:$0xf0] }
 0x7ec   : > { %4877 = vmatpush.bf16.msra.mxu2 %v7132_v10  ;;  %4915 = vmatpush.bf16.msra.mxu0 %v7140_v15  ;;  %v7273_v10 = vld [vmem:[#allocation11 + $0x3f0] sm:$0xf0]  ;;  %v6817_v15 = vld [vmem:[#allocation11 + $0x68] sm:$0xf0] }
 0x7ed   : > { %4858 = vmatpush.bf16.msrb.mxu1 %v7128_v53  ;;  %4896 = vmatpush.bf16.msrb.mxu3 %v7136_v49  ;;  %v7955_v53 = vld [vmem:[#allocation11 + $0x3b4] sm:$0xf]  ;;  %v6812_v49 = vor.u32 %v7841_v5, %v6809_v9  ;;  %v7015_v5 = vld [vmem:[#allocation11 + $0x1b0] sm:$0xf] }
 0x7ee   : > { %v7081_v21 = vld [vmem:[#allocation11 + $0x270] sm:$0xf0]  ;;  %v7899_v9 = vld [vmem:[#allocation11 + $0x1ec] sm:$0xf0] }
 0x7ef   : > { %v7084_v62 = vor.u32 %v7907_v25, %v7081_v21  ;;  %v7972_v25 = vld [vmem:[#allocation14 + $0x38] sm:$0xff] }
 0x7f0   : > { %4878 = vmatpush.bf16.msra.mxu2 %v7068_v20  ;;  %4916 = vmatpush.bf16.msra.mxu0 %v7076_v36  ;;  %v7276_v20 = vor.u32 %v7955_v53, %v7273_v10  ;;  %v6820_v36 = vor.u32 %v7842_v51, %v6817_v15  ;;  %v7891_v53 = vld [vmem:[#allocation11 + $0x1b4] sm:$0xf]  ;;  %v7016_v51 = vor.u32 %v7899_v9, %v7015_v5  ;;  %v7883_v15 = vld [vmem:[#allocation11 + $0x16c] sm:$0xf0]  ;;  %v7980_v21 = vld [vmem:[#allocation14 + $0x78] sm:$0xff] }
 0x7f1   : > { %4859 = vmatpush.bf16.msrb.mxu1 %v7064_v33  ;;  %4897 = vmatpush.bf16.msrb.mxu3 %v7072_v54  ;;  %v7272_v33 = vor.u32 %v7963_v34, %v7271_v8  ;;  %v6816_v54 = vor.u32 %v7850_v2, %v6815_v48  ;;  %v7017_v10 = vld [vmem:[#allocation11 + $0x1f0] sm:$0xf0]  ;;  %v7892_v48 = vld [vmem:[#allocation11 + $0x1bc] sm:$0xf] }
 0x7f2   : > { %v7025_v2 = vld [vmem:[#allocation11 + $0x1f8] sm:$0xf0] }
 0x7f3   : > { %v7028_v3 = vor.u32 %v7892_v48, %v7025_v2  ;;  %v7970_v5 = vld [vmem:[#allocation14 + $0x28] sm:$0xff]  ;;  %v7968_v48 = vld [vmem:[#allocation14 + $0x18] sm:$0xff] }
 0x7f4   : > { %4879 = vmatpush.bf16.msra.mxu2 %v7004_v47  ;;  %4917 = vmatpush.bf16.msra.mxu0 %v7012_v12  ;;  %v7208_v47 = vor.u32 %v7947_v1, %v7207_v39  ;;  %v7220_v12 = vor.u32 %v7940_v27, %v7217_v55  ;;  %v7876_v39 = vld [vmem:[#allocation11 + $0x13c] sm:$0xf]  ;;  %v7976_v2 = vld [vmem:[#allocation14 + $0x58] sm:$0xff] }
 0x7f5   : > { %4860 = vmatpush.bf16.msrb.mxu1 %v7000_v58  ;;  %4898 = vmatpush.bf16.msrb.mxu3 %v7008_v40  ;;  %v7215_v58 = vld [vmem:[#allocation11 + $0x338] sm:$0xf]  ;;  %v6961_v1 = vld [vmem:[#allocation11 + $0x178] sm:$0xf0] }
 0x7f6   : > { %v7216_v40 = vor.u32 %v7948_v13, %v7215_v58  ;;  %v7859_v58 = vld [vmem:[#allocation11 + $0xb4] sm:$0xf]  ;;  %v7868_v13 = vld [vmem:[#allocation11 + $0xf4] sm:$0xf0]  ;;  %v7860_v27 = vld [vmem:[#allocation11 + $0xbc] sm:$0xf] }
 0x7f7   : > { %v6897_v55 = vld [vmem:[#allocation11 + $0xf8] sm:$0xf0] }
 0x7f8   : > { %4880 = vmatpush.bf16.msra.mxu2 %v6940_v63  ;;  %4918 = vmatpush.bf16.msra.mxu0 %v6948_v14  ;;  %v7932_v63 = vld [vmem:[#allocation11 + $0x2f4] sm:$0xf0]  ;;  %v7156_v14 = vor.u32 %v7924_v22, %v7153_v59  ;;  %v6900_v43 = vor.u32 %v7860_v27, %v6897_v55  ;;  %v8019_v27 = vld [vmem:[#allocation14 + $0x1b0] sm:$0xff] }
 0x7f9   : > { %4861 = vmatpush.bf16.msrb.mxu1 %v6936_v17  ;;  %4899 = vmatpush.bf16.msrb.mxu3 %v6944_v11  ;;  %v7151_v17 = vld [vmem:[#allocation11 + $0x2b8] sm:$0xf] }
 0x7fa   : > { %4793 = vmatmul.bf16.gmra.mxu1 %v10783_v38  ;;  %4812 = vmatmul.bf16.gmra.mxu2 %v10783_v38  ;;  %v7152_v11 = vor.u32 %v7932_v63, %v7151_v17  ;;  %v7843_v17 = vld [vmem:[#allocation11 + $0x34] sm:$0xf]  ;;  %v6831_v22 = vld [vmem:[#allocation11 + $0x38] sm:$0xf] }
 0x7fb   : > { %4831 = vmatmul.bf16.gmra.mxu3 %v10783_v38  ;;  %4850 = vmatmul.bf16.gmra.mxu0 %v10783_v38  ;;  %v6825_v63 = vld [vmem:[#allocation11 + $0x70] sm:$0xf0]  ;;  %v7852_v59 = vld [vmem:[#allocation11 + $0x74] sm:$0xf0] }
 0x7fc   : > { %4881 = vmatpush.bf16.msra.mxu2 %v6876_v50  ;;  %4919 = vmatpush.bf16.msra.mxu0 %v6884_v37  ;;  %v7908_v50 = vld [vmem:[#allocation11 + $0x23c] sm:$0xf]  ;;  %v7900_v37 = vld [vmem:[#allocation11 + $0x1f4] sm:$0xf0]  ;;  %v6828_v16 = vor.u32 %v7843_v17, %v6825_v63 }
 0x7fd   : > { %4862 = vmatpush.bf16.msrb.mxu1 %v6872_v29  ;;  %4900 = vmatpush.bf16.msrb.mxu3 %v6880_v45  ;;  %v7916_v29 = vld [vmem:[#allocation11 + $0x274] sm:$0xf0]  ;;  %v7092_v34 = vor.u32 %v7908_v50, %v7089_v56  ;;  %v7971_v50 = vld [vmem:[#allocation14 + $0x30] sm:$0xff] }
 0x7fe   : > { %v7088_v8 = vor.u32 %v7916_v29, %v7087_v30  ;;  %v7023_v45 = vld [vmem:[#allocation11 + $0x1b8] sm:$0xf]  ;;  %v7988_v30 = vld [vmem:[#allocation14 + $0xb8] sm:$0xff]  ;;  %v7979_v56 = vld [vmem:[#allocation14 + $0x70] sm:$0xff] }
 0x7ff   : > { %v7024_v42 = vor.u32 %v7900_v37, %v7023_v45  ;;  %v7996_v29 = vld [vmem:[#allocation14 + $0xf8] sm:$0xff]  ;;  %v7978_v9 = vld [vmem:[#allocation14 + $0x68] sm:$0xff]  ;;  %v7985_v45 = vld [vmem:[#allocation14 + $0xa0] sm:$0xff] }
 0x800   : > { %4882 = vmatpush.bf16.msra.mxu2 %v6812_v49  ;;  %4920 = vmatpush.bf16.msra.mxu0 %v6820_v36  ;;  %v6951_v49 = vld [vmem:[#allocation11 + $0x130] sm:$0xf] }
 0x801   : > { %4863 = vmatpush.bf16.msrb.mxu1 %v6808_v31  ;;  %4901 = vmatpush.bf16.msrb.mxu3 %v6816_v54  ;;  %v7020_v31 = vor.u32 %v7891_v53, %v7017_v10  ;;  %v6952_v32 = vor.u32 %v7883_v15, %v6951_v49  ;;  %v6887_v54 = vld [vmem:[#allocation11 + $0xb0] sm:$0xf]  ;;  %v7975_v49 = vld [vmem:[#allocation14 + $0x50] sm:$0xff] }
 0x802   : > { %v7867_v36 = vld [vmem:[#allocation11 + $0xec] sm:$0xf0]  ;;  %v7983_v15 = vld [vmem:[#allocation14 + $0x90] sm:$0xff] }
 0x803   : > { %v6888_v7 = vor.u32 %v7867_v36, %v6887_v54  ;;  %v7969_v53 = vld [vmem:[#allocation14 + $0x20] sm:$0xff]  ;;  %v8028_v54 = vld [vmem:[#allocation14 + $0x1f8] sm:$0xff] }
 0x804   : > { %4951 = vmatpush.bf16.msrb.mxu2 %v7276_v20  ;;  %4989 = vmatpush.bf16.msrb.mxu0 %v7284_v4  ;;  %v6953_v20 = vld [vmem:[#allocation11 + $0x170] sm:$0xf0]  ;;  %v6964_v4 = vor.u32 %v7876_v39, %v6961_v1  ;;  %v8004_v1 = vld [vmem:[#allocation14 + $0x138] sm:$0xff] }
 0x805   : > { %4932 = vmatpush.bf16.msra.mxu1 %v7272_v33  ;;  %4970 = vmatpush.bf16.msra.mxu3 %v7280_v0  ;;  %v7875_v33 = vld [vmem:[#allocation11 + $0x134] sm:$0xf]  ;;  %v6960_v0 = vor.u32 %v7884_v19, %v6959_v61  ;;  %v7990_v61 = vld [vmem:[#allocation14 + $0xc8] sm:$0xff]  ;;  %v8012_v36 = vld [vmem:[#allocation14 + $0x178] sm:$0xff] }
 0x806   : > { %v6956_v26 = vor.u32 %v7875_v33, %v6953_v20  ;;  %v7977_v10 = vld [vmem:[#allocation14 + $0x60] sm:$0xff]  ;;  %v7974_v33 = vld [vmem:[#allocation14 + $0x48] sm:$0xff] }
 0x807   : > { %v7993_v37 = vld [vmem:[#allocation14 + $0xe0] sm:$0xff]  ;;  %v7982_v20 = vld [vmem:[#allocation14 + $0x88] sm:$0xff] }
 0x808   : > { %4952 = vmatpush.bf16.msrb.mxu2 %v7212_v35  ;;  %4990 = vmatpush.bf16.msrb.mxu0 %v7220_v12  ;;  %v6895_v35 = vld [vmem:[#allocation11 + $0xb8] sm:$0xf]  ;;  %v7851_v12 = vld [vmem:[#allocation11 + $0x6c] sm:$0xf0] }
 0x809   : > { %4933 = vmatpush.bf16.msra.mxu1 %v7208_v47  ;;  %4971 = vmatpush.bf16.msra.mxu3 %v7216_v40  ;;  %v6889_v47 = vld [vmem:[#allocation11 + $0xf0] sm:$0xf0]  ;;  %v6823_v40 = vld [vmem:[#allocation11 + $0x30] sm:$0xf]  ;;  %v6896_v28 = vor.u32 %v7868_v13, %v6895_v35  ;;  %v8027_v13 = vld [vmem:[#allocation14 + $0x1f0] sm:$0xff] }
 0x80a   : > { %4864 = vmatmul.bf16.vlgmr.msrb.gmra.mxu1 %v10745_v52  ;;  %4883 = vmatmul.bf16.vlgmr.msra.gmra.mxu2 %v10745_v52  ;;  %v6892_v57 = vor.u32 %v7859_v58, %v6889_v47  ;;  %v6824_v46 = vor.u32 %v7851_v12, %v6823_v40  ;;  %v7965_v19 = vld [vmem:[#allocation14] sm:$0xff]  ;;  %v8011_v47 = vld [vmem:[#allocation14 + $0x170] sm:$0xff]  ;;  %v8026_v40 = vld [vmem:[#allocation14 + $0x1e8] sm:$0xff] }
 0x80b   : > { %4902 = vmatmul.bf16.vlgmr.msrb.gmra.mxu3 %v10745_v52  ;;  %4921 = vmatmul.bf16.vlgmr.msra.gmra.mxu0 %v10745_v52  ;;  %v7973_v39 = vld [vmem:[#allocation14 + $0x40] sm:$0xff]  ;;  %v8010_v12 = vld [vmem:[#allocation14 + $0x168] sm:$0xff] }
 0x80c   : > { %4953 = vmatpush.bf16.msrb.mxu2 %v7148_v6  ;;  %4991 = vmatpush.bf16.msrb.mxu0 %v7156_v14  ;;  %v6833_v6 = vld [vmem:[#allocation11 + $0x78] sm:$0xf0] }
 0x80d   : > { %4934 = vmatpush.bf16.msra.mxu1 %v7144_v23  ;;  %4972 = vmatpush.bf16.msra.mxu3 %v7152_v11  ;;  %v7844_v23 = vld [vmem:[#allocation11 + $0x3c] sm:$0xf]  ;;  %v6832_v11 = vor.u32 %v7852_v59, %v6831_v22  ;;  %v8001_v22 = vld [vmem:[#allocation14 + $0x120] sm:$0xff] }
 0x80e   : > { %v6836_v14 = vor.u32 %v7844_v23, %v6833_v6  ;;  %v8009_v23 = vld [vmem:[#allocation14 + $0x160] sm:$0xff] }
 0x810   : > { %4954 = vmatpush.bf16.msrb.mxu2 %v7084_v62  ;;  %4992 = vmatpush.bf16.msrb.mxu0 %v7092_v34  ;;  %v7995_v62 = vld [vmem:[#allocation14 + $0xf0] sm:$0xff]  ;;  %v7994_v34 = vld [vmem:[#allocation14 + $0xe8] sm:$0xff] }
 0x811   : > { %4935 = vmatpush.bf16.msra.mxu1 %v7080_v41  ;;  %4973 = vmatpush.bf16.msra.mxu3 %v7088_v8  ;;  %v7987_v41 = vld [vmem:[#allocation14 + $0xb0] sm:$0xff]  ;;  %v7986_v8 = vld [vmem:[#allocation14 + $0xa8] sm:$0xff] }
 0x814   : > { %4955 = vmatpush.bf16.msrb.mxu2 %v7020_v31  ;;  %4993 = vmatpush.bf16.msrb.mxu0 %v7028_v3  ;;  %v7992_v31 = vld [vmem:[#allocation14 + $0xd8] sm:$0xff]  ;;  %v7966_v3 = vld [vmem:[#allocation14 + $0x8] sm:$0xff] }
 0x815   : > { %4936 = vmatpush.bf16.msra.mxu1 %v7016_v51  ;;  %4974 = vmatpush.bf16.msra.mxu3 %v7024_v42  ;;  %v7984_v51 = vld [vmem:[#allocation14 + $0x98] sm:$0xff]  ;;  %v7991_v42 = vld [vmem:[#allocation14 + $0xd0] sm:$0xff] }
 0x818   : > { %4956 = vmatpush.bf16.msrb.mxu2 %v6956_v26  ;;  %4994 = vmatpush.bf16.msrb.mxu0 %v6964_v4  ;;  %v7989_v26 = vld [vmem:[#allocation14 + $0xc0] sm:$0xff]  ;;  %v10813_v4 = vld [vmem:[#allocation13] sm:$0xff] }
 0x819   : > { %4937 = vmatpush.bf16.msra.mxu1 %v6952_v32  ;;  %4975 = vmatpush.bf16.msra.mxu3 %v6960_v0  ;;  %v7981_v32 = vld [vmem:[#allocation14 + $0x80] sm:$0xff]  ;;  %v8020_v0 = vld [vmem:[#allocation14 + $0x1b8] sm:$0xff]  ;;  %v10816_v55 = vperm.slane %v10813_v4, 0 }
 0x81a   : > { %4869 = vmatmul.bf16.gmra.mxu1 %v10783_v38  ;;  %4888 = vmatmul.bf16.gmra.mxu2 %v10783_v38 }
 0x81b   : > { %4907 = vmatmul.bf16.gmra.mxu3 %v10783_v38  ;;  %4926 = vmatmul.bf16.gmra.mxu0 %v10783_v38 }
 0x81c   : > { %4957 = vmatpush.bf16.msrb.mxu2 %v6892_v57  ;;  %4995 = vmatpush.bf16.msrb.mxu0 %v6900_v43  ;;  %v10819_v57 = vperm.slane %v10813_v4, 3 }
 0x81d   : > { %4938 = vmatpush.bf16.msra.mxu1 %v6888_v7  ;;  %4976 = vmatpush.bf16.msra.mxu3 %v6896_v28  ;;  %v8002_v7 = vld [vmem:[#allocation14 + $0x128] sm:$0xff] }
 0x81e   : > { %v8018_v28 = vld [vmem:[#allocation14 + $0x1a8] sm:$0xff] }
 0x820   : > { %4958 = vmatpush.bf16.msrb.mxu2 %v6828_v16  ;;  %4996 = vmatpush.bf16.msrb.mxu0 %v6836_v14  ;;  %v10825_v16 = vperm.slane %v10813_v4, 1 }
 0x821   : > { %4939 = vmatpush.bf16.msra.mxu1 %v6824_v46  ;;  %4977 = vmatpush.bf16.msra.mxu3 %v6832_v11  ;;  %v10828_v11 = vperm.slane %v10813_v4, 2 }
 0x824   : > { %6147 = vmatpush.bf16.msra.mxu2 %v7980_v21  ;;  %6185 = vmatpush.bf16.msra.mxu0 %v7996_v29  ;;  %v8017_v21 = vld [vmem:[#allocation14 + $0x1a0] sm:$0xff] }
 0x825   : > { %6128 = vmatpush.bf16.msrb.mxu1 %v7972_v25  ;;  %6166 = vmatpush.bf16.msrb.mxu3 %v7988_v30  ;;  %v8025_v25 = vld [vmem:[#allocation14 + $0x1e0] sm:$0xff] }
 0x828   : > { %6148 = vmatpush.bf16.msra.mxu2 %v7979_v56  ;;  %6186 = vmatpush.bf16.msra.mxu0 %v7995_v62  ;;  %v8000_v56 = vld [vmem:[#allocation14 + $0x118] sm:$0xff] }
 0x829   : > { %6129 = vmatpush.bf16.msrb.mxu1 %v7971_v50  ;;  %6167 = vmatpush.bf16.msrb.mxu3 %v7987_v41 }
 0x82a   : > { %4940 = vmatmul.bf16.vlgmr.msra.gmra.mxu1 %v10745_v52  ;;  %4959 = vmatmul.bf16.vlgmr.msrb.gmra.mxu2 %v10745_v52 }
 0x82b   : > { %4978 = vmatmul.bf16.vlgmr.msra.gmra.mxu3 %v10745_v52  ;;  %4997 = vmatmul.bf16.vlgmr.msrb.gmra.mxu0 %v10745_v52  ;;  %v7967_v52 = vld [vmem:[#allocation14 + $0x10] sm:$0xff] }
 0x82c   : > { %6149 = vmatpush.bf16.msra.mxu2 %v7978_v9  ;;  %6187 = vmatpush.bf16.msra.mxu0 %v7994_v34  ;;  %v8024_v34 = vld [vmem:[#allocation14 + $0x1d8] sm:$0xff] }
 0x82d   : > { %6130 = vmatpush.bf16.msrb.mxu1 %v7970_v5  ;;  %6168 = vmatpush.bf16.msrb.mxu3 %v7986_v8 }
 0x830   : > { %6150 = vmatpush.bf16.msra.mxu2 %v7977_v10  ;;  %6188 = vmatpush.bf16.msra.mxu0 %v7993_v37  ;;  %v8016_v10 = vld [vmem:[#allocation14 + $0x198] sm:$0xff] }
 0x831   : > { %6131 = vmatpush.bf16.msrb.mxu1 %v7969_v53  ;;  %6169 = vmatpush.bf16.msrb.mxu3 %v7985_v45  ;;  %v8008_v53 = vld [vmem:[#allocation14 + $0x158] sm:$0xff] }
 0x834   : > { %6151 = vmatpush.bf16.msra.mxu2 %v7976_v2  ;;  %6189 = vmatpush.bf16.msra.mxu0 %v7992_v31  ;;  %v7999_v31 = vld [vmem:[#allocation14 + $0x110] sm:$0xff] }
 0x835   : > { %6132 = vmatpush.bf16.msrb.mxu1 %v7968_v48  ;;  %6170 = vmatpush.bf16.msrb.mxu3 %v7984_v51 }
 0x838   : > { %6152 = vmatpush.bf16.msra.mxu2 %v7975_v49  ;;  %6190 = vmatpush.bf16.msra.mxu0 %v7991_v42 }
 0x839   : > { %6133 = vmatpush.bf16.msrb.mxu1 %v7967_v52  ;;  %6171 = vmatpush.bf16.msrb.mxu3 %v7983_v15 }
 0x83a   : > { %4945 = vmatmul.bf16.gmra.mxu1 %v10783_v38  ;;  %4964 = vmatmul.bf16.gmra.mxu2 %v10783_v38 }
 0x83b   : > { %4983 = vmatmul.bf16.gmra.mxu3 %v10783_v38  ;;  %5002 = vmatmul.bf16.gmra.mxu0 %v10783_v38  ;;  %v8003_v38 = vld [vmem:[#allocation14 + $0x130] sm:$0xff] }
 0x83c   : > { %6153 = vmatpush.bf16.msra.mxu2 %v7974_v33  ;;  %6191 = vmatpush.bf16.msra.mxu0 %v7990_v61  ;;  %v8023_v33 = vld [vmem:[#allocation14 + $0x1d0] sm:$0xff] }
 0x83d   : > { %6134 = vmatpush.bf16.msrb.mxu1 %v7966_v3  ;;  %6172 = vmatpush.bf16.msrb.mxu3 %v7982_v20  ;;  %v8007_v3 = vld [vmem:[#allocation14 + $0x150] sm:$0xff] }
 0x83e   : > { %v4770_v35 = vpop.f32.mrf.mxu0  ;;  %v8015_v20 = vld [vmem:[#allocation14 + $0x190] sm:$0xff] }
 0x83f   : > { %v4771_v6 = vadd.f32 %v4770_v35, %v10819_v57 }
 0x840   : > { %6154 = vmatpush.bf16.msra.mxu2 %v7973_v39  ;;  %6192 = vmatpush.bf16.msra.mxu0 %v7989_v26  ;;  %v8022_v26 = vld [vmem:[#allocation14 + $0x1c8] sm:$0xff] }
 0x841   : > { %6135 = vmatpush.bf16.msrb.mxu1 %v7965_v19  ;;  %v4713_v58 = vpop.f32.mrf.mxu1  ;;  %6173 = vmatpush.bf16.msrb.mxu3 %v7981_v32  ;;  %v5011_v41 = vmax.f32 %v4771_v6, 0.0 }
 0x842   : > { %v4714_v43 = vadd.f32 %v4713_v58, %v10816_v55  ;;  %v4732_v17 = vpop.f32.mrf.mxu2 }
 0x843   : > { %v4733_v9 = vadd.f32 %v4732_v17, %v10825_v16 }
 0x844   : > { %6223 = vmatpush.bf16.msrb.mxu2 %v8012_v36  ;;  %6261 = vmatpush.bf16.msrb.mxu0 %v8028_v54  ;;  %v5008_v30 = vmax.f32 %v4714_v43, 0.0  ;;  %v7997_v54 = vld [vmem:[#allocation14 + $0x100] sm:$0xff]  ;;  %v8006_v36 = vld [vmem:[#allocation14 + $0x148] sm:$0xff] }
 0x845   : > { %6204 = vmatpush.bf16.msra.mxu1 %v8004_v1  ;;  %6242 = vmatpush.bf16.msra.mxu3 %v8020_v0  ;;  %v5009_v52 = vmax.f32 %v4733_v9, 0.0  ;;  %v7998_v1 = vld [vmem:[#allocation14 + $0x108] sm:$0xff] }
 0x846   : > { %v4751_v63 = vpop.f32.mrf.mxu3  ;;  %v4772_v14 = vpop.f32.mrf.mxu0  ;;  %v8014_v0 = vld [vmem:[#allocation14 + $0x188] sm:$0xff] }
 0x847   : > { %v4773_v50 = vadd.f32 %v4772_v14, %v10819_v57  ;;  %v4752_v8 = vadd.f32 %v4751_v63, %v10828_v11  ;;  %v8035_v63 = vld [vmem:[#allocation14 + $0x230] sm:$0xff] }
 0x848   : > { %6224 = vmatpush.bf16.msrb.mxu2 %v8011_v47  ;;  %6262 = vmatpush.bf16.msrb.mxu0 %v8027_v13  ;;  %v8005_v47 = vld [vmem:[#allocation14 + $0x140] sm:$0xff] }
 0x849   : > { %6205 = vmatpush.bf16.msra.mxu1 %v8003_v38  ;;  %6243 = vmatpush.bf16.msra.mxu3 %v8019_v27  ;;  %v4715_v59 = vpop.f32.mrf.mxu1  ;;  %v5027_v5 = vmax.f32 %v4773_v50, 0.0  ;;  %v5010_v49 = vmax.f32 %v4752_v8, 0.0  ;;  %v8036_v38 = vld [vmem:[#allocation14 + $0x238] sm:$0xff]  ;;  %v8021_v27 = vld [vmem:[#allocation14 + $0x1c0] sm:$0xff]  ;;  %v8034_v50 = vld [vmem:[#allocation14 + $0x228] sm:$0xff] }
 0x84a   : > { %v4716_v46 = vadd.f32 %v4715_v59, %v10816_v55  ;;  %v4734_v37 = vpop.f32.mrf.mxu2  ;;  %v8044_v59 = vld [vmem:[#allocation14 + $0x278] sm:$0xff] }
 0x84b   : > { %v5075_v45 = vpack.c.bf16 %v5027_v5, %v5011_v41  ;;  %v4735_v2 = vadd.f32 %v4734_v37, %v10825_v16  ;;  %v8058_v37 = vld [vmem:[#allocation14 + $0x2e8] sm:$0xff] }
 0x84c   : > { %6225 = vmatpush.bf16.msrb.mxu2 %v8010_v12  ;;  %6263 = vmatpush.bf16.msrb.mxu0 %v8026_v40  ;;  %v5024_v29 = vmax.f32 %v4716_v46, 0.0 }
 0x84d   : > { %6206 = vmatpush.bf16.msra.mxu1 %v8002_v7  ;;  %6244 = vmatpush.bf16.msra.mxu3 %v8018_v28  ;;  %v5025_v15 = vmax.f32 %v4735_v2, 0.0  ;;  %v8013_v7 = vld [vmem:[#allocation14 + $0x180] sm:$0xff]  ;;  %v8060_v28 = vld [vmem:[#allocation14 + $0x2f8] sm:$0xff] }
 0x84e   : > { %v5072_v62 = vpack.c.bf16 %v5024_v29, %v5008_v30  ;;  %v4753_v48 = vpop.f32.mrf.mxu3  ;;  %6193 = vmatmul.bf16.vlgmr.msra.gmra.mxu0 %v5075_v45  ;;  %v8059_v29 = vld [vmem:[#allocation14 + $0x2f0] sm:$0xff] }
 0x84f   : > { %v4754_v51 = vadd.f32 %v4753_v48, %v10828_v11  ;;  %v5073_v61 = vpack.c.bf16 %v5025_v15, %v5009_v52 }
 0x850   : > { %6226 = vmatpush.bf16.msrb.mxu2 %v8009_v23  ;;  %6264 = vmatpush.bf16.msrb.mxu0 %v8025_v25  ;;  %v8052_v23 = vld [vmem:[#allocation14 + $0x2b8] sm:$0xff] }
 0x851   : > { %6207 = vmatpush.bf16.msra.mxu1 %v8001_v22  ;;  %6245 = vmatpush.bf16.msra.mxu3 %v8017_v21  ;;  %v5026_v42 = vmax.f32 %v4754_v51, 0.0  ;;  %v8043_v21 = vld [vmem:[#allocation14 + $0x270] sm:$0xff]  ;;  %v8033_v51 = vld [vmem:[#allocation14 + $0x220] sm:$0xff] }
 0x852   : > { %6136 = vmatmul.bf16.vlgmr.msrb.gmra.mxu1 %v5072_v62  ;;  %6155 = vmatmul.bf16.vlgmr.msra.gmra.mxu2 %v5073_v61  ;;  %v8051_v62 = vld [vmem:[#allocation14 + $0x2b0] sm:$0xff] }
 0x853   : > { %v5074_v19 = vpack.c.bf16 %v5026_v42, %v5010_v49  ;;  %v8050_v49 = vld [vmem:[#allocation14 + $0x2a8] sm:$0xff]  ;;  %v8041_v42 = vld [vmem:[#allocation14 + $0x260] sm:$0xff] }
 0x854   : > { %6227 = vmatpush.bf16.msrb.mxu2 %v8008_v53  ;;  %6265 = vmatpush.bf16.msrb.mxu0 %v8024_v34 }
 0x855   : > { %6208 = vmatpush.bf16.msra.mxu1 %v8000_v56  ;;  %6246 = vmatpush.bf16.msra.mxu3 %v8016_v10 }
 0x856   : > { %6174 = vmatmul.bf16.vlgmr.msrb.gmra.mxu3 %v5074_v19 }
 0x857   : > { %v4718_v39 = vpop.f32.mrf.mxu1 }
 0x858   : > { %6228 = vmatpush.bf16.msrb.mxu2 %v8007_v3  ;;  %v4775_v32 = vpop.f32.mrf.mxu0  ;;  %6266 = vmatpush.bf16.msrb.mxu0 %v8023_v33  ;;  %v4719_v35 = vadd.f32 %v4718_v39, %v10816_v55  ;;  %v8057_v3 = vld [vmem:[#allocation14 + $0x2e0] sm:$0xff] }
 0x859   : > { %6209 = vmatpush.bf16.msra.mxu1 %v7999_v31  ;;  %6247 = vmatpush.bf16.msra.mxu3 %v8015_v20  ;;  %v4776_v40 = vadd.f32 %v4775_v32, %v10819_v57  ;;  %v8042_v31 = vld [vmem:[#allocation14 + $0x268] sm:$0xff]  ;;  %v8032_v20 = vld [vmem:[#allocation14 + $0x218] sm:$0xff]  ;;  %v8049_v39 = vld [vmem:[#allocation14 + $0x2a0] sm:$0xff] }
 0x85a   : > { %v5040_v6 = vmax.f32 %v4719_v35, 0.0  ;;  %v8040_v35 = vld [vmem:[#allocation14 + $0x258] sm:$0xff] }
 0x85b   : > { %v5043_v14 = vmax.f32 %v4776_v40, 0.0 }
 0x85c   : > { %6229 = vmatpush.bf16.msrb.mxu2 %v8006_v36  ;;  %6267 = vmatpush.bf16.msrb.mxu0 %v8022_v26  ;;  %v10852_v26 = vperm.slane %v10813_v4, 5 }
 0x85d   : > { %6210 = vmatpush.bf16.msra.mxu1 %v7998_v1  ;;  %v4737_v58 = vpop.f32.mrf.mxu2  ;;  %6248 = vmatpush.bf16.msra.mxu3 %v8014_v0  ;;  %v8056_v0 = vld [vmem:[#allocation14 + $0x2d8] sm:$0xff] }
 0x85e   : > { %v4756_v13 = vpop.f32.mrf.mxu3  ;;  %v4738_v30 = vadd.f32 %v4737_v58, %v10825_v16 }
 0x85f   : > { %v4720_v12 = vpop.f32.mrf.mxu1 }
 0x860   : > { %v4721_v43 = vadd.f32 %v4720_v12, %v10816_v55  ;;  %v4777_v17 = vpop.f32.mrf.mxu0  ;;  %6230 = vmatpush.bf16.msrb.mxu2 %v8005_v47  ;;  %6268 = vmatpush.bf16.msrb.mxu0 %v8021_v27  ;;  %v5041_v53 = vmax.f32 %v4738_v30, 0.0  ;;  %v8031_v47 = vld [vmem:[#allocation14 + $0x210] sm:$0xff] }
 0x861   : > { %6211 = vmatpush.bf16.msra.mxu1 %v7997_v54  ;;  %v4778_v22 = vadd.f32 %v4777_v17, %v10819_v57  ;;  %6249 = vmatpush.bf16.msra.mxu3 %v8013_v7  ;;  %v4757_v57 = vadd.f32 %v4756_v13, %v10828_v11  ;;  %v8048_v7 = vld [vmem:[#allocation14 + $0x298] sm:$0xff]  ;;  %v8055_v17 = vld [vmem:[#allocation14 + $0x2d0] sm:$0xff] }
 0x862   : > { %v5056_v46 = vmax.f32 %v4721_v43, 0.0 }
 0x863   : > { %v5059_v25 = vmax.f32 %v4778_v22, 0.0  ;;  %v5042_v48 = vmax.f32 %v4757_v57, 0.0 }
 0x864   : > { %6337 = vmatpush.bf16.msra.mxu0 %v8060_v28  ;;  %6299 = vmatpush.bf16.msra.mxu2 %v8044_v59  ;;  %v5088_v55 = vpack.c.bf16 %v5056_v46, %v5040_v6  ;;  %v8030_v59 = vld [vmem:[#allocation14 + $0x208] sm:$0xff] }
 0x865   : > { %6280 = vmatpush.bf16.msrb.mxu1 %v8036_v38  ;;  %6318 = vmatpush.bf16.msrb.mxu3 %v8052_v23  ;;  %v4739_v56 = vpop.f32.mrf.mxu2  ;;  %v5091_v41 = vpack.c.bf16 %v5059_v25, %v5043_v14  ;;  %v10856_v38 = vperm.slane %v10813_v4, 6  ;;  %v8039_v23 = vld [vmem:[#allocation14 + $0x250] sm:$0xff] }
 0x866   : > { %v4740_v5 = vadd.f32 %v4739_v56, %v10825_v16  ;;  %v4758_v9 = vpop.f32.mrf.mxu3  ;;  %6141 = vmatmul.bf16.gmra.mxu1 %v5088_v55  ;;  %v10844_v16 = vperm.slane %v10813_v4, 4  ;;  %v8047_v14 = vld [vmem:[#allocation14 + $0x290] sm:$0xff] }
 0x867   : > { %v4759_v8 = vadd.f32 %v4758_v9, %v10828_v11  ;;  %6198 = vmatmul.bf16.gmra.mxu0 %v5091_v41  ;;  %v4789_v34 = vpop.f32.mrf.mxu1  ;;  %v10847_v11 = vperm.slane %v10813_v4, 7  ;;  %v8029_v41 = vld [vmem:[#allocation14 + $0x200] sm:$0xff]  ;;  %v8038_v9 = vld [vmem:[#allocation14 + $0x248] sm:$0xff] }
 0x868   : > { %6300 = vmatpush.bf16.msra.mxu2 %v8043_v21  ;;  %v5057_v10 = vmax.f32 %v4740_v5, 0.0  ;;  %v4846_v45 = vpop.f32.mrf.mxu0  ;;  %6338 = vmatpush.bf16.msra.mxu0 %v8059_v29  ;;  %v4790_v61 = vadd.f32 %v4789_v34, %v10844_v16  ;;  %v8068_v34 = vld [vmem:[#allocation14 + $0x338] sm:$0xff] }
 0x869   : > { %6281 = vmatpush.bf16.msrb.mxu1 %v8035_v63  ;;  %v5058_v2 = vmax.f32 %v4759_v8, 0.0  ;;  %6319 = vmatpush.bf16.msrb.mxu3 %v8051_v62  ;;  %v4847_v1 = vadd.f32 %v4846_v45, %v10847_v11  ;;  %v8046_v8 = vld [vmem:[#allocation14 + $0x288] sm:$0xff]  ;;  %v8092_v45 = vld [vmem:[#allocation14 + $0x3f8] sm:$0xff] }
 0x86a   : > { %v5089_v52 = vpack.c.bf16 %v5057_v10, %v5041_v53  ;;  %v5012_v13 = vmax.f32 %v4790_v61, 0.0  ;;  %v8053_v53 = vld [vmem:[#allocation14 + $0x2c0] sm:$0xff]  ;;  %v8084_v61 = vld [vmem:[#allocation14 + $0x3b8] sm:$0xff] }
 0x86b   : > { %v5090_v15 = vpack.c.bf16 %v5058_v2, %v5042_v48  ;;  %v5015_v40 = vmax.f32 %v4847_v1, 0.0  ;;  %v8037_v2 = vld [vmem:[#allocation14 + $0x240] sm:$0xff] }
 0x86c   : > { %6301 = vmatpush.bf16.msra.mxu2 %v8042_v31  ;;  %6339 = vmatpush.bf16.msra.mxu0 %v8058_v37 }
 0x86d   : > { %6282 = vmatpush.bf16.msrb.mxu1 %v8034_v50  ;;  %6160 = vmatmul.bf16.gmra.mxu2 %v5089_v52  ;;  %v4808_v33 = vpop.f32.mrf.mxu2  ;;  %v8054_v50 = vld [vmem:[#allocation14 + $0x2c8] sm:$0xff] }
 0x86e   : > { %6179 = vmatmul.bf16.gmra.mxu3 %v5090_v15  ;;  %v4827_v19 = vpop.f32.mrf.mxu3  ;;  %v4809_v28 = vadd.f32 %v4808_v33, %v10852_v26  ;;  %v8091_v33 = vld [vmem:[#allocation14 + $0x3f0] sm:$0xff] }
 0x86f   : > { %6320 = vmatpush.bf16.msrb.mxu3 %v8050_v49  ;;  %v4791_v32 = vpop.f32.mrf.mxu1  ;;  %v4828_v4 = vadd.f32 %v4827_v19, %v10856_v38  ;;  %v8067_v49 = vld [vmem:[#allocation14 + $0x330] sm:$0xff] }
 0x870   : > { %6302 = vmatpush.bf16.msra.mxu2 %v8041_v42  ;;  %v4792_v54 = vadd.f32 %v4791_v32, %v10844_v16  ;;  %v4848_v36 = vpop.f32.mrf.mxu0  ;;  %6340 = vmatpush.bf16.msra.mxu0 %v8057_v3  ;;  %v5013_v30 = vmax.f32 %v4809_v28, 0.0 }
 0x871   : > { %6283 = vmatpush.bf16.msrb.mxu1 %v8033_v51  ;;  %v4849_v58 = vadd.f32 %v4848_v36, %v10847_v11  ;;  %v5014_v57 = vmax.f32 %v4828_v4, 0.0  ;;  %v8045_v51 = vld [vmem:[#allocation14 + $0x280] sm:$0xff] }
 0x872   : > { %v5028_v27 = vmax.f32 %v4792_v54, 0.0 }
 0x873   : > { %6321 = vmatpush.bf16.msrb.mxu3 %v8049_v39  ;;  %v5031_v12 = vmax.f32 %v4849_v58, 0.0  ;;  %v8066_v58 = vld [vmem:[#allocation14 + $0x328] sm:$0xff] }
 0x874   : > { %6303 = vmatpush.bf16.msra.mxu2 %v8040_v35  ;;  %v5076_v43 = vpack.c.bf16 %v5028_v27, %v5012_v13  ;;  %6341 = vmatpush.bf16.msra.mxu0 %v8056_v0  ;;  %v8075_v35 = vld [vmem:[#allocation14 + $0x370] sm:$0xff] }
 0x875   : > { %6284 = vmatpush.bf16.msrb.mxu1 %v8032_v20  ;;  %v5079_v63 = vpack.c.bf16 %v5031_v12, %v5015_v40  ;;  %v4810_v22 = vpop.f32.mrf.mxu2  ;;  %v8076_v20 = vld [vmem:[#allocation14 + $0x378] sm:$0xff] }
 0x876   : > { %v4811_v6 = vadd.f32 %v4810_v22, %v10852_v26  ;;  %v4829_v46 = vpop.f32.mrf.mxu3  ;;  %6212 = vmatmul.bf16.vlgmr.msra.gmra.mxu1 %v5076_v43  ;;  %v10871_v12 = vld [vmem:[#allocation13 + $0x8] sm:$0xff]  ;;  %v8065_v43 = vld [vmem:[#allocation14 + $0x320] sm:$0xff] }
 0x877   : > { %6322 = vmatpush.bf16.msrb.mxu3 %v8048_v7  ;;  %v4830_v25 = vadd.f32 %v4829_v46, %v10856_v38  ;;  %6269 = vmatmul.bf16.vlgmr.msrb.gmra.mxu0 %v5079_v63  ;;  %v4794_v21 = vpop.f32.mrf.mxu1  ;;  %v8083_v7 = vld [vmem:[#allocation14 + $0x3b0] sm:$0xff] }
 0x878   : > { %6304 = vmatpush.bf16.msra.mxu2 %v8039_v23  ;;  %v5029_v55 = vmax.f32 %v4811_v6, 0.0  ;;  %v4851_v29 = vpop.f32.mrf.mxu0  ;;  %6342 = vmatpush.bf16.msra.mxu0 %v8055_v17  ;;  %v4795_v37 = vadd.f32 %v4794_v21, %v10844_v16  ;;  %v10874_v23 = vperm.slane %v10871_v12, 0  ;;  %v8064_v21 = vld [vmem:[#allocation14 + $0x318] sm:$0xff] }
 0x879   : > { %6285 = vmatpush.bf16.msrb.mxu1 %v8031_v47  ;;  %v5030_v56 = vmax.f32 %v4830_v25, 0.0  ;;  %v4852_v31 = vadd.f32 %v4851_v29, %v10847_v11  ;;  %v8090_v47 = vld [vmem:[#allocation14 + $0x3e8] sm:$0xff] }
 0x87a   : > { %v5077_v62 = vpack.c.bf16 %v5029_v55, %v5013_v30  ;;  %v5044_v19 = vmax.f32 %v4795_v37, 0.0  ;;  %v8082_v25 = vld [vmem:[#allocation14 + $0x3a8] sm:$0xff]  ;;  %v8088_v55 = vld [vmem:[#allocation14 + $0x3d8] sm:$0xff] }
 0x87b   : > { %6323 = vmatpush.bf16.msrb.mxu3 %v8047_v14  ;;  %v5078_v5 = vpack.c.bf16 %v5030_v56, %v5014_v57  ;;  %v5047_v1 = vmax.f32 %v4852_v31, 0.0  ;;  %v8074_v14 = vld [vmem:[#allocation14 + $0x368] sm:$0xff]  ;;  %v8073_v57 = vld [vmem:[#allocation14 + $0x360] sm:$0xff] }
 0x87c   : > { %6343 = vmatpush.bf16.msra.mxu0 %v8054_v50  ;;  %6305 = vmatpush.bf16.msra.mxu2 %v8038_v9  ;;  %v8081_v56 = vld [vmem:[#allocation14 + $0x3a0] sm:$0xff]  ;;  %v10882_v9 = vperm.slane %v10871_v12, 1 }
 0x87d   : > { %6286 = vmatpush.bf16.msrb.mxu1 %v8030_v59  ;;  %6231 = vmatmul.bf16.vlgmr.msrb.gmra.mxu2 %v5077_v62  ;;  %v4813_v10 = vpop.f32.mrf.mxu2 }
 0x87e   : > { %6250 = vmatmul.bf16.vlgmr.msra.gmra.mxu3 %v5078_v5  ;;  %v4832_v48 = vpop.f32.mrf.mxu3  ;;  %v4814_v54 = vadd.f32 %v4813_v10, %v10852_v26  ;;  %v8063_v5 = vld [vmem:[#allocation14 + $0x310] sm:$0xff] }
 0x87f   : > { %6324 = vmatpush.bf16.msrb.mxu3 %v8046_v8  ;;  %v4796_v52 = vpop.f32.mrf.mxu1 }
 0x880   : > { %v4797_v15 = vadd.f32 %v4796_v52, %v10844_v16  ;;  %v4853_v42 = vpop.f32.mrf.mxu0  ;;  %6344 = vmatpush.bf16.msra.mxu0 %v8053_v53  ;;  %6306 = vmatpush.bf16.msra.mxu2 %v8037_v2  ;;  %v4833_v16 = vadd.f32 %v4832_v48, %v10856_v38  ;;  %v5045_v17 = vmax.f32 %v4814_v54, 0.0  ;;  %v10886_v53 = vperm.slane %v10871_v12, 2  ;;  %v8072_v2 = vld [vmem:[#allocation14 + $0x358] sm:$0xff] }
 0x881   : > { %6287 = vmatpush.bf16.msrb.mxu1 %v8029_v41  ;;  %v4854_v3 = vadd.f32 %v4853_v42, %v10847_v11  ;;  %v8080_v52 = vld [vmem:[#allocation14 + $0x398] sm:$0xff] }
 0x882   : > { %v5060_v39 = vmax.f32 %v4797_v15, 0.0  ;;  %v5046_v22 = vmax.f32 %v4833_v16, 0.0 }
 0x883   : > { %6325 = vmatpush.bf16.msrb.mxu3 %v8045_v51  ;;  %v5063_v32 = vmax.f32 %v4854_v3, 0.0 }
 0x884   : > { %6413 = vmatpush.bf16.msrb.mxu0 %v8092_v45  ;;  %6375 = vmatpush.bf16.msrb.mxu2 %v8076_v20  ;;  %v5092_v36 = vpack.c.bf16 %v5060_v39, %v5044_v19  ;;  %v8087_v45 = vld [vmem:[#allocation14 + $0x3d0] sm:$0xff]  ;;  %v8062_v20 = vld [vmem:[#allocation14 + $0x308] sm:$0xff] }
 0x885   : > { %6356 = vmatpush.bf16.msra.mxu1 %v8068_v34  ;;  %v4815_v0 = vpop.f32.mrf.mxu2  ;;  %v5095_v11 = vpack.c.bf16 %v5063_v32, %v5047_v1  ;;  %v8071_v1 = vld [vmem:[#allocation14 + $0x350] sm:$0xff] }
 0x886   : > { %v4816_v13 = vadd.f32 %v4815_v0, %v10852_v26  ;;  %v4834_v27 = vpop.f32.mrf.mxu3  ;;  %6217 = vmatmul.bf16.gmra.mxu1 %v5092_v36  ;;  %v8089_v26 = vld [vmem:[#allocation14 + $0x3e0] sm:$0xff]  ;;  %v8079_v36 = vld [vmem:[#allocation14 + $0x390] sm:$0xff] }
 0x887   : > { %6394 = vmatpush.bf16.msra.mxu3 %v8084_v61  ;;  %v4835_v40 = vadd.f32 %v4834_v27, %v10856_v38  ;;  %6274 = vmatmul.bf16.gmra.mxu0 %v5095_v11  ;;  %v4865_v28 = vpop.f32.mrf.mxu1  ;;  %v10877_v38 = vperm.slane %v10871_v12, 3  ;;  %v8086_v61 = vld [vmem:[#allocation14 + $0x3c8] sm:$0xff] }
 0x888   : > { %6414 = vmatpush.bf16.msrb.mxu0 %v8091_v33  ;;  %v5061_v4 = vmax.f32 %v4816_v13, 0.0  ;;  %v4922_v63 = vpop.f32.mrf.mxu0  ;;  %6376 = vmatpush.bf16.msrb.mxu2 %v8075_v35  ;;  %v4866_v29 = vadd.f32 %v4865_v28, %v10874_v23  ;;  %v8085_v13 = vld [vmem:[#allocation14 + $0x3c0] sm:$0xff]  ;;  %v8078_v28 = vld [vmem:[#allocation14 + $0x388] sm:$0xff] }
 0x889   : > { %6357 = vmatpush.bf16.msra.mxu1 %v8067_v49  ;;  %v5062_v59 = vmax.f32 %v4835_v40, 0.0  ;;  %v4923_v41 = vadd.f32 %v4922_v63, %v10877_v38  ;;  %v8070_v40 = vld [vmem:[#allocation14 + $0x348] sm:$0xff]  ;;  %v8069_v63 = vld [vmem:[#allocation14 + $0x340] sm:$0xff] }
 0x88a   : > { %v5093_v6 = vpack.c.bf16 %v5061_v4, %v5045_v17  ;;  %v5016_v37 = vmax.f32 %v4866_v29, 0.0 }
 0x88b   : > { %6395 = vmatpush.bf16.msra.mxu3 %v8083_v7  ;;  %v5094_v46 = vpack.c.bf16 %v5062_v59, %v5046_v22  ;;  %v5019_v51 = vmax.f32 %v4923_v41, 0.0 }
 0x88c   : > { %6415 = vmatpush.bf16.msrb.mxu0 %v8090_v47  ;;  %6377 = vmatpush.bf16.msrb.mxu2 %v8074_v14 }
 0x88d   : > { %6358 = vmatpush.bf16.msra.mxu1 %v8066_v58  ;;  %6236 = vmatmul.bf16.gmra.mxu2 %v5093_v6  ;;  %v4884_v30 = vpop.f32.mrf.mxu2  ;;  %v8061_v58 = vld [vmem:[#allocation14 + $0x300] sm:$0xff] }
 0x88e   : > { %6255 = vmatmul.bf16.gmra.mxu3 %v5094_v46  ;;  %v4903_v50 = vpop.f32.mrf.mxu3  ;;  %v4885_v49 = vadd.f32 %v4884_v30, %v10882_v9 }
 0x88f   : > { %6396 = vmatpush.bf16.msra.mxu3 %v8082_v25  ;;  %v4867_v62 = vpop.f32.mrf.mxu1  ;;  %v4904_v42 = vadd.f32 %v4903_v50, %v10886_v53 }
 0x890   : > { %6416 = vmatpush.bf16.msrb.mxu0 %v8089_v26  ;;  %v4868_v8 = vadd.f32 %v4867_v62, %v10874_v23  ;;  %v4924_v34 = vpop.f32.mrf.mxu0  ;;  %6378 = vmatpush.bf16.msrb.mxu2 %v8073_v57  ;;  %v5017_v16 = vmax.f32 %v4885_v49, 0.0  ;;  %v8077_v26 = vld [vmem:[#allocation14 + $0x380] sm:$0xff] }
 0x891   : > { %6359 = vmatpush.bf16.msra.mxu1 %v8065_v43  ;;  %v4925_v10 = vadd.f32 %v4924_v34, %v10877_v38  ;;  %v5018_v47 = vmax.f32 %v4904_v42, 0.0  ;;  %v4045_v42 = vperm.slane %v10871_v12, 5 }
 0x892   : > { %v5032_v48 = vmax.f32 %v4868_v8, 0.0 }
 0x893   : > { %6397 = vmatpush.bf16.msra.mxu3 %v8081_v56  ;;  %v5035_v31 = vmax.f32 %v4925_v10, 0.0 }
 0x894   : > { %6417 = vmatpush.bf16.msrb.mxu0 %v8088_v55  ;;  %v5080_v15 = vpack.c.bf16 %v5032_v48, %v5016_v37  ;;  %6379 = vmatpush.bf16.msrb.mxu2 %v8072_v2  ;;  %v4044_v2 = vperm.slane %v10871_v12, 4 }
 0x895   : > { %6360 = vmatpush.bf16.msra.mxu1 %v8064_v21  ;;  %v5083_v3 = vpack.c.bf16 %v5035_v31, %v5019_v51  ;;  %v4886_v33 = vpop.f32.mrf.mxu2  ;;  %v4047_v31 = vperm.slane %v10871_v12, 7 }
 0x896   : > { %v4887_v19 = vadd.f32 %v4886_v33, %v10882_v9  ;;  %v4905_v39 = vpop.f32.mrf.mxu3  ;;  %6288 = vmatmul.bf16.vlgmr.msrb.gmra.mxu1 %v5080_v15 }
 0x897   : > { %v4906_v32 = vadd.f32 %v4905_v39, %v10886_v53  ;;  %6345 = vmatmul.bf16.vlgmr.msra.gmra.mxu0 %v5083_v3  ;;  %v4870_v54 = vpop.f32.mrf.mxu1  ;;  %6398 = vmatpush.bf16.msra.mxu3 %v8080_v52 }
 0x898   : > { %6418 = vmatpush.bf16.msrb.mxu0 %v8087_v45  ;;  %v5033_v0 = vmax.f32 %v4887_v19, 0.0  ;;  %v4927_v11 = vpop.f32.mrf.mxu0  ;;  %6380 = vmatpush.bf16.msrb.mxu2 %v8071_v1  ;;  %v4871_v17 = vadd.f32 %v4870_v54, %v10874_v23 }
 0x899   : > { %6361 = vmatpush.bf16.msra.mxu1 %v8063_v5  ;;  %v5034_v35 = vmax.f32 %v4906_v32, 0.0  ;;  %v4928_v22 = vadd.f32 %v4927_v11, %v10877_v38 }
 0x89a   : > { %v5081_v27 = vpack.c.bf16 %v5033_v0, %v5017_v16  ;;  %v5048_v25 = vmax.f32 %v4871_v17, 0.0 }
 0x89b   : > { %v5082_v7 = vpack.c.bf16 %v5034_v35, %v5018_v47  ;;  %6399 = vmatpush.bf16.msra.mxu3 %v8079_v36  ;;  %v5051_v30 = vmax.f32 %v4928_v22, 0.0 }
 0x89c   : > { %6419 = vmatpush.bf16.msrb.mxu0 %v8086_v61  ;;  %6381 = vmatpush.bf16.msrb.mxu2 %v8070_v40 }
 0x89d   : > { %6362 = vmatpush.bf16.msra.mxu1 %v8062_v20  ;;  %6307 = vmatmul.bf16.vlgmr.msra.gmra.mxu2 %v5081_v27  ;;  %v4889_v43 = vpop.f32.mrf.mxu2  ;;  %v4046_v20 = vperm.slane %v10871_v12, 6 }
 0x89e   : > { %6326 = vmatmul.bf16.vlgmr.msrb.gmra.mxu3 %v5082_v7  ;;  %v4908_v4 = vpop.f32.mrf.mxu3  ;;  %v4890_v29 = vadd.f32 %v4889_v43, %v10882_v9 }
 0x89f   : > { %v4872_v59 = vpop.f32.mrf.mxu1  ;;  %6400 = vmatpush.bf16.msra.mxu3 %v8078_v28  ;;  %v4909_v57 = vadd.f32 %v4908_v4, %v10886_v53 }
 0x8a0   : > { %6420 = vmatpush.bf16.msrb.mxu0 %v8085_v13  ;;  %v4873_v6 = vadd.f32 %v4872_v59, %v10874_v23  ;;  %v4929_v46 = vpop.f32.mrf.mxu0  ;;  %6382 = vmatpush.bf16.msrb.mxu2 %v8069_v63  ;;  %v5049_v8 = vmax.f32 %v4890_v29, 0.0 }
 0x8a1   : > { %6363 = vmatpush.bf16.msra.mxu1 %v8061_v58  ;;  %v4930_v14 = vadd.f32 %v4929_v46, %v10877_v38  ;;  %v5050_v45 = vmax.f32 %v4909_v57, 0.0 }
 0x8a2   : > { %v5064_v21 = vmax.f32 %v4873_v6, 0.0 }
 0x8a3   : > { %v5067_v55 = vmax.f32 %v4930_v14, 0.0  ;;  %6401 = vmatpush.bf16.msra.mxu3 %v8077_v26 }
 0x8a4   : > { %v5096_v50 = vpack.c.bf16 %v5064_v21, %v5048_v25 }
 0x8a5   : > { %v5099_v56 = vpack.c.bf16 %v5067_v55, %v5051_v30  ;;  %v4891_v41 = vpop.f32.mrf.mxu2 }
 0x8a6   : > { %v4892_v62 = vadd.f32 %v4891_v41, %v10882_v9  ;;  %v4910_v5 = vpop.f32.mrf.mxu3  ;;  %6293 = vmatmul.bf16.gmra.mxu1 %v5096_v50 }
 0x8a7   : > { %v4911_v23 = vadd.f32 %v4910_v5, %v10886_v53  ;;  %6350 = vmatmul.bf16.gmra.mxu0 %v5099_v56  ;;  %v4941_v38 = vpop.f32.mrf.mxu1 }
 0x8a8   : > { %v5065_v34 = vmax.f32 %v4892_v62, 0.0  ;;  %v4998_v10 = vpop.f32.mrf.mxu0  ;;  %v4942_v52 = vadd.f32 %v4941_v38, %v4044_v2 }
 0x8a9   : > { %v5066_v37 = vmax.f32 %v4911_v23, 0.0  ;;  %v4999_v15 = vadd.f32 %v4998_v10, %v4047_v31 }
 0x8aa   : > { %v5097_v48 = vpack.c.bf16 %v5065_v34, %v5049_v8  ;;  %v5020_v19 = vmax.f32 %v4942_v52, 0.0 }
 0x8ab   : > { %v5098_v51 = vpack.c.bf16 %v5066_v37, %v5050_v45  ;;  %v5023_v1 = vmax.f32 %v4999_v15, 0.0 }
 0x8ad   : > { %6312 = vmatmul.bf16.gmra.mxu2 %v5097_v48  ;;  %v4960_v9 = vpop.f32.mrf.mxu2 }
 0x8ae   : > { %6331 = vmatmul.bf16.gmra.mxu3 %v5098_v51  ;;  %v4979_v49 = vpop.f32.mrf.mxu3  ;;  %v4961_v54 = vadd.f32 %v4960_v9, %v4045_v42 }
 0x8af   : > { %v4943_v53 = vpop.f32.mrf.mxu1  ;;  %v4980_v16 = vadd.f32 %v4979_v49, %v4046_v20 }
 0x8b0   : > { %v4944_v3 = vadd.f32 %v4943_v53, %v4044_v2  ;;  %v5000_v33 = vpop.f32.mrf.mxu0  ;;  %v5021_v27 = vmax.f32 %v4961_v54, 0.0 }
 0x8b1   : > { %v5001_v61 = vadd.f32 %v5000_v33, %v4047_v31  ;;  %v5022_v12 = vmax.f32 %v4980_v16, 0.0 }
 0x8b2   : > { %v5036_v39 = vmax.f32 %v4944_v3, 0.0 }
 0x8b3   : > { %v5039_v32 = vmax.f32 %v5001_v61, 0.0 }
 0x8b4   : > { %v5084_v36 = vpack.c.bf16 %v5036_v39, %v5020_v19 }
 0x8b5   : > { %v5087_v0 = vpack.c.bf16 %v5039_v32, %v5023_v1  ;;  %v4962_v11 = vpop.f32.mrf.mxu2 }
 0x8b6   : > { %v4963_v58 = vadd.f32 %v4962_v11, %v4045_v42  ;;  %v4981_v47 = vpop.f32.mrf.mxu3  ;;  %6364 = vmatmul.bf16.vlgmr.msra.gmra.mxu1 %v5084_v36 }
 0x8b7   : > { %v4982_v35 = vadd.f32 %v4981_v47, %v4046_v20  ;;  %6421 = vmatmul.bf16.vlgmr.msrb.gmra.mxu0 %v5087_v0  ;;  %v4946_v13 = vpop.f32.mrf.mxu1 }
 0x8b8   : > { %v5037_v7 = vmax.f32 %v4963_v58, 0.0  ;;  %v5003_v40 = vpop.f32.mrf.mxu0  ;;  %v4947_v63 = vadd.f32 %v4946_v13, %v4044_v2 }
 0x8b9   : > { %v5038_v28 = vmax.f32 %v4982_v35, 0.0  ;;  %v5004_v59 = vadd.f32 %v5003_v40, %v4047_v31 }
 0x8ba   : > { %v5085_v43 = vpack.c.bf16 %v5037_v7, %v5021_v27  ;;  %v5052_v25 = vmax.f32 %v4947_v63, 0.0 }
 0x8bb   : > { %v5086_v17 = vpack.c.bf16 %v5038_v28, %v5022_v12  ;;  %v5055_v30 = vmax.f32 %v5004_v59, 0.0 }
 0x8bd   : > { %6383 = vmatmul.bf16.vlgmr.msrb.gmra.mxu2 %v5085_v43  ;;  %v4965_v4 = vpop.f32.mrf.mxu2 }
 0x8be   : > { %6402 = vmatmul.bf16.vlgmr.msra.gmra.mxu3 %v5086_v17  ;;  %v4984_v22 = vpop.f32.mrf.mxu3  ;;  %v4966_v29 = vadd.f32 %v4965_v4, %v4045_v42 }
 0x8bf   : > { %v4948_v26 = vpop.f32.mrf.mxu1  ;;  %v4985_v57 = vadd.f32 %v4984_v22, %v4046_v20 }
 0x8c0   : > { %v4949_v6 = vadd.f32 %v4948_v26, %v4044_v2  ;;  %v5005_v46 = vpop.f32.mrf.mxu0  ;;  %v5053_v38 = vmax.f32 %v4966_v29, 0.0 }
 0x8c1   : > { %v5006_v14 = vadd.f32 %v5005_v46, %v4047_v31  ;;  %v5054_v34 = vmax.f32 %v4985_v57, 0.0 }
 0x8c2   : > { %v5068_v21 = vmax.f32 %v4949_v6, 0.0 }
 0x8c3   : > { %v5071_v55 = vmax.f32 %v5006_v14, 0.0 }
 0x8c4   : > { %v5100_v50 = vpack.c.bf16 %v5068_v21, %v5052_v25 }
 0x8c5   : > { %v5103_v56 = vpack.c.bf16 %v5071_v55, %v5055_v30  ;;  %v4967_v41 = vpop.f32.mrf.mxu2 }
 0x8c6   : > { %v4968_v62 = vadd.f32 %v4967_v41, %v4045_v42  ;;  %v4986_v5 = vpop.f32.mrf.mxu3  ;;  %6369 = vmatmul.bf16.gmra.mxu1 %v5100_v50 }
 0x8c7   : > { %v4987_v23 = vadd.f32 %v4986_v5, %v4046_v20  ;;  %6426 = vmatmul.bf16.gmra.mxu0 %v5103_v56 }
 0x8c8   : > { %v5069_v8 = vmax.f32 %v4968_v62, 0.0 }
 0x8c9   : > { %v5070_v10 = vmax.f32 %v4987_v23, 0.0 }
 0x8ca   : > { %v5101_v45 = vpack.c.bf16 %v5069_v8, %v5053_v38 }
 0x8cb   : > { %v5102_v37 = vpack.c.bf16 %v5070_v10, %v5054_v34  ;;  %v6194_v2 = vpop.f32.mrf.mxu0 }
 0x8cd   : > { %6388 = vmatmul.bf16.gmra.mxu2 %v5101_v45 }
 0x8ce   : > { %6407 = vmatmul.bf16.gmra.mxu3 %v5102_v37 }
 0x8cf   : > { %v6137_v48 = vpop.f32.mrf.mxu1 }
 0x8d3   : > { %v6196_v49 = vpop.f32.mrf.mxu0 }
 0x8d5   : > { %v6156_v31 = vpop.f32.mrf.mxu2 }
 0x8d6   : > { %v6157_v52 = vadd.f32 %v6156_v31, %v6137_v48 }
 0x8d7   : > { %v6139_v51 = vpop.f32.mrf.mxu1 }
 0x8d9   : > { %v6175_v9 = vpop.f32.mrf.mxu3 }
 0x8da   : > { %v6176_v15 = vadd.f32 %v6175_v9, %v6157_v52 }
 0x8dc   : > { %v6195_v53 = vadd.f32 %v6194_v2, %v6176_v15 }
 0x8dd   : > { %v6158_v3 = vpop.f32.mrf.mxu2 }
 0x8de   : > { %v6159_v33 = vadd.f32 %v6158_v3, %v6139_v51 }
 0x8e1   : > { %v6177_v61 = vpop.f32.mrf.mxu3 }
 0x8e2   : > { %v6178_v19 = vadd.f32 %v6177_v61, %v6159_v33 }
 0x8e3   : > { %v6142_v42 = vpop.f32.mrf.mxu1 }
 0x8e4   : > { %v6199_v20 = vpop.f32.mrf.mxu0  ;;  %v6197_v39 = vadd.f32 %v6196_v49, %v6178_v19 }
 0x8eb   : > { %v6144_v1 = vpop.f32.mrf.mxu1 }
 0x8ec   : > { %v6201_v32 = vpop.f32.mrf.mxu0 }
 0x8f0   : > { %v6161_v54 = vpop.f32.mrf.mxu2 }
 0x8f1   : > { %v6162_v36 = vadd.f32 %v6161_v54, %v6142_v42  ;;  %v6180_v16 = vpop.f32.mrf.mxu3 }
 0x8f3   : > { %v6181_v0 = vadd.f32 %v6180_v16, %v6162_v36  ;;  %v6213_v11 = vpop.f32.mrf.mxu1 }
 0x8f4   : > { %v6270_v47 = vpop.f32.mrf.mxu0  ;;  %v6214_v62 = vadd.f32 %v6213_v11, %v6195_v53 }
 0x8f5   : > { %v6200_v58 = vadd.f32 %v6199_v20, %v6181_v0 }
 0x8f8   : > { %v6163_v35 = vpop.f32.mrf.mxu2 }
 0x8f9   : > { %v6164_v13 = vadd.f32 %v6163_v35, %v6144_v1  ;;  %v6182_v27 = vpop.f32.mrf.mxu3 }
 0x8fb   : > { %v6183_v7 = vadd.f32 %v6182_v27, %v6164_v13  ;;  %v6215_v40 = vpop.f32.mrf.mxu1 }
 0x8fc   : > { %v6272_v28 = vpop.f32.mrf.mxu0  ;;  %v6216_v45 = vadd.f32 %v6215_v40, %v6197_v39 }
 0x8fd   : > { %v6202_v12 = vadd.f32 %v6201_v32, %v6183_v7 }
 0x900   : > { %v6232_v43 = vpop.f32.mrf.mxu2 }
 0x901   : > { %v6251_v17 = vpop.f32.mrf.mxu3  ;;  %v6233_v23 = vadd.f32 %v6232_v43, %v6214_v62 }
 0x903   : > { %v6218_v4 = vpop.f32.mrf.mxu1  ;;  %v6252_v10 = vadd.f32 %v6251_v17, %v6233_v23 }
 0x904   : > { %v6275_v63 = vpop.f32.mrf.mxu0  ;;  %v6219_v42 = vadd.f32 %v6218_v4, %v6200_v58 }
 0x905   : > { %v6271_v2 = vadd.f32 %v6270_v47, %v6252_v10 }
 0x908   : > { %v6234_v22 = vpop.f32.mrf.mxu2 }
 0x909   : > { %v6253_v59 = vpop.f32.mrf.mxu3  ;;  %v6235_v48 = vadd.f32 %v6234_v22, %v6216_v45  ;;  %v8353_v22 = vld [vmem:[%s11064_s4] ss:$0 sm:$0xff] }
 0x90b   : > { %v6220_v26 = vpop.f32.mrf.mxu1  ;;  %v6254_v52 = vadd.f32 %v6253_v59, %v6235_v48 }
 0x90c   : > { %v6277_v6 = vpop.f32.mrf.mxu0  ;;  %v6221_v36 = vadd.f32 %v6220_v26, %v6202_v12 }
 0x90d   : > { %v6273_v53 = vadd.f32 %v6272_v28, %v6254_v52 }
 0x910   : > { %v6237_v46 = vpop.f32.mrf.mxu2 }
 0x911   : > { %v6256_v14 = vpop.f32.mrf.mxu3  ;;  %v6238_v33 = vadd.f32 %v6237_v46, %v6219_v42 }
 0x913   : > { %v6289_v25 = vpop.f32.mrf.mxu1  ;;  %v6257_v1 = vadd.f32 %v6256_v14, %v6238_v33 }
 0x914   : > { %v6346_v21 = vpop.f32.mrf.mxu0  ;;  %v6290_v31 = vadd.f32 %v6289_v25, %v6271_v2 }
 0x915   : > { %v6276_v35 = vadd.f32 %v6275_v63, %v6257_v1 }
 0x918   : > { %v6239_v30 = vpop.f32.mrf.mxu2 }
 0x919   : > { %v6258_v55 = vpop.f32.mrf.mxu3  ;;  %v6240_v47 = vadd.f32 %v6239_v30, %v6221_v36 }
 0x91b   : > { %v6291_v29 = vpop.f32.mrf.mxu1  ;;  %v6259_v43 = vadd.f32 %v6258_v55, %v6240_v47 }
 0x91c   : > { %v6348_v50 = vpop.f32.mrf.mxu0  ;;  %v6292_v19 = vadd.f32 %v6291_v29, %v6273_v53 }
 0x91d   : > { %v6278_v63 = vadd.f32 %v6277_v6, %v6259_v43 }
 0x920   : > { %v6308_v57 = vpop.f32.mrf.mxu2 }
 0x921   : > { %v6327_v56 = vpop.f32.mrf.mxu3  ;;  %v6309_v49 = vadd.f32 %v6308_v57, %v6290_v31 }
 0x923   : > { %v6294_v41 = vpop.f32.mrf.mxu1  ;;  %v6328_v20 = vadd.f32 %v6327_v56, %v6309_v49 }
 0x924   : > { %v6351_v8 = vpop.f32.mrf.mxu0  ;;  %v6295_v58 = vadd.f32 %v6294_v41, %v6276_v35 }
 0x925   : > { %v6347_v54 = vadd.f32 %v6346_v21, %v6328_v20 }
 0x928   : > { %v6310_v5 = vpop.f32.mrf.mxu2 }
 0x929   : > { %v6329_v38 = vpop.f32.mrf.mxu3  ;;  %v6311_v32 = vadd.f32 %v6310_v5, %v6292_v19 }
 0x92b   : > { %v6296_v34 = vpop.f32.mrf.mxu1  ;;  %v6330_v13 = vadd.f32 %v6329_v38, %v6311_v32 }
 0x92c   : > { %v6353_v9 = vpop.f32.mrf.mxu0  ;;  %v6297_v55 = vadd.f32 %v6296_v34, %v6278_v63 }
 0x92d   : > { %v6349_v17 = vadd.f32 %v6348_v50, %v6330_v13 }
 0x930   : > { %v6313_v37 = vpop.f32.mrf.mxu2 }
 0x931   : > { %v6332_v51 = vpop.f32.mrf.mxu3  ;;  %v6314_v28 = vadd.f32 %v6313_v37, %v6295_v58 }
 0x933   : > { %v6365_v15 = vpop.f32.mrf.mxu1  ;;  %v6333_v14 = vadd.f32 %v6332_v51, %v6314_v28 }
 0x934   : > { %v6422_v39 = vpop.f32.mrf.mxu0  ;;  %v6366_v16 = vadd.f32 %v6365_v15, %v6347_v54 }
 0x935   : > { %v6352_v56 = vadd.f32 %v6351_v8, %v6333_v14 }
 0x938   : > { %v6315_v3 = vpop.f32.mrf.mxu2 }
 0x939   : > { %v6334_v61 = vpop.f32.mrf.mxu3  ;;  %v6316_v57 = vadd.f32 %v6315_v3, %v6297_v55 }
 0x93b   : > { %v6367_v0 = vpop.f32.mrf.mxu1  ;;  %v6335_v5 = vadd.f32 %v6334_v61, %v6316_v57 }
 0x93c   : > { %v6368_v12 = vadd.f32 %v6367_v0, %v6349_v17  ;;  %v6424_v26 = vpop.f32.mrf.mxu0 }
 0x93d   : > { %v6354_v48 = vadd.f32 %v6353_v9, %v6335_v5 }
 0x940   : > { %v6384_v11 = vpop.f32.mrf.mxu2 }
 0x941   : > { %v6385_v27 = vadd.f32 %v6384_v11, %v6366_v16  ;;  %v6403_v7 = vpop.f32.mrf.mxu3 }
 0x943   : > { %v6404_v40 = vadd.f32 %v6403_v7, %v6385_v27  ;;  %v6370_v29 = vpop.f32.mrf.mxu1 }
 0x944   : > { %v6427_v10 = vpop.f32.mrf.mxu0 }
 0x945   : > { %v6423_v4 = vadd.f32 %v6422_v39, %v6404_v40 }
 0x947   : > { %v6432_v59 = vadd.f32 %v6423_v4, %v10613_v60  ;;  %v6371_v60 = vadd.f32 %v6370_v29, %v6352_v56 }
 0x948   : > { %v6386_v46 = vpop.f32.mrf.mxu2 }
 0x949   : > { %v6440_v25 = vadd.f32 %v8353_v22, %v6432_v59  ;;  %v6387_v21 = vadd.f32 %v6386_v46, %v6368_v12  ;;  %v6405_v30 = vpop.f32.mrf.mxu3 }
 0x94b   : > { %6444 = vst [vmem:[%s10911_s16] sm:$0xff] %v6440_v25  ;;  %v6406_v50 = vadd.f32 %v6405_v30, %v6387_v21  ;;  %v6372_v37 = vpop.f32.mrf.mxu1 }
 0x94c   : > { %v6373_v51 = vadd.f32 %v6372_v37, %v6354_v48  ;;  %v6429_v9 = vpop.f32.mrf.mxu0 }
 0x94d   : > { %v6425_v41 = vadd.f32 %v6424_v26, %v6406_v50 }
 0x94f   : > { %v6433_v6 = vadd.f32 %v6425_v41, %v10617_v18 }
 0x950   : > { %v6389_v62 = vpop.f32.mrf.mxu2 }
 0x951   : > { %v6441_v23 = vadd.f32 %v8353_v22, %v6433_v6  ;;  %v6390_v38 = vadd.f32 %v6389_v62, %v6371_v60  ;;  %v6408_v34 = vpop.f32.mrf.mxu3 }
 0x953   : > { %6445 = vst [vmem:[%s10911_s16 + $0x8] sm:$0xff] %v6441_v23  ;;  %v6409_v45 = vadd.f32 %v6408_v34, %v6390_v38 }
 0x955   : > { %v6428_v2 = vadd.f32 %v6427_v10, %v6409_v45 }
 0x957   : > { %v6434_v8 = vadd.f32 %v6428_v2, %v10621_v24 }
 0x958   : > { %v6391_v31 = vpop.f32.mrf.mxu2 }
 0x959   : > { %v6442_v18 = vadd.f32 %v8353_v22, %v6434_v8  ;;  %v6392_v52 = vadd.f32 %v6391_v31, %v6373_v51  ;;  %v6410_v49 = vpop.f32.mrf.mxu3 }
 0x95b   : > { %6446 = vst [vmem:[%s10911_s16 + $0x10] sm:$0xff] %v6442_v18  ;;  %v6411_v15 = vadd.f32 %v6410_v49, %v6392_v52 }
 0x95d   : > { %v6430_v42 = vadd.f32 %v6429_v9, %v6411_v15 }
 0x95f   : > { %v6435_v24 = vadd.f32 %v6430_v42, %v10625_v44 }
 0x961   : > { %v6443_v3 = vadd.f32 %v8353_v22, %v6435_v24 }
 0x963   : > { %6447 = vst [vmem:[%s10911_s16 + $0x18] sm:$0xff] %v6443_v3 }
 0x964   : > { %8725 = shalt.err (!%p8722_p9)
}
 0x965   : > { %s8803_s29 = smov 128   ;;  %s8804_s16 = smov 8  }
 0x966   : > { %8125 = dma.vmem_to_hbm [thread:$0]  (%p8977_p5), %s6463_s23, 512, %s6465_s18, %s6449_s15, %s8803_s29, %s8803_s29, %s8804_s16  }
 0x967 PF: > { %s6479_s7 = sand.u32 1, %s8768_s25   ;;  %p11066_p10 = scmp.ge.s32.totalorder %s8780_s28, 2 }
 0x968   : > { %s6480_s22 = scalar_lea.sflag [#allocation4], %s6479_s7 }
 0x969   : > { %p8154_p13 = pnand %p11066_p10, %p8981_p6 }
 0x96b   : > { %p8155_p11 = pneg %p8154_p13 }
 0x96d   : > { %8763 = dma.done.wait (%p8155_p11), %s6480_s22, 512  }
 0x96e   : > { %8765 = vsyncadd (%p8155_p11), %s6480_s22, 4294966784  ;;  %p30_p0 = scmp.ge.s32.totalorder %s8951_s1, 4   ;;  %s11067_s25 = smov %s8772_s26 }
 0x96f   : > { %s11068_s26 = smov %s8776_s27  ;;  %s11069_s27 = smov %s8962_s17 }
 0x970   : > { %s11070_s28 = smov %s8951_s1  ;;  %32 = sbr.rel (!%p30_p0) target bundleno = 18 (0x12), region = 145 }
 0x975   :  { %6486 = vsyncpa [#allocation3], 1 }
 0x976   :  { %6488 = vsyncpa [#allocation3 + $0x1], 1 }
 0x977   :  { %6489 = vsyncpa [#allocation6], 1 }
 0x978   :  { %6490 = vsyncpa [#allocation9], 1 }
 0x979   :  { %6491 = vsyncpa [#allocation12], 1 }
 0x97a   :  { %6492 = vsyncpa [#allocation15], 1 }
 0x97b   :  { %6493 = vsyncpa [#allocation4], 1 }
 0x97c   :  { %6495 = vsyncpa [#allocation4 + $0x1], 1 }

</bundles_post_ra>
